<compile_context>
chip_gen: v7x
topology: tpu7x:2x2x1
jax: 0.10.0
libtpu: 0.0.40
codegen_flags: <defaults>
</compile_context>

<pallas_src>
import functools

import jax
import jax.numpy as jnp
from jax.experimental import pallas as pl
from jax.experimental.pallas import tpu as pltpu


# ----------------------------------------------------------------------------
# Host-side constants: shift-validity masks and pool/upsample selection matrices
# ----------------------------------------------------------------------------
def _build_constants(H, W):
    """All constants live on the (H*W,) flat spatial axis (row-major per image)."""
    M = H * W
    H2, W2 = H // 2, W // 2
    p = jnp.arange(M)
    pi, pj = p // W, p % W

    def shift_masks(vh, vw):
        rows = []
        for k in range(9):
            dh, dw = k // 3 - 1, k % 3 - 1
            ok = (pi + dh >= 0) & (pi + dh < vh) & (pj + dw >= 0) & (pj + dw < vw)
            rows.append(ok)
        return jnp.stack(rows).astype(jnp.float32)          # (9, M)

    masks_full = shift_masks(H, W)
    # Half-res image lives in the top-left H2 x W2 block of the same H x W lane grid.
    masks_half = shift_masks(H2, W2)

    # Pool selection: S[p, q] = 1 iff q=(i',j') with i'<H2, j'<W2 and p = (2i')*W + 2j'
    sel_pool = ((pi[None, :] < H2) & (pj[None, :] < W2)
                & (p[:, None] == (2 * pi[None, :]) * W + 2 * pj[None, :]))
    # Nearest-neighbour upsample: U[q, p] = 1 iff q = (i_p//2)*W + (j_p//2)
    sel_up = (p[:, None] == (pi[None, :] // 2) * W + pj[None, :] // 2)
    return (masks_full, masks_half,
            sel_pool.astype(jnp.bfloat16), sel_up.astype(jnp.bfloat16))


# ----------------------------------------------------------------------------
# Fused UNet kernel: one image (Cin, H*W) -> (Cout, H*W), everything in VMEM
# ----------------------------------------------------------------------------
def _unet_fused_kernel(x_ref, mf_ref, mh_ref, s_ref, u_ref,
                       e1w_ref, e1b_ref, e2w_ref, e2b_ref,
                       b1w_ref, b1b_ref, b2w_ref, b2b_ref,
                       d1we_ref, d1wu_ref, d1b_ref,
                       d2w_ref, d2b_ref, ow_ref, ob_ref,
                       o_ref, *, H, W):
    M = H * W

    x = x_ref[0]                 # (Cin, M) f32 -- one image per grid step
    mf = mf_ref[...]             # (9, M) f32: full-res 3x3 padding-validity masks
    mh = mh_ref[...]             # (9, M) f32: half-res masks (8x8 grid embedded in HxW)

    def conv3x3(pairs, b_ref, masks):
        # out = relu(sum_k sum_i W_i[k] @ shift_k(a_i) + b); shift_k = lane roll,
        # the mask zeroes out-of-image taps (implements padding=1, and the channel
        # concat of a UNet skip connection is realised by passing multiple pairs).
        acc = None
        for k in range(9):
            dh, dw = k // 3 - 1, k % 3 - 1
            d = dh * W + dw
            mrow = masks[k:k + 1]                               # (1, M)
            for a, w_ref in pairs:
                if d == 0:
                    xs = a                                      # centre tap: always valid
                else:
                    xs = pltpu.roll(a, shift=(-d) % M, axis=1) * mrow
                xs = xs.astype(jnp.bfloat16)
                c = jnp.dot(w_ref[k], xs, preferred_element_type=jnp.float32)
                acc = c if acc is None else acc + c
            # (loop order keeps all 9 taps of all inputs accumulated in f32)
        acc = acc + b_ref[...]                                  # (Cout, 1) broadcast, f32
        return jnp.maximum(acc, 0.0)                            # f32 epilogue (v5e-safe)

    # ---- encoder (H x W) ----
    e = conv3x3([(x, e1w_ref)], e1b_ref, mf)
    e = conv3x3([(e, e2w_ref)], e2b_ref, mf)

    # ---- 2x2 max-pool: pairwise maxima via lane rolls + 0/1 selection matmul ----
    hm = jnp.maximum(e, pltpu.roll(e, shift=M - 1, axis=1))     # max(x[p], x[p+1])
    vm = jnp.maximum(hm, pltpu.roll(hm, shift=M - W, axis=1))   # + rows p+W, p+W+1
    dn = jnp.dot(vm.astype(jnp.bfloat16), s_ref[...],
                 preferred_element_type=jnp.float32)            # (base, M), 8x8 embedded

    # ---- bottleneck (H/2 x W/2, embedded in the same H x W lane grid) ----
    b = conv3x3([(dn, b1w_ref)], b1b_ref, mh)
    b = conv3x3([(b, b2w_ref)], b2b_ref, mh)

    # ---- nearest-neighbour 2x upsample via 0/1 matmul ----
    # TODO(synk): assumes nn.Upsample(mode='nearest'); a ConvTranspose/bilinear unet differs.
    up = jnp.dot(b.astype(jnp.bfloat16), u_ref[...],
                 preferred_element_type=jnp.float32)            # (2*base, M)

    # ---- decoder: skip-concat realised by splitting dec1's weight over [e ; up] ----
    y = conv3x3([(e, d1we_ref), (up, d1wu_ref)], d1b_ref, mf)
    y = conv3x3([(y, d2w_ref)], d2b_ref, mf)

    # ---- final 1x1 conv fused as an epilogue (no ReLU) ----
    out = jnp.dot(ow_ref[...], y.astype(jnp.bfloat16),
                  preferred_element_type=jnp.float32) + ob_ref[...]
    o_ref[0] = out.astype(o_ref.dtype)


def _unet_pallas_call(x_flat, consts, kp, H, W):
    N, cin, M = x_flat.shape
    cout = kp["out_b"].shape[0]
    const_inputs = list(consts) + [
        kp["enc1_w"], kp["enc1_b"], kp["enc2_w"], kp["enc2_b"],
        kp["bot1_w"], kp["bot1_b"], kp["bot2_w"], kp["bot2_b"],
        kp["dec1_we"], kp["dec1_wu"], kp["dec1_b"],
        kp["dec2_w"], kp["dec2_b"], kp["out_w"], kp["out_b"],
    ]

    def const_spec(a):
        return pl.BlockSpec(a.shape, lambda n, _nd=a.ndim: (0,) * _nd)

    return pl.pallas_call(
        functools.partial(_unet_fused_kernel, H=H, W=W),
        out_shape=jax.ShapeDtypeStruct((N, cout, M), jnp.float32),
        grid_spec=pltpu.PrefetchScalarGridSpec(
            num_scalar_prefetch=0,
            grid=(N,),
            in_specs=[pl.BlockSpec((1, cin, M), lambda n: (n, 0, 0))]
                     + [const_spec(a) for a in const_inputs],
            out_specs=pl.BlockSpec((1, cout, M), lambda n: (n, 0, 0)),
        ),
        compiler_params=pltpu.CompilerParams(
            dimension_semantics=("parallel",)),   # v7x: one image per TensorCore
    )(x_flat, *const_inputs)


# ----------------------------------------------------------------------------
# Parameters (deterministic synthetic init, PyTorch OIHW layout)
# ----------------------------------------------------------------------------
def init_unet_params(key, cin=4, base=16, cout=4):
    """Synthetic UNet weights in PyTorch OIHW layout (Cout, Cin, kh, kw)."""
    def conv(k, co, ci, ksz=3):
        kw_, kb_ = jax.random.split(k)
        bound = 1.0 / jnp.sqrt(jnp.asarray(ksz * ksz * ci, jnp.float32))
        w = jax.random.uniform(kw_, (co, ci, ksz, ksz), jnp.float32, -bound, bound)
        b = jax.random.uniform(kb_, (co,), jnp.float32, -bound, bound)
        return w, b

    ks = jax.random.split(key, 7)
    p = {}
    p["enc1_w"], p["enc1_b"] = conv(ks[0], base, cin)
    p["enc2_w"], p["enc2_b"] = conv(ks[1], base, base)
    p["bot1_w"], p["bot1_b"] = conv(ks[2], 2 * base, base)
    p["bot2_w"], p["bot2_b"] = conv(ks[3], 2 * base, 2 * base)
    p["dec1_w"], p["dec1_b"] = conv(ks[4], base, 3 * base)   # cin = concat([e, up])
    p["dec2_w"], p["dec2_b"] = conv(ks[5], base, base)
    p["out_w"], p["out_b"] = conv(ks[6], cout, base, ksz=1)
    return p


def _prepare_kernel_params(p):
    """PyTorch OIHW -> kernel layout: weights (9, Cout, Cin) bf16, biases (Cout, 1) f32."""
    def w9(w):
        co, ci, kh, kw = w.shape
        return jnp.transpose(w, (2, 3, 0, 1)).reshape(kh * kw, co, ci).astype(jnp.bfloat16)

    def b2(b):
        return b.reshape(-1, 1).astype(jnp.float32)

    base = p["enc1_b"].shape[0]
    dec1 = p["dec1_w"]   # (base, 3*base, 3, 3); input channels = [e (base) ; up (2*base)]
    return {
        "enc1_w": w9(p["enc1_w"]), "enc1_b": b2(p["enc1_b"]),
        "enc2_w": w9(p["enc2_w"]), "enc2_b": b2(p["enc2_b"]),
        "bot1_w": w9(p["bot1_w"]), "bot1_b": b2(p["bot1_b"]),
        "bot2_w": w9(p["bot2_w"]), "bot2_b": b2(p["bot2_b"]),
        "dec1_we": w9(dec1[:, :base]), "dec1_wu": w9(dec1[:, base:]),
        "dec1_b": b2(p["dec1_b"]),
        "dec2_w": w9(p["dec2_w"]), "dec2_b": b2(p["dec2_b"]),
        "out_w": p["out_w"][:, :, 0, 0].astype(jnp.bfloat16),
        "out_b": b2(p["out_b"]),
    }


# ----------------------------------------------------------------------------
# CombinedModel_orig.forward: recon = unet(x) under no_grad
# ----------------------------------------------------------------------------
def combined_model_forward(params, x_nchw):
    # torch.no_grad() == inference only; stop_gradient keeps the semantics explicit.
    x_nchw = jax.lax.stop_gradient(x_nchw)
    N, cin, H, W = x_nchw.shape
    consts = _build_constants(H, W)
    kp = _prepare_kernel_params(params)
    out_flat = _unet_pallas_call(x_nchw.reshape(N, cin, H * W), consts, kp, H, W)
    cout = out_flat.shape[1]
    return out_flat.reshape(N, cout, H, W)       # internal layout is flat NCHW: no transposes


if __name__ == "__main__":
    key = jax.random.PRNGKey(0)
    k_x, k_p = jax.random.split(key)

    # Small shapes consistent with the module: batch=2, channels=4, spatial=16.
    x = jax.random.normal(k_x, (2, 4, 16, 16), jnp.float32)   # NCHW
    params = init_unet_params(k_p, cin=4, base=16, cout=4)

    fwd = jax.jit(combined_model_forward)
    out = fwd(params, x)
    jax.block_until_ready(out)

    assert out.shape == (2, 4, 16, 16), out.shape
    assert bool(jnp.all(jnp.isfinite(out)))
    print("KERNEL_OK")
</pallas_src>

<mosaic_0001>
module attributes {stable_mosaic.version = 11 : i64} {
  func.func @_unet_fused_kernel(%arg0: i32, %arg1: memref<1x4x256xf32, #tpu.memory_space<vmem>>, %arg2: memref<9x256xf32, #tpu.memory_space<vmem>>, %arg3: memref<9x256xf32, #tpu.memory_space<vmem>>, %arg4: memref<256x256xbf16, #tpu.memory_space<vmem>>, %arg5: memref<256x256xbf16, #tpu.memory_space<vmem>>, %arg6: memref<9x16x4xbf16, #tpu.memory_space<vmem>>, %arg7: memref<16x1xf32, #tpu.memory_space<vmem>>, %arg8: memref<9x16x16xbf16, #tpu.memory_space<vmem>>, %arg9: memref<16x1xf32, #tpu.memory_space<vmem>>, %arg10: memref<9x32x16xbf16, #tpu.memory_space<vmem>>, %arg11: memref<32x1xf32, #tpu.memory_space<vmem>>, %arg12: memref<9x32x32xbf16, #tpu.memory_space<vmem>>, %arg13: memref<32x1xf32, #tpu.memory_space<vmem>>, %arg14: memref<9x16x16xbf16, #tpu.memory_space<vmem>>, %arg15: memref<9x16x32xbf16, #tpu.memory_space<vmem>>, %arg16: memref<16x1xf32, #tpu.memory_space<vmem>>, %arg17: memref<9x16x16xbf16, #tpu.memory_space<vmem>>, %arg18: memref<16x1xf32, #tpu.memory_space<vmem>>, %arg19: memref<4x16xbf16, #tpu.memory_space<vmem>>, %arg20: memref<4x1xf32, #tpu.memory_space<vmem>>, %arg21: memref<1x4x256xf32, #tpu.memory_space<vmem>>) attributes {dimension_semantics = [#tpu.dimension_semantics<parallel>], iteration_bounds = array<i64: 2>, scalar_prefetch = 0 : i64, scratch_operands = 0 : i64, tpu.core_type = #tpu.core_type<tc>, window_params = [{transform_indices = @transform_0, window_bounds = array<i64: 1, 4, 256>}, {pipeline_mode = #tpu.pipeline_mode<synchronous>, transform_indices = @transform_1, window_bounds = array<i64: 9, 256>}, {pipeline_mode = #tpu.pipeline_mode<synchronous>, transform_indices = @transform_2, window_bounds = array<i64: 9, 256>}, {pipeline_mode = #tpu.pipeline_mode<synchronous>, transform_indices = @transform_3, window_bounds = array<i64: 256, 256>}, {pipeline_mode = #tpu.pipeline_mode<synchronous>, transform_indices = @transform_4, window_bounds = array<i64: 256, 256>}, {pipeline_mode = #tpu.pipeline_mode<synchronous>, transform_indices = @transform_5, window_bounds = array<i64: 9, 16, 4>}, {pipeline_mode = #tpu.pipeline_mode<synchronous>, transform_indices = @transform_6, window_bounds = array<i64: 16, 1>}, {pipeline_mode = #tpu.pipeline_mode<synchronous>, transform_indices = @transform_7, window_bounds = array<i64: 9, 16, 16>}, {pipeline_mode = #tpu.pipeline_mode<synchronous>, transform_indices = @transform_8, window_bounds = array<i64: 16, 1>}, {pipeline_mode = #tpu.pipeline_mode<synchronous>, transform_indices = @transform_9, window_bounds = array<i64: 9, 32, 16>}, {pipeline_mode = #tpu.pipeline_mode<synchronous>, transform_indices = @transform_10, window_bounds = array<i64: 32, 1>}, {pipeline_mode = #tpu.pipeline_mode<synchronous>, transform_indices = @transform_11, window_bounds = array<i64: 9, 32, 32>}, {pipeline_mode = #tpu.pipeline_mode<synchronous>, transform_indices = @transform_12, window_bounds = array<i64: 32, 1>}, {pipeline_mode = #tpu.pipeline_mode<synchronous>, transform_indices = @transform_13, window_bounds = array<i64: 9, 16, 16>}, {pipeline_mode = #tpu.pipeline_mode<synchronous>, transform_indices = @transform_14, window_bounds = array<i64: 9, 16, 32>}, {pipeline_mode = #tpu.pipeline_mode<synchronous>, transform_indices = @transform_15, window_bounds = array<i64: 16, 1>}, {pipeline_mode = #tpu.pipeline_mode<synchronous>, transform_indices = @transform_16, window_bounds = array<i64: 9, 16, 16>}, {pipeline_mode = #tpu.pipeline_mode<synchronous>, transform_indices = @transform_17, window_bounds = array<i64: 16, 1>}, {pipeline_mode = #tpu.pipeline_mode<synchronous>, transform_indices = @transform_18, window_bounds = array<i64: 4, 16>}, {pipeline_mode = #tpu.pipeline_mode<synchronous>, transform_indices = @transform_19, window_bounds = array<i64: 4, 1>}, {transform_indices = @transform_20, window_bounds = array<i64: 1, 4, 256>}]} {
    %c0 = arith.constant 0 : index
    %c0_0 = arith.constant 0 : index
    %c0_1 = arith.constant 0 : index
    %0 = vector.load %arg1[%c0, %c0_0, %c0_1] : memref<1x4x256xf32, #tpu.memory_space<vmem>>, vector<1x4x256xf32>
    %1 = vector.shape_cast %0 : vector<1x4x256xf32> to vector<4x256xf32>
    %c0_2 = arith.constant 0 : index
    %c0_3 = arith.constant 0 : index
    %2 = vector.load %arg2[%c0_2, %c0_3] : memref<9x256xf32, #tpu.memory_space<vmem>>, vector<9x256xf32>
    %c0_4 = arith.constant 0 : index
    %c0_5 = arith.constant 0 : index
    %3 = vector.load %arg3[%c0_4, %c0_5] : memref<9x256xf32, #tpu.memory_space<vmem>>, vector<9x256xf32>
    %4 = vector.extract_strided_slice %2 {offsets = [0, 0], sizes = [1, 256], strides = [1, 1]} : vector<9x256xf32> to vector<1x256xf32>
    %c17_i32 = arith.constant 17 : i32
    %5 = tpu.dynamic_rotate %1 by %c17_i32 dim 1 : vector<4x256xf32>, i32 -> vector<4x256xf32>
    %6 = vector.broadcast %4 : vector<1x256xf32> to vector<4x256xf32>
    %7 = arith.mulf %5, %6 : vector<4x256xf32>
    %8 = arith.truncf %7 : vector<4x256xf32> to vector<4x256xbf16>
    %c0_6 = arith.constant 0 : index
    %c0_7 = arith.constant 0 : index
    %c0_8 = arith.constant 0 : index
    %9 = vector.load %arg6[%c0_6, %c0_7, %c0_8] : memref<9x16x4xbf16, #tpu.memory_space<vmem>>, vector<1x16x4xbf16>
    %10 = vector.shape_cast %9 : vector<1x16x4xbf16> to vector<16x4xbf16>
    %cst = arith.constant dense<0.000000e+00> : vector<16x256xf32>
    %11 = tpu.matmul %10, %8, %cst {dimension_numbers = #tpu.dot_dimension_numbers<[1], [0], [0], [1], [0, 0, 1, 1], [], []>} : vector<16x4xbf16>, vector<4x256xbf16>, vector<16x256xf32> -> vector<16x256xf32>
    %12 = vector.extract_strided_slice %2 {offsets = [1, 0], sizes = [1, 256], strides = [1, 1]} : vector<9x256xf32> to vector<1x256xf32>
    %c16_i32 = arith.constant 16 : i32
    %13 = tpu.dynamic_rotate %1 by %c16_i32 dim 1 : vector<4x256xf32>, i32 -> vector<4x256xf32>
    %14 = vector.broadcast %12 : vector<1x256xf32> to vector<4x256xf32>
    %15 = arith.mulf %13, %14 : vector<4x256xf32>
    %16 = arith.truncf %15 : vector<4x256xf32> to vector<4x256xbf16>
    %c1 = arith.constant 1 : index
    %c0_9 = arith.constant 0 : index
    %c0_10 = arith.constant 0 : index
    %17 = vector.load %arg6[%c1, %c0_9, %c0_10] : memref<9x16x4xbf16, #tpu.memory_space<vmem>>, vector<1x16x4xbf16>
    %18 = vector.shape_cast %17 : vector<1x16x4xbf16> to vector<16x4xbf16>
    %cst_11 = arith.constant dense<0.000000e+00> : vector<16x256xf32>
    %19 = tpu.matmul %18, %16, %cst_11 {dimension_numbers = #tpu.dot_dimension_numbers<[1], [0], [0], [1], [0, 0, 1, 1], [], []>} : vector<16x4xbf16>, vector<4x256xbf16>, vector<16x256xf32> -> vector<16x256xf32>
    %20 = arith.addf %11, %19 : vector<16x256xf32>
    %21 = vector.extract_strided_slice %2 {offsets = [2, 0], sizes = [1, 256], strides = [1, 1]} : vector<9x256xf32> to vector<1x256xf32>
    %c15_i32 = arith.constant 15 : i32
    %22 = tpu.dynamic_rotate %1 by %c15_i32 dim 1 : vector<4x256xf32>, i32 -> vector<4x256xf32>
    %23 = vector.broadcast %21 : vector<1x256xf32> to vector<4x256xf32>
    %24 = arith.mulf %22, %23 : vector<4x256xf32>
    %25 = arith.truncf %24 : vector<4x256xf32> to vector<4x256xbf16>
    %c2 = arith.constant 2 : index
    %c0_12 = arith.constant 0 : index
    %c0_13 = arith.constant 0 : index
    %26 = vector.load %arg6[%c2, %c0_12, %c0_13] : memref<9x16x4xbf16, #tpu.memory_space<vmem>>, vector<1x16x4xbf16>
    %27 = vector.shape_cast %26 : vector<1x16x4xbf16> to vector<16x4xbf16>
    %cst_14 = arith.constant dense<0.000000e+00> : vector<16x256xf32>
    %28 = tpu.matmul %27, %25, %cst_14 {dimension_numbers = #tpu.dot_dimension_numbers<[1], [0], [0], [1], [0, 0, 1, 1], [], []>} : vector<16x4xbf16>, vector<4x256xbf16>, vector<16x256xf32> -> vector<16x256xf32>
    %29 = arith.addf %20, %28 : vector<16x256xf32>
    %30 = vector.extract_strided_slice %2 {offsets = [3, 0], sizes = [1, 256], strides = [1, 1]} : vector<9x256xf32> to vector<1x256xf32>
    %c1_i32 = arith.constant 1 : i32
    %31 = tpu.dynamic_rotate %1 by %c1_i32 dim 1 : vector<4x256xf32>, i32 -> vector<4x256xf32>
    %32 = vector.broadcast %30 : vector<1x256xf32> to vector<4x256xf32>
    %33 = arith.mulf %31, %32 : vector<4x256xf32>
    %34 = arith.truncf %33 : vector<4x256xf32> to vector<4x256xbf16>
    %c3 = arith.constant 3 : index
    %c0_15 = arith.constant 0 : index
    %c0_16 = arith.constant 0 : index
    %35 = vector.load %arg6[%c3, %c0_15, %c0_16] : memref<9x16x4xbf16, #tpu.memory_space<vmem>>, vector<1x16x4xbf16>
    %36 = vector.shape_cast %35 : vector<1x16x4xbf16> to vector<16x4xbf16>
    %cst_17 = arith.constant dense<0.000000e+00> : vector<16x256xf32>
    %37 = tpu.matmul %36, %34, %cst_17 {dimension_numbers = #tpu.dot_dimension_numbers<[1], [0], [0], [1], [0, 0, 1, 1], [], []>} : vector<16x4xbf16>, vector<4x256xbf16>, vector<16x256xf32> -> vector<16x256xf32>
    %38 = arith.addf %29, %37 : vector<16x256xf32>
    %39 = arith.truncf %1 : vector<4x256xf32> to vector<4x256xbf16>
    %c4 = arith.constant 4 : index
    %c0_18 = arith.constant 0 : index
    %c0_19 = arith.constant 0 : index
    %40 = vector.load %arg6[%c4, %c0_18, %c0_19] : memref<9x16x4xbf16, #tpu.memory_space<vmem>>, vector<1x16x4xbf16>
    %41 = vector.shape_cast %40 : vector<1x16x4xbf16> to vector<16x4xbf16>
    %cst_20 = arith.constant dense<0.000000e+00> : vector<16x256xf32>
    %42 = tpu.matmul %41, %39, %cst_20 {dimension_numbers = #tpu.dot_dimension_numbers<[1], [0], [0], [1], [0, 0, 1, 1], [], []>} : vector<16x4xbf16>, vector<4x256xbf16>, vector<16x256xf32> -> vector<16x256xf32>
    %43 = arith.addf %38, %42 : vector<16x256xf32>
    %44 = vector.extract_strided_slice %2 {offsets = [5, 0], sizes = [1, 256], strides = [1, 1]} : vector<9x256xf32> to vector<1x256xf32>
    %c255_i32 = arith.constant 255 : i32
    %45 = tpu.dynamic_rotate %1 by %c255_i32 dim 1 : vector<4x256xf32>, i32 -> vector<4x256xf32>
    %46 = vector.broadcast %44 : vector<1x256xf32> to vector<4x256xf32>
    %47 = arith.mulf %45, %46 : vector<4x256xf32>
    %48 = arith.truncf %47 : vector<4x256xf32> to vector<4x256xbf16>
    %c5 = arith.constant 5 : index
    %c0_21 = arith.constant 0 : index
    %c0_22 = arith.constant 0 : index
    %49 = vector.load %arg6[%c5, %c0_21, %c0_22] : memref<9x16x4xbf16, #tpu.memory_space<vmem>>, vector<1x16x4xbf16>
    %50 = vector.shape_cast %49 : vector<1x16x4xbf16> to vector<16x4xbf16>
    %cst_23 = arith.constant dense<0.000000e+00> : vector<16x256xf32>
    %51 = tpu.matmul %50, %48, %cst_23 {dimension_numbers = #tpu.dot_dimension_numbers<[1], [0], [0], [1], [0, 0, 1, 1], [], []>} : vector<16x4xbf16>, vector<4x256xbf16>, vector<16x256xf32> -> vector<16x256xf32>
    %52 = arith.addf %43, %51 : vector<16x256xf32>
    %53 = vector.extract_strided_slice %2 {offsets = [6, 0], sizes = [1, 256], strides = [1, 1]} : vector<9x256xf32> to vector<1x256xf32>
    %c241_i32 = arith.constant 241 : i32
    %54 = tpu.dynamic_rotate %1 by %c241_i32 dim 1 : vector<4x256xf32>, i32 -> vector<4x256xf32>
    %55 = vector.broadcast %53 : vector<1x256xf32> to vector<4x256xf32>
    %56 = arith.mulf %54, %55 : vector<4x256xf32>
    %57 = arith.truncf %56 : vector<4x256xf32> to vector<4x256xbf16>
    %c6 = arith.constant 6 : index
    %c0_24 = arith.constant 0 : index
    %c0_25 = arith.constant 0 : index
    %58 = vector.load %arg6[%c6, %c0_24, %c0_25] : memref<9x16x4xbf16, #tpu.memory_space<vmem>>, vector<1x16x4xbf16>
    %59 = vector.shape_cast %58 : vector<1x16x4xbf16> to vector<16x4xbf16>
    %cst_26 = arith.constant dense<0.000000e+00> : vector<16x256xf32>
    %60 = tpu.matmul %59, %57, %cst_26 {dimension_numbers = #tpu.dot_dimension_numbers<[1], [0], [0], [1], [0, 0, 1, 1], [], []>} : vector<16x4xbf16>, vector<4x256xbf16>, vector<16x256xf32> -> vector<16x256xf32>
    %61 = arith.addf %52, %60 : vector<16x256xf32>
    %62 = vector.extract_strided_slice %2 {offsets = [7, 0], sizes = [1, 256], strides = [1, 1]} : vector<9x256xf32> to vector<1x256xf32>
    %c240_i32 = arith.constant 240 : i32
    %63 = tpu.dynamic_rotate %1 by %c240_i32 dim 1 : vector<4x256xf32>, i32 -> vector<4x256xf32>
    %64 = vector.broadcast %62 : vector<1x256xf32> to vector<4x256xf32>
    %65 = arith.mulf %63, %64 : vector<4x256xf32>
    %66 = arith.truncf %65 : vector<4x256xf32> to vector<4x256xbf16>
    %c7 = arith.constant 7 : index
    %c0_27 = arith.constant 0 : index
    %c0_28 = arith.constant 0 : index
    %67 = vector.load %arg6[%c7, %c0_27, %c0_28] : memref<9x16x4xbf16, #tpu.memory_space<vmem>>, vector<1x16x4xbf16>
    %68 = vector.shape_cast %67 : vector<1x16x4xbf16> to vector<16x4xbf16>
    %cst_29 = arith.constant dense<0.000000e+00> : vector<16x256xf32>
    %69 = tpu.matmul %68, %66, %cst_29 {dimension_numbers = #tpu.dot_dimension_numbers<[1], [0], [0], [1], [0, 0, 1, 1], [], []>} : vector<16x4xbf16>, vector<4x256xbf16>, vector<16x256xf32> -> vector<16x256xf32>
    %70 = arith.addf %61, %69 : vector<16x256xf32>
    %71 = vector.extract_strided_slice %2 {offsets = [8, 0], sizes = [1, 256], strides = [1, 1]} : vector<9x256xf32> to vector<1x256xf32>
    %c239_i32 = arith.constant 239 : i32
    %72 = tpu.dynamic_rotate %1 by %c239_i32 dim 1 : vector<4x256xf32>, i32 -> vector<4x256xf32>
    %73 = vector.broadcast %71 : vector<1x256xf32> to vector<4x256xf32>
    %74 = arith.mulf %72, %73 : vector<4x256xf32>
    %75 = arith.truncf %74 : vector<4x256xf32> to vector<4x256xbf16>
    %c8 = arith.constant 8 : index
    %c0_30 = arith.constant 0 : index
    %c0_31 = arith.constant 0 : index
    %76 = vector.load %arg6[%c8, %c0_30, %c0_31] : memref<9x16x4xbf16, #tpu.memory_space<vmem>>, vector<1x16x4xbf16>
    %77 = vector.shape_cast %76 : vector<1x16x4xbf16> to vector<16x4xbf16>
    %cst_32 = arith.constant dense<0.000000e+00> : vector<16x256xf32>
    %78 = tpu.matmul %77, %75, %cst_32 {dimension_numbers = #tpu.dot_dimension_numbers<[1], [0], [0], [1], [0, 0, 1, 1], [], []>} : vector<16x4xbf16>, vector<4x256xbf16>, vector<16x256xf32> -> vector<16x256xf32>
    %79 = arith.addf %70, %78 : vector<16x256xf32>
    %c0_33 = arith.constant 0 : index
    %c0_34 = arith.constant 0 : index
    %80 = vector.load %arg7[%c0_33, %c0_34] : memref<16x1xf32, #tpu.memory_space<vmem>>, vector<16x1xf32>
    %81 = vector.broadcast %80 : vector<16x1xf32> to vector<16x256xf32>
    %82 = arith.addf %79, %81 : vector<16x256xf32>
    %cst_35 = arith.constant 0.000000e+00 : f32
    %83 = vector.broadcast %cst_35 : f32 to vector<16x256xf32>
    %84 = arith.maximumf %82, %83 : vector<16x256xf32>
    %85 = vector.extract_strided_slice %2 {offsets = [0, 0], sizes = [1, 256], strides = [1, 1]} : vector<9x256xf32> to vector<1x256xf32>
    %c17_i32_36 = arith.constant 17 : i32
    %86 = tpu.dynamic_rotate %84 by %c17_i32_36 dim 1 : vector<16x256xf32>, i32 -> vector<16x256xf32>
    %87 = vector.broadcast %85 : vector<1x256xf32> to vector<16x256xf32>
    %88 = arith.mulf %86, %87 : vector<16x256xf32>
    %89 = arith.truncf %88 : vector<16x256xf32> to vector<16x256xbf16>
    %c0_37 = arith.constant 0 : index
    %c0_38 = arith.constant 0 : index
    %c0_39 = arith.constant 0 : index
    %90 = vector.load %arg8[%c0_37, %c0_38, %c0_39] : memref<9x16x16xbf16, #tpu.memory_space<vmem>>, vector<1x16x16xbf16>
    %91 = vector.shape_cast %90 : vector<1x16x16xbf16> to vector<16x16xbf16>
    %cst_40 = arith.constant dense<0.000000e+00> : vector<16x256xf32>
    %92 = tpu.matmul %91, %89, %cst_40 {dimension_numbers = #tpu.dot_dimension_numbers<[1], [0], [0], [1], [0, 0, 1, 1], [], []>} : vector<16x16xbf16>, vector<16x256xbf16>, vector<16x256xf32> -> vector<16x256xf32>
    %93 = vector.extract_strided_slice %2 {offsets = [1, 0], sizes = [1, 256], strides = [1, 1]} : vector<9x256xf32> to vector<1x256xf32>
    %c16_i32_41 = arith.constant 16 : i32
    %94 = tpu.dynamic_rotate %84 by %c16_i32_41 dim 1 : vector<16x256xf32>, i32 -> vector<16x256xf32>
    %95 = vector.broadcast %93 : vector<1x256xf32> to vector<16x256xf32>
    %96 = arith.mulf %94, %95 : vector<16x256xf32>
    %97 = arith.truncf %96 : vector<16x256xf32> to vector<16x256xbf16>
    %c1_42 = arith.constant 1 : index
    %c0_43 = arith.constant 0 : index
    %c0_44 = arith.constant 0 : index
    %98 = vector.load %arg8[%c1_42, %c0_43, %c0_44] : memref<9x16x16xbf16, #tpu.memory_space<vmem>>, vector<1x16x16xbf16>
    %99 = vector.shape_cast %98 : vector<1x16x16xbf16> to vector<16x16xbf16>
    %cst_45 = arith.constant dense<0.000000e+00> : vector<16x256xf32>
    %100 = tpu.matmul %99, %97, %cst_45 {dimension_numbers = #tpu.dot_dimension_numbers<[1], [0], [0], [1], [0, 0, 1, 1], [], []>} : vector<16x16xbf16>, vector<16x256xbf16>, vector<16x256xf32> -> vector<16x256xf32>
    %101 = arith.addf %92, %100 : vector<16x256xf32>
    %102 = vector.extract_strided_slice %2 {offsets = [2, 0], sizes = [1, 256], strides = [1, 1]} : vector<9x256xf32> to vector<1x256xf32>
    %c15_i32_46 = arith.constant 15 : i32
    %103 = tpu.dynamic_rotate %84 by %c15_i32_46 dim 1 : vector<16x256xf32>, i32 -> vector<16x256xf32>
    %104 = vector.broadcast %102 : vector<1x256xf32> to vector<16x256xf32>
    %105 = arith.mulf %103, %104 : vector<16x256xf32>
    %106 = arith.truncf %105 : vector<16x256xf32> to vector<16x256xbf16>
    %c2_47 = arith.constant 2 : index
    %c0_48 = arith.constant 0 : index
    %c0_49 = arith.constant 0 : index
    %107 = vector.load %arg8[%c2_47, %c0_48, %c0_49] : memref<9x16x16xbf16, #tpu.memory_space<vmem>>, vector<1x16x16xbf16>
    %108 = vector.shape_cast %107 : vector<1x16x16xbf16> to vector<16x16xbf16>
    %cst_50 = arith.constant dense<0.000000e+00> : vector<16x256xf32>
    %109 = tpu.matmul %108, %106, %cst_50 {dimension_numbers = #tpu.dot_dimension_numbers<[1], [0], [0], [1], [0, 0, 1, 1], [], []>} : vector<16x16xbf16>, vector<16x256xbf16>, vector<16x256xf32> -> vector<16x256xf32>
    %110 = arith.addf %101, %109 : vector<16x256xf32>
    %111 = vector.extract_strided_slice %2 {offsets = [3, 0], sizes = [1, 256], strides = [1, 1]} : vector<9x256xf32> to vector<1x256xf32>
    %c1_i32_51 = arith.constant 1 : i32
    %112 = tpu.dynamic_rotate %84 by %c1_i32_51 dim 1 : vector<16x256xf32>, i32 -> vector<16x256xf32>
    %113 = vector.broadcast %111 : vector<1x256xf32> to vector<16x256xf32>
    %114 = arith.mulf %112, %113 : vector<16x256xf32>
    %115 = arith.truncf %114 : vector<16x256xf32> to vector<16x256xbf16>
    %c3_52 = arith.constant 3 : index
    %c0_53 = arith.constant 0 : index
    %c0_54 = arith.constant 0 : index
    %116 = vector.load %arg8[%c3_52, %c0_53, %c0_54] : memref<9x16x16xbf16, #tpu.memory_space<vmem>>, vector<1x16x16xbf16>
    %117 = vector.shape_cast %116 : vector<1x16x16xbf16> to vector<16x16xbf16>
    %cst_55 = arith.constant dense<0.000000e+00> : vector<16x256xf32>
    %118 = tpu.matmul %117, %115, %cst_55 {dimension_numbers = #tpu.dot_dimension_numbers<[1], [0], [0], [1], [0, 0, 1, 1], [], []>} : vector<16x16xbf16>, vector<16x256xbf16>, vector<16x256xf32> -> vector<16x256xf32>
    %119 = arith.addf %110, %118 : vector<16x256xf32>
    %120 = arith.truncf %84 : vector<16x256xf32> to vector<16x256xbf16>
    %c4_56 = arith.constant 4 : index
    %c0_57 = arith.constant 0 : index
    %c0_58 = arith.constant 0 : index
    %121 = vector.load %arg8[%c4_56, %c0_57, %c0_58] : memref<9x16x16xbf16, #tpu.memory_space<vmem>>, vector<1x16x16xbf16>
    %122 = vector.shape_cast %121 : vector<1x16x16xbf16> to vector<16x16xbf16>
    %cst_59 = arith.constant dense<0.000000e+00> : vector<16x256xf32>
    %123 = tpu.matmul %122, %120, %cst_59 {dimension_numbers = #tpu.dot_dimension_numbers<[1], [0], [0], [1], [0, 0, 1, 1], [], []>} : vector<16x16xbf16>, vector<16x256xbf16>, vector<16x256xf32> -> vector<16x256xf32>
    %124 = arith.addf %119, %123 : vector<16x256xf32>
    %125 = vector.extract_strided_slice %2 {offsets = [5, 0], sizes = [1, 256], strides = [1, 1]} : vector<9x256xf32> to vector<1x256xf32>
    %c255_i32_60 = arith.constant 255 : i32
    %126 = tpu.dynamic_rotate %84 by %c255_i32_60 dim 1 : vector<16x256xf32>, i32 -> vector<16x256xf32>
    %127 = vector.broadcast %125 : vector<1x256xf32> to vector<16x256xf32>
    %128 = arith.mulf %126, %127 : vector<16x256xf32>
    %129 = arith.truncf %128 : vector<16x256xf32> to vector<16x256xbf16>
    %c5_61 = arith.constant 5 : index
    %c0_62 = arith.constant 0 : index
    %c0_63 = arith.constant 0 : index
    %130 = vector.load %arg8[%c5_61, %c0_62, %c0_63] : memref<9x16x16xbf16, #tpu.memory_space<vmem>>, vector<1x16x16xbf16>
    %131 = vector.shape_cast %130 : vector<1x16x16xbf16> to vector<16x16xbf16>
    %cst_64 = arith.constant dense<0.000000e+00> : vector<16x256xf32>
    %132 = tpu.matmul %131, %129, %cst_64 {dimension_numbers = #tpu.dot_dimension_numbers<[1], [0], [0], [1], [0, 0, 1, 1], [], []>} : vector<16x16xbf16>, vector<16x256xbf16>, vector<16x256xf32> -> vector<16x256xf32>
    %133 = arith.addf %124, %132 : vector<16x256xf32>
    %134 = vector.extract_strided_slice %2 {offsets = [6, 0], sizes = [1, 256], strides = [1, 1]} : vector<9x256xf32> to vector<1x256xf32>
    %c241_i32_65 = arith.constant 241 : i32
    %135 = tpu.dynamic_rotate %84 by %c241_i32_65 dim 1 : vector<16x256xf32>, i32 -> vector<16x256xf32>
    %136 = vector.broadcast %134 : vector<1x256xf32> to vector<16x256xf32>
    %137 = arith.mulf %135, %136 : vector<16x256xf32>
    %138 = arith.truncf %137 : vector<16x256xf32> to vector<16x256xbf16>
    %c6_66 = arith.constant 6 : index
    %c0_67 = arith.constant 0 : index
    %c0_68 = arith.constant 0 : index
    %139 = vector.load %arg8[%c6_66, %c0_67, %c0_68] : memref<9x16x16xbf16, #tpu.memory_space<vmem>>, vector<1x16x16xbf16>
    %140 = vector.shape_cast %139 : vector<1x16x16xbf16> to vector<16x16xbf16>
    %cst_69 = arith.constant dense<0.000000e+00> : vector<16x256xf32>
    %141 = tpu.matmul %140, %138, %cst_69 {dimension_numbers = #tpu.dot_dimension_numbers<[1], [0], [0], [1], [0, 0, 1, 1], [], []>} : vector<16x16xbf16>, vector<16x256xbf16>, vector<16x256xf32> -> vector<16x256xf32>
    %142 = arith.addf %133, %141 : vector<16x256xf32>
    %143 = vector.extract_strided_slice %2 {offsets = [7, 0], sizes = [1, 256], strides = [1, 1]} : vector<9x256xf32> to vector<1x256xf32>
    %c240_i32_70 = arith.constant 240 : i32
    %144 = tpu.dynamic_rotate %84 by %c240_i32_70 dim 1 : vector<16x256xf32>, i32 -> vector<16x256xf32>
    %145 = vector.broadcast %143 : vector<1x256xf32> to vector<16x256xf32>
    %146 = arith.mulf %144, %145 : vector<16x256xf32>
    %147 = arith.truncf %146 : vector<16x256xf32> to vector<16x256xbf16>
    %c7_71 = arith.constant 7 : index
    %c0_72 = arith.constant 0 : index
    %c0_73 = arith.constant 0 : index
    %148 = vector.load %arg8[%c7_71, %c0_72, %c0_73] : memref<9x16x16xbf16, #tpu.memory_space<vmem>>, vector<1x16x16xbf16>
    %149 = vector.shape_cast %148 : vector<1x16x16xbf16> to vector<16x16xbf16>
    %cst_74 = arith.constant dense<0.000000e+00> : vector<16x256xf32>
    %150 = tpu.matmul %149, %147, %cst_74 {dimension_numbers = #tpu.dot_dimension_numbers<[1], [0], [0], [1], [0, 0, 1, 1], [], []>} : vector<16x16xbf16>, vector<16x256xbf16>, vector<16x256xf32> -> vector<16x256xf32>
    %151 = arith.addf %142, %150 : vector<16x256xf32>
    %152 = vector.extract_strided_slice %2 {offsets = [8, 0], sizes = [1, 256], strides = [1, 1]} : vector<9x256xf32> to vector<1x256xf32>
    %c239_i32_75 = arith.constant 239 : i32
    %153 = tpu.dynamic_rotate %84 by %c239_i32_75 dim 1 : vector<16x256xf32>, i32 -> vector<16x256xf32>
    %154 = vector.broadcast %152 : vector<1x256xf32> to vector<16x256xf32>
    %155 = arith.mulf %153, %154 : vector<16x256xf32>
    %156 = arith.truncf %155 : vector<16x256xf32> to vector<16x256xbf16>
    %c8_76 = arith.constant 8 : index
    %c0_77 = arith.constant 0 : index
    %c0_78 = arith.constant 0 : index
    %157 = vector.load %arg8[%c8_76, %c0_77, %c0_78] : memref<9x16x16xbf16, #tpu.memory_space<vmem>>, vector<1x16x16xbf16>
    %158 = vector.shape_cast %157 : vector<1x16x16xbf16> to vector<16x16xbf16>
    %cst_79 = arith.constant dense<0.000000e+00> : vector<16x256xf32>
    %159 = tpu.matmul %158, %156, %cst_79 {dimension_numbers = #tpu.dot_dimension_numbers<[1], [0], [0], [1], [0, 0, 1, 1], [], []>} : vector<16x16xbf16>, vector<16x256xbf16>, vector<16x256xf32> -> vector<16x256xf32>
    %160 = arith.addf %151, %159 : vector<16x256xf32>
    %c0_80 = arith.constant 0 : index
    %c0_81 = arith.constant 0 : index
    %161 = vector.load %arg9[%c0_80, %c0_81] : memref<16x1xf32, #tpu.memory_space<vmem>>, vector<16x1xf32>
    %162 = vector.broadcast %161 : vector<16x1xf32> to vector<16x256xf32>
    %163 = arith.addf %160, %162 : vector<16x256xf32>
    %cst_82 = arith.constant 0.000000e+00 : f32
    %164 = vector.broadcast %cst_82 : f32 to vector<16x256xf32>
    %165 = arith.maximumf %163, %164 : vector<16x256xf32>
    %c255_i32_83 = arith.constant 255 : i32
    %166 = tpu.dynamic_rotate %165 by %c255_i32_83 dim 1 : vector<16x256xf32>, i32 -> vector<16x256xf32>
    %167 = arith.maximumf %165, %166 : vector<16x256xf32>
    %c240_i32_84 = arith.constant 240 : i32
    %168 = tpu.dynamic_rotate %167 by %c240_i32_84 dim 1 : vector<16x256xf32>, i32 -> vector<16x256xf32>
    %169 = arith.maximumf %167, %168 : vector<16x256xf32>
    %170 = arith.truncf %169 : vector<16x256xf32> to vector<16x256xbf16>
    %c0_85 = arith.constant 0 : index
    %c0_86 = arith.constant 0 : index
    %171 = vector.load %arg4[%c0_85, %c0_86] : memref<256x256xbf16, #tpu.memory_space<vmem>>, vector<256x256xbf16>
    %cst_87 = arith.constant dense<0.000000e+00> : vector<16x256xf32>
    %172 = tpu.matmul %170, %171, %cst_87 {dimension_numbers = #tpu.dot_dimension_numbers<[1], [0], [0], [1], [0, 0, 1, 1], [], []>} : vector<16x256xbf16>, vector<256x256xbf16>, vector<16x256xf32> -> vector<16x256xf32>
    %173 = vector.extract_strided_slice %3 {offsets = [0, 0], sizes = [1, 256], strides = [1, 1]} : vector<9x256xf32> to vector<1x256xf32>
    %c17_i32_88 = arith.constant 17 : i32
    %174 = tpu.dynamic_rotate %172 by %c17_i32_88 dim 1 : vector<16x256xf32>, i32 -> vector<16x256xf32>
    %175 = vector.broadcast %173 : vector<1x256xf32> to vector<16x256xf32>
    %176 = arith.mulf %174, %175 : vector<16x256xf32>
    %177 = arith.truncf %176 : vector<16x256xf32> to vector<16x256xbf16>
    %c0_89 = arith.constant 0 : index
    %c0_90 = arith.constant 0 : index
    %c0_91 = arith.constant 0 : index
    %178 = vector.load %arg10[%c0_89, %c0_90, %c0_91] : memref<9x32x16xbf16, #tpu.memory_space<vmem>>, vector<1x32x16xbf16>
    %179 = vector.shape_cast %178 : vector<1x32x16xbf16> to vector<32x16xbf16>
    %cst_92 = arith.constant dense<0.000000e+00> : vector<32x256xf32>
    %180 = tpu.matmul %179, %177, %cst_92 {dimension_numbers = #tpu.dot_dimension_numbers<[1], [0], [0], [1], [0, 0, 1, 1], [], []>} : vector<32x16xbf16>, vector<16x256xbf16>, vector<32x256xf32> -> vector<32x256xf32>
    %181 = vector.extract_strided_slice %3 {offsets = [1, 0], sizes = [1, 256], strides = [1, 1]} : vector<9x256xf32> to vector<1x256xf32>
    %c16_i32_93 = arith.constant 16 : i32
    %182 = tpu.dynamic_rotate %172 by %c16_i32_93 dim 1 : vector<16x256xf32>, i32 -> vector<16x256xf32>
    %183 = vector.broadcast %181 : vector<1x256xf32> to vector<16x256xf32>
    %184 = arith.mulf %182, %183 : vector<16x256xf32>
    %185 = arith.truncf %184 : vector<16x256xf32> to vector<16x256xbf16>
    %c1_94 = arith.constant 1 : index
    %c0_95 = arith.constant 0 : index
    %c0_96 = arith.constant 0 : index
    %186 = vector.load %arg10[%c1_94, %c0_95, %c0_96] : memref<9x32x16xbf16, #tpu.memory_space<vmem>>, vector<1x32x16xbf16>
    %187 = vector.shape_cast %186 : vector<1x32x16xbf16> to vector<32x16xbf16>
    %cst_97 = arith.constant dense<0.000000e+00> : vector<32x256xf32>
    %188 = tpu.matmul %187, %185, %cst_97 {dimension_numbers = #tpu.dot_dimension_numbers<[1], [0], [0], [1], [0, 0, 1, 1], [], []>} : vector<32x16xbf16>, vector<16x256xbf16>, vector<32x256xf32> -> vector<32x256xf32>
    %189 = arith.addf %180, %188 : vector<32x256xf32>
    %190 = vector.extract_strided_slice %3 {offsets = [2, 0], sizes = [1, 256], strides = [1, 1]} : vector<9x256xf32> to vector<1x256xf32>
    %c15_i32_98 = arith.constant 15 : i32
    %191 = tpu.dynamic_rotate %172 by %c15_i32_98 dim 1 : vector<16x256xf32>, i32 -> vector<16x256xf32>
    %192 = vector.broadcast %190 : vector<1x256xf32> to vector<16x256xf32>
    %193 = arith.mulf %191, %192 : vector<16x256xf32>
    %194 = arith.truncf %193 : vector<16x256xf32> to vector<16x256xbf16>
    %c2_99 = arith.constant 2 : index
    %c0_100 = arith.constant 0 : index
    %c0_101 = arith.constant 0 : index
    %195 = vector.load %arg10[%c2_99, %c0_100, %c0_101] : memref<9x32x16xbf16, #tpu.memory_space<vmem>>, vector<1x32x16xbf16>
    %196 = vector.shape_cast %195 : vector<1x32x16xbf16> to vector<32x16xbf16>
    %cst_102 = arith.constant dense<0.000000e+00> : vector<32x256xf32>
    %197 = tpu.matmul %196, %194, %cst_102 {dimension_numbers = #tpu.dot_dimension_numbers<[1], [0], [0], [1], [0, 0, 1, 1], [], []>} : vector<32x16xbf16>, vector<16x256xbf16>, vector<32x256xf32> -> vector<32x256xf32>
    %198 = arith.addf %189, %197 : vector<32x256xf32>
    %199 = vector.extract_strided_slice %3 {offsets = [3, 0], sizes = [1, 256], strides = [1, 1]} : vector<9x256xf32> to vector<1x256xf32>
    %c1_i32_103 = arith.constant 1 : i32
    %200 = tpu.dynamic_rotate %172 by %c1_i32_103 dim 1 : vector<16x256xf32>, i32 -> vector<16x256xf32>
    %201 = vector.broadcast %199 : vector<1x256xf32> to vector<16x256xf32>
    %202 = arith.mulf %200, %201 : vector<16x256xf32>
    %203 = arith.truncf %202 : vector<16x256xf32> to vector<16x256xbf16>
    %c3_104 = arith.constant 3 : index
    %c0_105 = arith.constant 0 : index
    %c0_106 = arith.constant 0 : index
    %204 = vector.load %arg10[%c3_104, %c0_105, %c0_106] : memref<9x32x16xbf16, #tpu.memory_space<vmem>>, vector<1x32x16xbf16>
    %205 = vector.shape_cast %204 : vector<1x32x16xbf16> to vector<32x16xbf16>
    %cst_107 = arith.constant dense<0.000000e+00> : vector<32x256xf32>
    %206 = tpu.matmul %205, %203, %cst_107 {dimension_numbers = #tpu.dot_dimension_numbers<[1], [0], [0], [1], [0, 0, 1, 1], [], []>} : vector<32x16xbf16>, vector<16x256xbf16>, vector<32x256xf32> -> vector<32x256xf32>
    %207 = arith.addf %198, %206 : vector<32x256xf32>
    %208 = arith.truncf %172 : vector<16x256xf32> to vector<16x256xbf16>
    %c4_108 = arith.constant 4 : index
    %c0_109 = arith.constant 0 : index
    %c0_110 = arith.constant 0 : index
    %209 = vector.load %arg10[%c4_108, %c0_109, %c0_110] : memref<9x32x16xbf16, #tpu.memory_space<vmem>>, vector<1x32x16xbf16>
    %210 = vector.shape_cast %209 : vector<1x32x16xbf16> to vector<32x16xbf16>
    %cst_111 = arith.constant dense<0.000000e+00> : vector<32x256xf32>
    %211 = tpu.matmul %210, %208, %cst_111 {dimension_numbers = #tpu.dot_dimension_numbers<[1], [0], [0], [1], [0, 0, 1, 1], [], []>} : vector<32x16xbf16>, vector<16x256xbf16>, vector<32x256xf32> -> vector<32x256xf32>
    %212 = arith.addf %207, %211 : vector<32x256xf32>
    %213 = vector.extract_strided_slice %3 {offsets = [5, 0], sizes = [1, 256], strides = [1, 1]} : vector<9x256xf32> to vector<1x256xf32>
    %c255_i32_112 = arith.constant 255 : i32
    %214 = tpu.dynamic_rotate %172 by %c255_i32_112 dim 1 : vector<16x256xf32>, i32 -> vector<16x256xf32>
    %215 = vector.broadcast %213 : vector<1x256xf32> to vector<16x256xf32>
    %216 = arith.mulf %214, %215 : vector<16x256xf32>
    %217 = arith.truncf %216 : vector<16x256xf32> to vector<16x256xbf16>
    %c5_113 = arith.constant 5 : index
    %c0_114 = arith.constant 0 : index
    %c0_115 = arith.constant 0 : index
    %218 = vector.load %arg10[%c5_113, %c0_114, %c0_115] : memref<9x32x16xbf16, #tpu.memory_space<vmem>>, vector<1x32x16xbf16>
    %219 = vector.shape_cast %218 : vector<1x32x16xbf16> to vector<32x16xbf16>
    %cst_116 = arith.constant dense<0.000000e+00> : vector<32x256xf32>
    %220 = tpu.matmul %219, %217, %cst_116 {dimension_numbers = #tpu.dot_dimension_numbers<[1], [0], [0], [1], [0, 0, 1, 1], [], []>} : vector<32x16xbf16>, vector<16x256xbf16>, vector<32x256xf32> -> vector<32x256xf32>
    %221 = arith.addf %212, %220 : vector<32x256xf32>
    %222 = vector.extract_strided_slice %3 {offsets = [6, 0], sizes = [1, 256], strides = [1, 1]} : vector<9x256xf32> to vector<1x256xf32>
    %c241_i32_117 = arith.constant 241 : i32
    %223 = tpu.dynamic_rotate %172 by %c241_i32_117 dim 1 : vector<16x256xf32>, i32 -> vector<16x256xf32>
    %224 = vector.broadcast %222 : vector<1x256xf32> to vector<16x256xf32>
    %225 = arith.mulf %223, %224 : vector<16x256xf32>
    %226 = arith.truncf %225 : vector<16x256xf32> to vector<16x256xbf16>
    %c6_118 = arith.constant 6 : index
    %c0_119 = arith.constant 0 : index
    %c0_120 = arith.constant 0 : index
    %227 = vector.load %arg10[%c6_118, %c0_119, %c0_120] : memref<9x32x16xbf16, #tpu.memory_space<vmem>>, vector<1x32x16xbf16>
    %228 = vector.shape_cast %227 : vector<1x32x16xbf16> to vector<32x16xbf16>
    %cst_121 = arith.constant dense<0.000000e+00> : vector<32x256xf32>
    %229 = tpu.matmul %228, %226, %cst_121 {dimension_numbers = #tpu.dot_dimension_numbers<[1], [0], [0], [1], [0, 0, 1, 1], [], []>} : vector<32x16xbf16>, vector<16x256xbf16>, vector<32x256xf32> -> vector<32x256xf32>
    %230 = arith.addf %221, %229 : vector<32x256xf32>
    %231 = vector.extract_strided_slice %3 {offsets = [7, 0], sizes = [1, 256], strides = [1, 1]} : vector<9x256xf32> to vector<1x256xf32>
    %c240_i32_122 = arith.constant 240 : i32
    %232 = tpu.dynamic_rotate %172 by %c240_i32_122 dim 1 : vector<16x256xf32>, i32 -> vector<16x256xf32>
    %233 = vector.broadcast %231 : vector<1x256xf32> to vector<16x256xf32>
    %234 = arith.mulf %232, %233 : vector<16x256xf32>
    %235 = arith.truncf %234 : vector<16x256xf32> to vector<16x256xbf16>
    %c7_123 = arith.constant 7 : index
    %c0_124 = arith.constant 0 : index
    %c0_125 = arith.constant 0 : index
    %236 = vector.load %arg10[%c7_123, %c0_124, %c0_125] : memref<9x32x16xbf16, #tpu.memory_space<vmem>>, vector<1x32x16xbf16>
    %237 = vector.shape_cast %236 : vector<1x32x16xbf16> to vector<32x16xbf16>
    %cst_126 = arith.constant dense<0.000000e+00> : vector<32x256xf32>
    %238 = tpu.matmul %237, %235, %cst_126 {dimension_numbers = #tpu.dot_dimension_numbers<[1], [0], [0], [1], [0, 0, 1, 1], [], []>} : vector<32x16xbf16>, vector<16x256xbf16>, vector<32x256xf32> -> vector<32x256xf32>
    %239 = arith.addf %230, %238 : vector<32x256xf32>
    %240 = vector.extract_strided_slice %3 {offsets = [8, 0], sizes = [1, 256], strides = [1, 1]} : vector<9x256xf32> to vector<1x256xf32>
    %c239_i32_127 = arith.constant 239 : i32
    %241 = tpu.dynamic_rotate %172 by %c239_i32_127 dim 1 : vector<16x256xf32>, i32 -> vector<16x256xf32>
    %242 = vector.broadcast %240 : vector<1x256xf32> to vector<16x256xf32>
    %243 = arith.mulf %241, %242 : vector<16x256xf32>
    %244 = arith.truncf %243 : vector<16x256xf32> to vector<16x256xbf16>
    %c8_128 = arith.constant 8 : index
    %c0_129 = arith.constant 0 : index
    %c0_130 = arith.constant 0 : index
    %245 = vector.load %arg10[%c8_128, %c0_129, %c0_130] : memref<9x32x16xbf16, #tpu.memory_space<vmem>>, vector<1x32x16xbf16>
    %246 = vector.shape_cast %245 : vector<1x32x16xbf16> to vector<32x16xbf16>
    %cst_131 = arith.constant dense<0.000000e+00> : vector<32x256xf32>
    %247 = tpu.matmul %246, %244, %cst_131 {dimension_numbers = #tpu.dot_dimension_numbers<[1], [0], [0], [1], [0, 0, 1, 1], [], []>} : vector<32x16xbf16>, vector<16x256xbf16>, vector<32x256xf32> -> vector<32x256xf32>
    %248 = arith.addf %239, %247 : vector<32x256xf32>
    %c0_132 = arith.constant 0 : index
    %c0_133 = arith.constant 0 : index
    %249 = vector.load %arg11[%c0_132, %c0_133] : memref<32x1xf32, #tpu.memory_space<vmem>>, vector<32x1xf32>
    %250 = vector.broadcast %249 : vector<32x1xf32> to vector<32x256xf32>
    %251 = arith.addf %248, %250 : vector<32x256xf32>
    %cst_134 = arith.constant 0.000000e+00 : f32
    %252 = vector.broadcast %cst_134 : f32 to vector<32x256xf32>
    %253 = arith.maximumf %251, %252 : vector<32x256xf32>
    %254 = vector.extract_strided_slice %3 {offsets = [0, 0], sizes = [1, 256], strides = [1, 1]} : vector<9x256xf32> to vector<1x256xf32>
    %c17_i32_135 = arith.constant 17 : i32
    %255 = tpu.dynamic_rotate %253 by %c17_i32_135 dim 1 : vector<32x256xf32>, i32 -> vector<32x256xf32>
    %256 = vector.broadcast %254 : vector<1x256xf32> to vector<32x256xf32>
    %257 = arith.mulf %255, %256 : vector<32x256xf32>
    %258 = arith.truncf %257 : vector<32x256xf32> to vector<32x256xbf16>
    %c0_136 = arith.constant 0 : index
    %c0_137 = arith.constant 0 : index
    %c0_138 = arith.constant 0 : index
    %259 = vector.load %arg12[%c0_136, %c0_137, %c0_138] : memref<9x32x32xbf16, #tpu.memory_space<vmem>>, vector<1x32x32xbf16>
    %260 = vector.shape_cast %259 : vector<1x32x32xbf16> to vector<32x32xbf16>
    %cst_139 = arith.constant dense<0.000000e+00> : vector<32x256xf32>
    %261 = tpu.matmul %260, %258, %cst_139 {dimension_numbers = #tpu.dot_dimension_numbers<[1], [0], [0], [1], [0, 0, 1, 1], [], []>} : vector<32x32xbf16>, vector<32x256xbf16>, vector<32x256xf32> -> vector<32x256xf32>
    %262 = vector.extract_strided_slice %3 {offsets = [1, 0], sizes = [1, 256], strides = [1, 1]} : vector<9x256xf32> to vector<1x256xf32>
    %c16_i32_140 = arith.constant 16 : i32
    %263 = tpu.dynamic_rotate %253 by %c16_i32_140 dim 1 : vector<32x256xf32>, i32 -> vector<32x256xf32>
    %264 = vector.broadcast %262 : vector<1x256xf32> to vector<32x256xf32>
    %265 = arith.mulf %263, %264 : vector<32x256xf32>
    %266 = arith.truncf %265 : vector<32x256xf32> to vector<32x256xbf16>
    %c1_141 = arith.constant 1 : index
    %c0_142 = arith.constant 0 : index
    %c0_143 = arith.constant 0 : index
    %267 = vector.load %arg12[%c1_141, %c0_142, %c0_143] : memref<9x32x32xbf16, #tpu.memory_space<vmem>>, vector<1x32x32xbf16>
    %268 = vector.shape_cast %267 : vector<1x32x32xbf16> to vector<32x32xbf16>
    %cst_144 = arith.constant dense<0.000000e+00> : vector<32x256xf32>
    %269 = tpu.matmul %268, %266, %cst_144 {dimension_numbers = #tpu.dot_dimension_numbers<[1], [0], [0], [1], [0, 0, 1, 1], [], []>} : vector<32x32xbf16>, vector<32x256xbf16>, vector<32x256xf32> -> vector<32x256xf32>
    %270 = arith.addf %261, %269 : vector<32x256xf32>
    %271 = vector.extract_strided_slice %3 {offsets = [2, 0], sizes = [1, 256], strides = [1, 1]} : vector<9x256xf32> to vector<1x256xf32>
    %c15_i32_145 = arith.constant 15 : i32
    %272 = tpu.dynamic_rotate %253 by %c15_i32_145 dim 1 : vector<32x256xf32>, i32 -> vector<32x256xf32>
    %273 = vector.broadcast %271 : vector<1x256xf32> to vector<32x256xf32>
    %274 = arith.mulf %272, %273 : vector<32x256xf32>
    %275 = arith.truncf %274 : vector<32x256xf32> to vector<32x256xbf16>
    %c2_146 = arith.constant 2 : index
    %c0_147 = arith.constant 0 : index
    %c0_148 = arith.constant 0 : index
    %276 = vector.load %arg12[%c2_146, %c0_147, %c0_148] : memref<9x32x32xbf16, #tpu.memory_space<vmem>>, vector<1x32x32xbf16>
    %277 = vector.shape_cast %276 : vector<1x32x32xbf16> to vector<32x32xbf16>
    %cst_149 = arith.constant dense<0.000000e+00> : vector<32x256xf32>
    %278 = tpu.matmul %277, %275, %cst_149 {dimension_numbers = #tpu.dot_dimension_numbers<[1], [0], [0], [1], [0, 0, 1, 1], [], []>} : vector<32x32xbf16>, vector<32x256xbf16>, vector<32x256xf32> -> vector<32x256xf32>
    %279 = arith.addf %270, %278 : vector<32x256xf32>
    %280 = vector.extract_strided_slice %3 {offsets = [3, 0], sizes = [1, 256], strides = [1, 1]} : vector<9x256xf32> to vector<1x256xf32>
    %c1_i32_150 = arith.constant 1 : i32
    %281 = tpu.dynamic_rotate %253 by %c1_i32_150 dim 1 : vector<32x256xf32>, i32 -> vector<32x256xf32>
    %282 = vector.broadcast %280 : vector<1x256xf32> to vector<32x256xf32>
    %283 = arith.mulf %281, %282 : vector<32x256xf32>
    %284 = arith.truncf %283 : vector<32x256xf32> to vector<32x256xbf16>
    %c3_151 = arith.constant 3 : index
    %c0_152 = arith.constant 0 : index
    %c0_153 = arith.constant 0 : index
    %285 = vector.load %arg12[%c3_151, %c0_152, %c0_153] : memref<9x32x32xbf16, #tpu.memory_space<vmem>>, vector<1x32x32xbf16>
    %286 = vector.shape_cast %285 : vector<1x32x32xbf16> to vector<32x32xbf16>
    %cst_154 = arith.constant dense<0.000000e+00> : vector<32x256xf32>
    %287 = tpu.matmul %286, %284, %cst_154 {dimension_numbers = #tpu.dot_dimension_numbers<[1], [0], [0], [1], [0, 0, 1, 1], [], []>} : vector<32x32xbf16>, vector<32x256xbf16>, vector<32x256xf32> -> vector<32x256xf32>
    %288 = arith.addf %279, %287 : vector<32x256xf32>
    %289 = arith.truncf %253 : vector<32x256xf32> to vector<32x256xbf16>
    %c4_155 = arith.constant 4 : index
    %c0_156 = arith.constant 0 : index
    %c0_157 = arith.constant 0 : index
    %290 = vector.load %arg12[%c4_155, %c0_156, %c0_157] : memref<9x32x32xbf16, #tpu.memory_space<vmem>>, vector<1x32x32xbf16>
    %291 = vector.shape_cast %290 : vector<1x32x32xbf16> to vector<32x32xbf16>
    %cst_158 = arith.constant dense<0.000000e+00> : vector<32x256xf32>
    %292 = tpu.matmul %291, %289, %cst_158 {dimension_numbers = #tpu.dot_dimension_numbers<[1], [0], [0], [1], [0, 0, 1, 1], [], []>} : vector<32x32xbf16>, vector<32x256xbf16>, vector<32x256xf32> -> vector<32x256xf32>
    %293 = arith.addf %288, %292 : vector<32x256xf32>
    %294 = vector.extract_strided_slice %3 {offsets = [5, 0], sizes = [1, 256], strides = [1, 1]} : vector<9x256xf32> to vector<1x256xf32>
    %c255_i32_159 = arith.constant 255 : i32
    %295 = tpu.dynamic_rotate %253 by %c255_i32_159 dim 1 : vector<32x256xf32>, i32 -> vector<32x256xf32>
    %296 = vector.broadcast %294 : vector<1x256xf32> to vector<32x256xf32>
    %297 = arith.mulf %295, %296 : vector<32x256xf32>
    %298 = arith.truncf %297 : vector<32x256xf32> to vector<32x256xbf16>
    %c5_160 = arith.constant 5 : index
    %c0_161 = arith.constant 0 : index
    %c0_162 = arith.constant 0 : index
    %299 = vector.load %arg12[%c5_160, %c0_161, %c0_162] : memref<9x32x32xbf16, #tpu.memory_space<vmem>>, vector<1x32x32xbf16>
    %300 = vector.shape_cast %299 : vector<1x32x32xbf16> to vector<32x32xbf16>
    %cst_163 = arith.constant dense<0.000000e+00> : vector<32x256xf32>
    %301 = tpu.matmul %300, %298, %cst_163 {dimension_numbers = #tpu.dot_dimension_numbers<[1], [0], [0], [1], [0, 0, 1, 1], [], []>} : vector<32x32xbf16>, vector<32x256xbf16>, vector<32x256xf32> -> vector<32x256xf32>
    %302 = arith.addf %293, %301 : vector<32x256xf32>
    %303 = vector.extract_strided_slice %3 {offsets = [6, 0], sizes = [1, 256], strides = [1, 1]} : vector<9x256xf32> to vector<1x256xf32>
    %c241_i32_164 = arith.constant 241 : i32
    %304 = tpu.dynamic_rotate %253 by %c241_i32_164 dim 1 : vector<32x256xf32>, i32 -> vector<32x256xf32>
    %305 = vector.broadcast %303 : vector<1x256xf32> to vector<32x256xf32>
    %306 = arith.mulf %304, %305 : vector<32x256xf32>
    %307 = arith.truncf %306 : vector<32x256xf32> to vector<32x256xbf16>
    %c6_165 = arith.constant 6 : index
    %c0_166 = arith.constant 0 : index
    %c0_167 = arith.constant 0 : index
    %308 = vector.load %arg12[%c6_165, %c0_166, %c0_167] : memref<9x32x32xbf16, #tpu.memory_space<vmem>>, vector<1x32x32xbf16>
    %309 = vector.shape_cast %308 : vector<1x32x32xbf16> to vector<32x32xbf16>
    %cst_168 = arith.constant dense<0.000000e+00> : vector<32x256xf32>
    %310 = tpu.matmul %309, %307, %cst_168 {dimension_numbers = #tpu.dot_dimension_numbers<[1], [0], [0], [1], [0, 0, 1, 1], [], []>} : vector<32x32xbf16>, vector<32x256xbf16>, vector<32x256xf32> -> vector<32x256xf32>
    %311 = arith.addf %302, %310 : vector<32x256xf32>
    %312 = vector.extract_strided_slice %3 {offsets = [7, 0], sizes = [1, 256], strides = [1, 1]} : vector<9x256xf32> to vector<1x256xf32>
    %c240_i32_169 = arith.constant 240 : i32
    %313 = tpu.dynamic_rotate %253 by %c240_i32_169 dim 1 : vector<32x256xf32>, i32 -> vector<32x256xf32>
    %314 = vector.broadcast %312 : vector<1x256xf32> to vector<32x256xf32>
    %315 = arith.mulf %313, %314 : vector<32x256xf32>
    %316 = arith.truncf %315 : vector<32x256xf32> to vector<32x256xbf16>
    %c7_170 = arith.constant 7 : index
    %c0_171 = arith.constant 0 : index
    %c0_172 = arith.constant 0 : index
    %317 = vector.load %arg12[%c7_170, %c0_171, %c0_172] : memref<9x32x32xbf16, #tpu.memory_space<vmem>>, vector<1x32x32xbf16>
    %318 = vector.shape_cast %317 : vector<1x32x32xbf16> to vector<32x32xbf16>
    %cst_173 = arith.constant dense<0.000000e+00> : vector<32x256xf32>
    %319 = tpu.matmul %318, %316, %cst_173 {dimension_numbers = #tpu.dot_dimension_numbers<[1], [0], [0], [1], [0, 0, 1, 1], [], []>} : vector<32x32xbf16>, vector<32x256xbf16>, vector<32x256xf32> -> vector<32x256xf32>
    %320 = arith.addf %311, %319 : vector<32x256xf32>
    %321 = vector.extract_strided_slice %3 {offsets = [8, 0], sizes = [1, 256], strides = [1, 1]} : vector<9x256xf32> to vector<1x256xf32>
    %c239_i32_174 = arith.constant 239 : i32
    %322 = tpu.dynamic_rotate %253 by %c239_i32_174 dim 1 : vector<32x256xf32>, i32 -> vector<32x256xf32>
    %323 = vector.broadcast %321 : vector<1x256xf32> to vector<32x256xf32>
    %324 = arith.mulf %322, %323 : vector<32x256xf32>
    %325 = arith.truncf %324 : vector<32x256xf32> to vector<32x256xbf16>
    %c8_175 = arith.constant 8 : index
    %c0_176 = arith.constant 0 : index
    %c0_177 = arith.constant 0 : index
    %326 = vector.load %arg12[%c8_175, %c0_176, %c0_177] : memref<9x32x32xbf16, #tpu.memory_space<vmem>>, vector<1x32x32xbf16>
    %327 = vector.shape_cast %326 : vector<1x32x32xbf16> to vector<32x32xbf16>
    %cst_178 = arith.constant dense<0.000000e+00> : vector<32x256xf32>
    %328 = tpu.matmul %327, %325, %cst_178 {dimension_numbers = #tpu.dot_dimension_numbers<[1], [0], [0], [1], [0, 0, 1, 1], [], []>} : vector<32x32xbf16>, vector<32x256xbf16>, vector<32x256xf32> -> vector<32x256xf32>
    %329 = arith.addf %320, %328 : vector<32x256xf32>
    %c0_179 = arith.constant 0 : index
    %c0_180 = arith.constant 0 : index
    %330 = vector.load %arg13[%c0_179, %c0_180] : memref<32x1xf32, #tpu.memory_space<vmem>>, vector<32x1xf32>
    %331 = vector.broadcast %330 : vector<32x1xf32> to vector<32x256xf32>
    %332 = arith.addf %329, %331 : vector<32x256xf32>
    %cst_181 = arith.constant 0.000000e+00 : f32
    %333 = vector.broadcast %cst_181 : f32 to vector<32x256xf32>
    %334 = arith.maximumf %332, %333 : vector<32x256xf32>
    %335 = arith.truncf %334 : vector<32x256xf32> to vector<32x256xbf16>
    %c0_182 = arith.constant 0 : index
    %c0_183 = arith.constant 0 : index
    %336 = vector.load %arg5[%c0_182, %c0_183] : memref<256x256xbf16, #tpu.memory_space<vmem>>, vector<256x256xbf16>
    %cst_184 = arith.constant dense<0.000000e+00> : vector<32x256xf32>
    %337 = tpu.matmul %335, %336, %cst_184 {dimension_numbers = #tpu.dot_dimension_numbers<[1], [0], [0], [1], [0, 0, 1, 1], [], []>} : vector<32x256xbf16>, vector<256x256xbf16>, vector<32x256xf32> -> vector<32x256xf32>
    %338 = vector.extract_strided_slice %2 {offsets = [0, 0], sizes = [1, 256], strides = [1, 1]} : vector<9x256xf32> to vector<1x256xf32>
    %c17_i32_185 = arith.constant 17 : i32
    %339 = tpu.dynamic_rotate %165 by %c17_i32_185 dim 1 : vector<16x256xf32>, i32 -> vector<16x256xf32>
    %340 = vector.broadcast %338 : vector<1x256xf32> to vector<16x256xf32>
    %341 = arith.mulf %339, %340 : vector<16x256xf32>
    %342 = arith.truncf %341 : vector<16x256xf32> to vector<16x256xbf16>
    %c0_186 = arith.constant 0 : index
    %c0_187 = arith.constant 0 : index
    %c0_188 = arith.constant 0 : index
    %343 = vector.load %arg14[%c0_186, %c0_187, %c0_188] : memref<9x16x16xbf16, #tpu.memory_space<vmem>>, vector<1x16x16xbf16>
    %344 = vector.shape_cast %343 : vector<1x16x16xbf16> to vector<16x16xbf16>
    %cst_189 = arith.constant dense<0.000000e+00> : vector<16x256xf32>
    %345 = tpu.matmul %344, %342, %cst_189 {dimension_numbers = #tpu.dot_dimension_numbers<[1], [0], [0], [1], [0, 0, 1, 1], [], []>} : vector<16x16xbf16>, vector<16x256xbf16>, vector<16x256xf32> -> vector<16x256xf32>
    %c17_i32_190 = arith.constant 17 : i32
    %346 = tpu.dynamic_rotate %337 by %c17_i32_190 dim 1 : vector<32x256xf32>, i32 -> vector<32x256xf32>
    %347 = vector.broadcast %338 : vector<1x256xf32> to vector<32x256xf32>
    %348 = arith.mulf %346, %347 : vector<32x256xf32>
    %349 = arith.truncf %348 : vector<32x256xf32> to vector<32x256xbf16>
    %c0_191 = arith.constant 0 : index
    %c0_192 = arith.constant 0 : index
    %c0_193 = arith.constant 0 : index
    %350 = vector.load %arg15[%c0_191, %c0_192, %c0_193] : memref<9x16x32xbf16, #tpu.memory_space<vmem>>, vector<1x16x32xbf16>
    %351 = vector.shape_cast %350 : vector<1x16x32xbf16> to vector<16x32xbf16>
    %cst_194 = arith.constant dense<0.000000e+00> : vector<16x256xf32>
    %352 = tpu.matmul %351, %349, %cst_194 {dimension_numbers = #tpu.dot_dimension_numbers<[1], [0], [0], [1], [0, 0, 1, 1], [], []>} : vector<16x32xbf16>, vector<32x256xbf16>, vector<16x256xf32> -> vector<16x256xf32>
    %353 = arith.addf %345, %352 : vector<16x256xf32>
    %354 = vector.extract_strided_slice %2 {offsets = [1, 0], sizes = [1, 256], strides = [1, 1]} : vector<9x256xf32> to vector<1x256xf32>
    %c16_i32_195 = arith.constant 16 : i32
    %355 = tpu.dynamic_rotate %165 by %c16_i32_195 dim 1 : vector<16x256xf32>, i32 -> vector<16x256xf32>
    %356 = vector.broadcast %354 : vector<1x256xf32> to vector<16x256xf32>
    %357 = arith.mulf %355, %356 : vector<16x256xf32>
    %358 = arith.truncf %357 : vector<16x256xf32> to vector<16x256xbf16>
    %c1_196 = arith.constant 1 : index
    %c0_197 = arith.constant 0 : index
    %c0_198 = arith.constant 0 : index
    %359 = vector.load %arg14[%c1_196, %c0_197, %c0_198] : memref<9x16x16xbf16, #tpu.memory_space<vmem>>, vector<1x16x16xbf16>
    %360 = vector.shape_cast %359 : vector<1x16x16xbf16> to vector<16x16xbf16>
    %cst_199 = arith.constant dense<0.000000e+00> : vector<16x256xf32>
    %361 = tpu.matmul %360, %358, %cst_199 {dimension_numbers = #tpu.dot_dimension_numbers<[1], [0], [0], [1], [0, 0, 1, 1], [], []>} : vector<16x16xbf16>, vector<16x256xbf16>, vector<16x256xf32> -> vector<16x256xf32>
    %362 = arith.addf %353, %361 : vector<16x256xf32>
    %c16_i32_200 = arith.constant 16 : i32
    %363 = tpu.dynamic_rotate %337 by %c16_i32_200 dim 1 : vector<32x256xf32>, i32 -> vector<32x256xf32>
    %364 = vector.broadcast %354 : vector<1x256xf32> to vector<32x256xf32>
    %365 = arith.mulf %363, %364 : vector<32x256xf32>
    %366 = arith.truncf %365 : vector<32x256xf32> to vector<32x256xbf16>
    %c1_201 = arith.constant 1 : index
    %c0_202 = arith.constant 0 : index
    %c0_203 = arith.constant 0 : index
    %367 = vector.load %arg15[%c1_201, %c0_202, %c0_203] : memref<9x16x32xbf16, #tpu.memory_space<vmem>>, vector<1x16x32xbf16>
    %368 = vector.shape_cast %367 : vector<1x16x32xbf16> to vector<16x32xbf16>
    %cst_204 = arith.constant dense<0.000000e+00> : vector<16x256xf32>
    %369 = tpu.matmul %368, %366, %cst_204 {dimension_numbers = #tpu.dot_dimension_numbers<[1], [0], [0], [1], [0, 0, 1, 1], [], []>} : vector<16x32xbf16>, vector<32x256xbf16>, vector<16x256xf32> -> vector<16x256xf32>
    %370 = arith.addf %362, %369 : vector<16x256xf32>
    %371 = vector.extract_strided_slice %2 {offsets = [2, 0], sizes = [1, 256], strides = [1, 1]} : vector<9x256xf32> to vector<1x256xf32>
    %c15_i32_205 = arith.constant 15 : i32
    %372 = tpu.dynamic_rotate %165 by %c15_i32_205 dim 1 : vector<16x256xf32>, i32 -> vector<16x256xf32>
    %373 = vector.broadcast %371 : vector<1x256xf32> to vector<16x256xf32>
    %374 = arith.mulf %372, %373 : vector<16x256xf32>
    %375 = arith.truncf %374 : vector<16x256xf32> to vector<16x256xbf16>
    %c2_206 = arith.constant 2 : index
    %c0_207 = arith.constant 0 : index
    %c0_208 = arith.constant 0 : index
    %376 = vector.load %arg14[%c2_206, %c0_207, %c0_208] : memref<9x16x16xbf16, #tpu.memory_space<vmem>>, vector<1x16x16xbf16>
    %377 = vector.shape_cast %376 : vector<1x16x16xbf16> to vector<16x16xbf16>
    %cst_209 = arith.constant dense<0.000000e+00> : vector<16x256xf32>
    %378 = tpu.matmul %377, %375, %cst_209 {dimension_numbers = #tpu.dot_dimension_numbers<[1], [0], [0], [1], [0, 0, 1, 1], [], []>} : vector<16x16xbf16>, vector<16x256xbf16>, vector<16x256xf32> -> vector<16x256xf32>
    %379 = arith.addf %370, %378 : vector<16x256xf32>
    %c15_i32_210 = arith.constant 15 : i32
    %380 = tpu.dynamic_rotate %337 by %c15_i32_210 dim 1 : vector<32x256xf32>, i32 -> vector<32x256xf32>
    %381 = vector.broadcast %371 : vector<1x256xf32> to vector<32x256xf32>
    %382 = arith.mulf %380, %381 : vector<32x256xf32>
    %383 = arith.truncf %382 : vector<32x256xf32> to vector<32x256xbf16>
    %c2_211 = arith.constant 2 : index
    %c0_212 = arith.constant 0 : index
    %c0_213 = arith.constant 0 : index
    %384 = vector.load %arg15[%c2_211, %c0_212, %c0_213] : memref<9x16x32xbf16, #tpu.memory_space<vmem>>, vector<1x16x32xbf16>
    %385 = vector.shape_cast %384 : vector<1x16x32xbf16> to vector<16x32xbf16>
    %cst_214 = arith.constant dense<0.000000e+00> : vector<16x256xf32>
    %386 = tpu.matmul %385, %383, %cst_214 {dimension_numbers = #tpu.dot_dimension_numbers<[1], [0], [0], [1], [0, 0, 1, 1], [], []>} : vector<16x32xbf16>, vector<32x256xbf16>, vector<16x256xf32> -> vector<16x256xf32>
    %387 = arith.addf %379, %386 : vector<16x256xf32>
    %388 = vector.extract_strided_slice %2 {offsets = [3, 0], sizes = [1, 256], strides = [1, 1]} : vector<9x256xf32> to vector<1x256xf32>
    %c1_i32_215 = arith.constant 1 : i32
    %389 = tpu.dynamic_rotate %165 by %c1_i32_215 dim 1 : vector<16x256xf32>, i32 -> vector<16x256xf32>
    %390 = vector.broadcast %388 : vector<1x256xf32> to vector<16x256xf32>
    %391 = arith.mulf %389, %390 : vector<16x256xf32>
    %392 = arith.truncf %391 : vector<16x256xf32> to vector<16x256xbf16>
    %c3_216 = arith.constant 3 : index
    %c0_217 = arith.constant 0 : index
    %c0_218 = arith.constant 0 : index
    %393 = vector.load %arg14[%c3_216, %c0_217, %c0_218] : memref<9x16x16xbf16, #tpu.memory_space<vmem>>, vector<1x16x16xbf16>
    %394 = vector.shape_cast %393 : vector<1x16x16xbf16> to vector<16x16xbf16>
    %cst_219 = arith.constant dense<0.000000e+00> : vector<16x256xf32>
    %395 = tpu.matmul %394, %392, %cst_219 {dimension_numbers = #tpu.dot_dimension_numbers<[1], [0], [0], [1], [0, 0, 1, 1], [], []>} : vector<16x16xbf16>, vector<16x256xbf16>, vector<16x256xf32> -> vector<16x256xf32>
    %396 = arith.addf %387, %395 : vector<16x256xf32>
    %c1_i32_220 = arith.constant 1 : i32
    %397 = tpu.dynamic_rotate %337 by %c1_i32_220 dim 1 : vector<32x256xf32>, i32 -> vector<32x256xf32>
    %398 = vector.broadcast %388 : vector<1x256xf32> to vector<32x256xf32>
    %399 = arith.mulf %397, %398 : vector<32x256xf32>
    %400 = arith.truncf %399 : vector<32x256xf32> to vector<32x256xbf16>
    %c3_221 = arith.constant 3 : index
    %c0_222 = arith.constant 0 : index
    %c0_223 = arith.constant 0 : index
    %401 = vector.load %arg15[%c3_221, %c0_222, %c0_223] : memref<9x16x32xbf16, #tpu.memory_space<vmem>>, vector<1x16x32xbf16>
    %402 = vector.shape_cast %401 : vector<1x16x32xbf16> to vector<16x32xbf16>
    %cst_224 = arith.constant dense<0.000000e+00> : vector<16x256xf32>
    %403 = tpu.matmul %402, %400, %cst_224 {dimension_numbers = #tpu.dot_dimension_numbers<[1], [0], [0], [1], [0, 0, 1, 1], [], []>} : vector<16x32xbf16>, vector<32x256xbf16>, vector<16x256xf32> -> vector<16x256xf32>
    %404 = arith.addf %396, %403 : vector<16x256xf32>
    %405 = arith.truncf %165 : vector<16x256xf32> to vector<16x256xbf16>
    %c4_225 = arith.constant 4 : index
    %c0_226 = arith.constant 0 : index
    %c0_227 = arith.constant 0 : index
    %406 = vector.load %arg14[%c4_225, %c0_226, %c0_227] : memref<9x16x16xbf16, #tpu.memory_space<vmem>>, vector<1x16x16xbf16>
    %407 = vector.shape_cast %406 : vector<1x16x16xbf16> to vector<16x16xbf16>
    %cst_228 = arith.constant dense<0.000000e+00> : vector<16x256xf32>
    %408 = tpu.matmul %407, %405, %cst_228 {dimension_numbers = #tpu.dot_dimension_numbers<[1], [0], [0], [1], [0, 0, 1, 1], [], []>} : vector<16x16xbf16>, vector<16x256xbf16>, vector<16x256xf32> -> vector<16x256xf32>
    %409 = arith.addf %404, %408 : vector<16x256xf32>
    %410 = arith.truncf %337 : vector<32x256xf32> to vector<32x256xbf16>
    %c4_229 = arith.constant 4 : index
    %c0_230 = arith.constant 0 : index
    %c0_231 = arith.constant 0 : index
    %411 = vector.load %arg15[%c4_229, %c0_230, %c0_231] : memref<9x16x32xbf16, #tpu.memory_space<vmem>>, vector<1x16x32xbf16>
    %412 = vector.shape_cast %411 : vector<1x16x32xbf16> to vector<16x32xbf16>
    %cst_232 = arith.constant dense<0.000000e+00> : vector<16x256xf32>
    %413 = tpu.matmul %412, %410, %cst_232 {dimension_numbers = #tpu.dot_dimension_numbers<[1], [0], [0], [1], [0, 0, 1, 1], [], []>} : vector<16x32xbf16>, vector<32x256xbf16>, vector<16x256xf32> -> vector<16x256xf32>
    %414 = arith.addf %409, %413 : vector<16x256xf32>
    %415 = vector.extract_strided_slice %2 {offsets = [5, 0], sizes = [1, 256], strides = [1, 1]} : vector<9x256xf32> to vector<1x256xf32>
    %c255_i32_233 = arith.constant 255 : i32
    %416 = tpu.dynamic_rotate %165 by %c255_i32_233 dim 1 : vector<16x256xf32>, i32 -> vector<16x256xf32>
    %417 = vector.broadcast %415 : vector<1x256xf32> to vector<16x256xf32>
    %418 = arith.mulf %416, %417 : vector<16x256xf32>
    %419 = arith.truncf %418 : vector<16x256xf32> to vector<16x256xbf16>
    %c5_234 = arith.constant 5 : index
    %c0_235 = arith.constant 0 : index
    %c0_236 = arith.constant 0 : index
    %420 = vector.load %arg14[%c5_234, %c0_235, %c0_236] : memref<9x16x16xbf16, #tpu.memory_space<vmem>>, vector<1x16x16xbf16>
    %421 = vector.shape_cast %420 : vector<1x16x16xbf16> to vector<16x16xbf16>
    %cst_237 = arith.constant dense<0.000000e+00> : vector<16x256xf32>
    %422 = tpu.matmul %421, %419, %cst_237 {dimension_numbers = #tpu.dot_dimension_numbers<[1], [0], [0], [1], [0, 0, 1, 1], [], []>} : vector<16x16xbf16>, vector<16x256xbf16>, vector<16x256xf32> -> vector<16x256xf32>
    %423 = arith.addf %414, %422 : vector<16x256xf32>
    %c255_i32_238 = arith.constant 255 : i32
    %424 = tpu.dynamic_rotate %337 by %c255_i32_238 dim 1 : vector<32x256xf32>, i32 -> vector<32x256xf32>
    %425 = vector.broadcast %415 : vector<1x256xf32> to vector<32x256xf32>
    %426 = arith.mulf %424, %425 : vector<32x256xf32>
    %427 = arith.truncf %426 : vector<32x256xf32> to vector<32x256xbf16>
    %c5_239 = arith.constant 5 : index
    %c0_240 = arith.constant 0 : index
    %c0_241 = arith.constant 0 : index
    %428 = vector.load %arg15[%c5_239, %c0_240, %c0_241] : memref<9x16x32xbf16, #tpu.memory_space<vmem>>, vector<1x16x32xbf16>
    %429 = vector.shape_cast %428 : vector<1x16x32xbf16> to vector<16x32xbf16>
    %cst_242 = arith.constant dense<0.000000e+00> : vector<16x256xf32>
    %430 = tpu.matmul %429, %427, %cst_242 {dimension_numbers = #tpu.dot_dimension_numbers<[1], [0], [0], [1], [0, 0, 1, 1], [], []>} : vector<16x32xbf16>, vector<32x256xbf16>, vector<16x256xf32> -> vector<16x256xf32>
    %431 = arith.addf %423, %430 : vector<16x256xf32>
    %432 = vector.extract_strided_slice %2 {offsets = [6, 0], sizes = [1, 256], strides = [1, 1]} : vector<9x256xf32> to vector<1x256xf32>
    %c241_i32_243 = arith.constant 241 : i32
    %433 = tpu.dynamic_rotate %165 by %c241_i32_243 dim 1 : vector<16x256xf32>, i32 -> vector<16x256xf32>
    %434 = vector.broadcast %432 : vector<1x256xf32> to vector<16x256xf32>
    %435 = arith.mulf %433, %434 : vector<16x256xf32>
    %436 = arith.truncf %435 : vector<16x256xf32> to vector<16x256xbf16>
    %c6_244 = arith.constant 6 : index
    %c0_245 = arith.constant 0 : index
    %c0_246 = arith.constant 0 : index
    %437 = vector.load %arg14[%c6_244, %c0_245, %c0_246] : memref<9x16x16xbf16, #tpu.memory_space<vmem>>, vector<1x16x16xbf16>
    %438 = vector.shape_cast %437 : vector<1x16x16xbf16> to vector<16x16xbf16>
    %cst_247 = arith.constant dense<0.000000e+00> : vector<16x256xf32>
    %439 = tpu.matmul %438, %436, %cst_247 {dimension_numbers = #tpu.dot_dimension_numbers<[1], [0], [0], [1], [0, 0, 1, 1], [], []>} : vector<16x16xbf16>, vector<16x256xbf16>, vector<16x256xf32> -> vector<16x256xf32>
    %440 = arith.addf %431, %439 : vector<16x256xf32>
    %c241_i32_248 = arith.constant 241 : i32
    %441 = tpu.dynamic_rotate %337 by %c241_i32_248 dim 1 : vector<32x256xf32>, i32 -> vector<32x256xf32>
    %442 = vector.broadcast %432 : vector<1x256xf32> to vector<32x256xf32>
    %443 = arith.mulf %441, %442 : vector<32x256xf32>
    %444 = arith.truncf %443 : vector<32x256xf32> to vector<32x256xbf16>
    %c6_249 = arith.constant 6 : index
    %c0_250 = arith.constant 0 : index
    %c0_251 = arith.constant 0 : index
    %445 = vector.load %arg15[%c6_249, %c0_250, %c0_251] : memref<9x16x32xbf16, #tpu.memory_space<vmem>>, vector<1x16x32xbf16>
    %446 = vector.shape_cast %445 : vector<1x16x32xbf16> to vector<16x32xbf16>
    %cst_252 = arith.constant dense<0.000000e+00> : vector<16x256xf32>
    %447 = tpu.matmul %446, %444, %cst_252 {dimension_numbers = #tpu.dot_dimension_numbers<[1], [0], [0], [1], [0, 0, 1, 1], [], []>} : vector<16x32xbf16>, vector<32x256xbf16>, vector<16x256xf32> -> vector<16x256xf32>
    %448 = arith.addf %440, %447 : vector<16x256xf32>
    %449 = vector.extract_strided_slice %2 {offsets = [7, 0], sizes = [1, 256], strides = [1, 1]} : vector<9x256xf32> to vector<1x256xf32>
    %c240_i32_253 = arith.constant 240 : i32
    %450 = tpu.dynamic_rotate %165 by %c240_i32_253 dim 1 : vector<16x256xf32>, i32 -> vector<16x256xf32>
    %451 = vector.broadcast %449 : vector<1x256xf32> to vector<16x256xf32>
    %452 = arith.mulf %450, %451 : vector<16x256xf32>
    %453 = arith.truncf %452 : vector<16x256xf32> to vector<16x256xbf16>
    %c7_254 = arith.constant 7 : index
    %c0_255 = arith.constant 0 : index
    %c0_256 = arith.constant 0 : index
    %454 = vector.load %arg14[%c7_254, %c0_255, %c0_256] : memref<9x16x16xbf16, #tpu.memory_space<vmem>>, vector<1x16x16xbf16>
    %455 = vector.shape_cast %454 : vector<1x16x16xbf16> to vector<16x16xbf16>
    %cst_257 = arith.constant dense<0.000000e+00> : vector<16x256xf32>
    %456 = tpu.matmul %455, %453, %cst_257 {dimension_numbers = #tpu.dot_dimension_numbers<[1], [0], [0], [1], [0, 0, 1, 1], [], []>} : vector<16x16xbf16>, vector<16x256xbf16>, vector<16x256xf32> -> vector<16x256xf32>
    %457 = arith.addf %448, %456 : vector<16x256xf32>
    %c240_i32_258 = arith.constant 240 : i32
    %458 = tpu.dynamic_rotate %337 by %c240_i32_258 dim 1 : vector<32x256xf32>, i32 -> vector<32x256xf32>
    %459 = vector.broadcast %449 : vector<1x256xf32> to vector<32x256xf32>
    %460 = arith.mulf %458, %459 : vector<32x256xf32>
    %461 = arith.truncf %460 : vector<32x256xf32> to vector<32x256xbf16>
    %c7_259 = arith.constant 7 : index
    %c0_260 = arith.constant 0 : index
    %c0_261 = arith.constant 0 : index
    %462 = vector.load %arg15[%c7_259, %c0_260, %c0_261] : memref<9x16x32xbf16, #tpu.memory_space<vmem>>, vector<1x16x32xbf16>
    %463 = vector.shape_cast %462 : vector<1x16x32xbf16> to vector<16x32xbf16>
    %cst_262 = arith.constant dense<0.000000e+00> : vector<16x256xf32>
    %464 = tpu.matmul %463, %461, %cst_262 {dimension_numbers = #tpu.dot_dimension_numbers<[1], [0], [0], [1], [0, 0, 1, 1], [], []>} : vector<16x32xbf16>, vector<32x256xbf16>, vector<16x256xf32> -> vector<16x256xf32>
    %465 = arith.addf %457, %464 : vector<16x256xf32>
    %466 = vector.extract_strided_slice %2 {offsets = [8, 0], sizes = [1, 256], strides = [1, 1]} : vector<9x256xf32> to vector<1x256xf32>
    %c239_i32_263 = arith.constant 239 : i32
    %467 = tpu.dynamic_rotate %165 by %c239_i32_263 dim 1 : vector<16x256xf32>, i32 -> vector<16x256xf32>
    %468 = vector.broadcast %466 : vector<1x256xf32> to vector<16x256xf32>
    %469 = arith.mulf %467, %468 : vector<16x256xf32>
    %470 = arith.truncf %469 : vector<16x256xf32> to vector<16x256xbf16>
    %c8_264 = arith.constant 8 : index
    %c0_265 = arith.constant 0 : index
    %c0_266 = arith.constant 0 : index
    %471 = vector.load %arg14[%c8_264, %c0_265, %c0_266] : memref<9x16x16xbf16, #tpu.memory_space<vmem>>, vector<1x16x16xbf16>
    %472 = vector.shape_cast %471 : vector<1x16x16xbf16> to vector<16x16xbf16>
    %cst_267 = arith.constant dense<0.000000e+00> : vector<16x256xf32>
    %473 = tpu.matmul %472, %470, %cst_267 {dimension_numbers = #tpu.dot_dimension_numbers<[1], [0], [0], [1], [0, 0, 1, 1], [], []>} : vector<16x16xbf16>, vector<16x256xbf16>, vector<16x256xf32> -> vector<16x256xf32>
    %474 = arith.addf %465, %473 : vector<16x256xf32>
    %c239_i32_268 = arith.constant 239 : i32
    %475 = tpu.dynamic_rotate %337 by %c239_i32_268 dim 1 : vector<32x256xf32>, i32 -> vector<32x256xf32>
    %476 = vector.broadcast %466 : vector<1x256xf32> to vector<32x256xf32>
    %477 = arith.mulf %475, %476 : vector<32x256xf32>
    %478 = arith.truncf %477 : vector<32x256xf32> to vector<32x256xbf16>
    %c8_269 = arith.constant 8 : index
    %c0_270 = arith.constant 0 : index
    %c0_271 = arith.constant 0 : index
    %479 = vector.load %arg15[%c8_269, %c0_270, %c0_271] : memref<9x16x32xbf16, #tpu.memory_space<vmem>>, vector<1x16x32xbf16>
    %480 = vector.shape_cast %479 : vector<1x16x32xbf16> to vector<16x32xbf16>
    %cst_272 = arith.constant dense<0.000000e+00> : vector<16x256xf32>
    %481 = tpu.matmul %480, %478, %cst_272 {dimension_numbers = #tpu.dot_dimension_numbers<[1], [0], [0], [1], [0, 0, 1, 1], [], []>} : vector<16x32xbf16>, vector<32x256xbf16>, vector<16x256xf32> -> vector<16x256xf32>
    %482 = arith.addf %474, %481 : vector<16x256xf32>
    %c0_273 = arith.constant 0 : index
    %c0_274 = arith.constant 0 : index
    %483 = vector.load %arg16[%c0_273, %c0_274] : memref<16x1xf32, #tpu.memory_space<vmem>>, vector<16x1xf32>
    %484 = vector.broadcast %483 : vector<16x1xf32> to vector<16x256xf32>
    %485 = arith.addf %482, %484 : vector<16x256xf32>
    %cst_275 = arith.constant 0.000000e+00 : f32
    %486 = vector.broadcast %cst_275 : f32 to vector<16x256xf32>
    %487 = arith.maximumf %485, %486 : vector<16x256xf32>
    %488 = vector.extract_strided_slice %2 {offsets = [0, 0], sizes = [1, 256], strides = [1, 1]} : vector<9x256xf32> to vector<1x256xf32>
    %c17_i32_276 = arith.constant 17 : i32
    %489 = tpu.dynamic_rotate %487 by %c17_i32_276 dim 1 : vector<16x256xf32>, i32 -> vector<16x256xf32>
    %490 = vector.broadcast %488 : vector<1x256xf32> to vector<16x256xf32>
    %491 = arith.mulf %489, %490 : vector<16x256xf32>
    %492 = arith.truncf %491 : vector<16x256xf32> to vector<16x256xbf16>
    %c0_277 = arith.constant 0 : index
    %c0_278 = arith.constant 0 : index
    %c0_279 = arith.constant 0 : index
    %493 = vector.load %arg17[%c0_277, %c0_278, %c0_279] : memref<9x16x16xbf16, #tpu.memory_space<vmem>>, vector<1x16x16xbf16>
    %494 = vector.shape_cast %493 : vector<1x16x16xbf16> to vector<16x16xbf16>
    %cst_280 = arith.constant dense<0.000000e+00> : vector<16x256xf32>
    %495 = tpu.matmul %494, %492, %cst_280 {dimension_numbers = #tpu.dot_dimension_numbers<[1], [0], [0], [1], [0, 0, 1, 1], [], []>} : vector<16x16xbf16>, vector<16x256xbf16>, vector<16x256xf32> -> vector<16x256xf32>
    %496 = vector.extract_strided_slice %2 {offsets = [1, 0], sizes = [1, 256], strides = [1, 1]} : vector<9x256xf32> to vector<1x256xf32>
    %c16_i32_281 = arith.constant 16 : i32
    %497 = tpu.dynamic_rotate %487 by %c16_i32_281 dim 1 : vector<16x256xf32>, i32 -> vector<16x256xf32>
    %498 = vector.broadcast %496 : vector<1x256xf32> to vector<16x256xf32>
    %499 = arith.mulf %497, %498 : vector<16x256xf32>
    %500 = arith.truncf %499 : vector<16x256xf32> to vector<16x256xbf16>
    %c1_282 = arith.constant 1 : index
    %c0_283 = arith.constant 0 : index
    %c0_284 = arith.constant 0 : index
    %501 = vector.load %arg17[%c1_282, %c0_283, %c0_284] : memref<9x16x16xbf16, #tpu.memory_space<vmem>>, vector<1x16x16xbf16>
    %502 = vector.shape_cast %501 : vector<1x16x16xbf16> to vector<16x16xbf16>
    %cst_285 = arith.constant dense<0.000000e+00> : vector<16x256xf32>
    %503 = tpu.matmul %502, %500, %cst_285 {dimension_numbers = #tpu.dot_dimension_numbers<[1], [0], [0], [1], [0, 0, 1, 1], [], []>} : vector<16x16xbf16>, vector<16x256xbf16>, vector<16x256xf32> -> vector<16x256xf32>
    %504 = arith.addf %495, %503 : vector<16x256xf32>
    %505 = vector.extract_strided_slice %2 {offsets = [2, 0], sizes = [1, 256], strides = [1, 1]} : vector<9x256xf32> to vector<1x256xf32>
    %c15_i32_286 = arith.constant 15 : i32
    %506 = tpu.dynamic_rotate %487 by %c15_i32_286 dim 1 : vector<16x256xf32>, i32 -> vector<16x256xf32>
    %507 = vector.broadcast %505 : vector<1x256xf32> to vector<16x256xf32>
    %508 = arith.mulf %506, %507 : vector<16x256xf32>
    %509 = arith.truncf %508 : vector<16x256xf32> to vector<16x256xbf16>
    %c2_287 = arith.constant 2 : index
    %c0_288 = arith.constant 0 : index
    %c0_289 = arith.constant 0 : index
    %510 = vector.load %arg17[%c2_287, %c0_288, %c0_289] : memref<9x16x16xbf16, #tpu.memory_space<vmem>>, vector<1x16x16xbf16>
    %511 = vector.shape_cast %510 : vector<1x16x16xbf16> to vector<16x16xbf16>
    %cst_290 = arith.constant dense<0.000000e+00> : vector<16x256xf32>
    %512 = tpu.matmul %511, %509, %cst_290 {dimension_numbers = #tpu.dot_dimension_numbers<[1], [0], [0], [1], [0, 0, 1, 1], [], []>} : vector<16x16xbf16>, vector<16x256xbf16>, vector<16x256xf32> -> vector<16x256xf32>
    %513 = arith.addf %504, %512 : vector<16x256xf32>
    %514 = vector.extract_strided_slice %2 {offsets = [3, 0], sizes = [1, 256], strides = [1, 1]} : vector<9x256xf32> to vector<1x256xf32>
    %c1_i32_291 = arith.constant 1 : i32
    %515 = tpu.dynamic_rotate %487 by %c1_i32_291 dim 1 : vector<16x256xf32>, i32 -> vector<16x256xf32>
    %516 = vector.broadcast %514 : vector<1x256xf32> to vector<16x256xf32>
    %517 = arith.mulf %515, %516 : vector<16x256xf32>
    %518 = arith.truncf %517 : vector<16x256xf32> to vector<16x256xbf16>
    %c3_292 = arith.constant 3 : index
    %c0_293 = arith.constant 0 : index
    %c0_294 = arith.constant 0 : index
    %519 = vector.load %arg17[%c3_292, %c0_293, %c0_294] : memref<9x16x16xbf16, #tpu.memory_space<vmem>>, vector<1x16x16xbf16>
    %520 = vector.shape_cast %519 : vector<1x16x16xbf16> to vector<16x16xbf16>
    %cst_295 = arith.constant dense<0.000000e+00> : vector<16x256xf32>
    %521 = tpu.matmul %520, %518, %cst_295 {dimension_numbers = #tpu.dot_dimension_numbers<[1], [0], [0], [1], [0, 0, 1, 1], [], []>} : vector<16x16xbf16>, vector<16x256xbf16>, vector<16x256xf32> -> vector<16x256xf32>
    %522 = arith.addf %513, %521 : vector<16x256xf32>
    %523 = arith.truncf %487 : vector<16x256xf32> to vector<16x256xbf16>
    %c4_296 = arith.constant 4 : index
    %c0_297 = arith.constant 0 : index
    %c0_298 = arith.constant 0 : index
    %524 = vector.load %arg17[%c4_296, %c0_297, %c0_298] : memref<9x16x16xbf16, #tpu.memory_space<vmem>>, vector<1x16x16xbf16>
    %525 = vector.shape_cast %524 : vector<1x16x16xbf16> to vector<16x16xbf16>
    %cst_299 = arith.constant dense<0.000000e+00> : vector<16x256xf32>
    %526 = tpu.matmul %525, %523, %cst_299 {dimension_numbers = #tpu.dot_dimension_numbers<[1], [0], [0], [1], [0, 0, 1, 1], [], []>} : vector<16x16xbf16>, vector<16x256xbf16>, vector<16x256xf32> -> vector<16x256xf32>
    %527 = arith.addf %522, %526 : vector<16x256xf32>
    %528 = vector.extract_strided_slice %2 {offsets = [5, 0], sizes = [1, 256], strides = [1, 1]} : vector<9x256xf32> to vector<1x256xf32>
    %c255_i32_300 = arith.constant 255 : i32
    %529 = tpu.dynamic_rotate %487 by %c255_i32_300 dim 1 : vector<16x256xf32>, i32 -> vector<16x256xf32>
    %530 = vector.broadcast %528 : vector<1x256xf32> to vector<16x256xf32>
    %531 = arith.mulf %529, %530 : vector<16x256xf32>
    %532 = arith.truncf %531 : vector<16x256xf32> to vector<16x256xbf16>
    %c5_301 = arith.constant 5 : index
    %c0_302 = arith.constant 0 : index
    %c0_303 = arith.constant 0 : index
    %533 = vector.load %arg17[%c5_301, %c0_302, %c0_303] : memref<9x16x16xbf16, #tpu.memory_space<vmem>>, vector<1x16x16xbf16>
    %534 = vector.shape_cast %533 : vector<1x16x16xbf16> to vector<16x16xbf16>
    %cst_304 = arith.constant dense<0.000000e+00> : vector<16x256xf32>
    %535 = tpu.matmul %534, %532, %cst_304 {dimension_numbers = #tpu.dot_dimension_numbers<[1], [0], [0], [1], [0, 0, 1, 1], [], []>} : vector<16x16xbf16>, vector<16x256xbf16>, vector<16x256xf32> -> vector<16x256xf32>
    %536 = arith.addf %527, %535 : vector<16x256xf32>
    %537 = vector.extract_strided_slice %2 {offsets = [6, 0], sizes = [1, 256], strides = [1, 1]} : vector<9x256xf32> to vector<1x256xf32>
    %c241_i32_305 = arith.constant 241 : i32
    %538 = tpu.dynamic_rotate %487 by %c241_i32_305 dim 1 : vector<16x256xf32>, i32 -> vector<16x256xf32>
    %539 = vector.broadcast %537 : vector<1x256xf32> to vector<16x256xf32>
    %540 = arith.mulf %538, %539 : vector<16x256xf32>
    %541 = arith.truncf %540 : vector<16x256xf32> to vector<16x256xbf16>
    %c6_306 = arith.constant 6 : index
    %c0_307 = arith.constant 0 : index
    %c0_308 = arith.constant 0 : index
    %542 = vector.load %arg17[%c6_306, %c0_307, %c0_308] : memref<9x16x16xbf16, #tpu.memory_space<vmem>>, vector<1x16x16xbf16>
    %543 = vector.shape_cast %542 : vector<1x16x16xbf16> to vector<16x16xbf16>
    %cst_309 = arith.constant dense<0.000000e+00> : vector<16x256xf32>
    %544 = tpu.matmul %543, %541, %cst_309 {dimension_numbers = #tpu.dot_dimension_numbers<[1], [0], [0], [1], [0, 0, 1, 1], [], []>} : vector<16x16xbf16>, vector<16x256xbf16>, vector<16x256xf32> -> vector<16x256xf32>
    %545 = arith.addf %536, %544 : vector<16x256xf32>
    %546 = vector.extract_strided_slice %2 {offsets = [7, 0], sizes = [1, 256], strides = [1, 1]} : vector<9x256xf32> to vector<1x256xf32>
    %c240_i32_310 = arith.constant 240 : i32
    %547 = tpu.dynamic_rotate %487 by %c240_i32_310 dim 1 : vector<16x256xf32>, i32 -> vector<16x256xf32>
    %548 = vector.broadcast %546 : vector<1x256xf32> to vector<16x256xf32>
    %549 = arith.mulf %547, %548 : vector<16x256xf32>
    %550 = arith.truncf %549 : vector<16x256xf32> to vector<16x256xbf16>
    %c7_311 = arith.constant 7 : index
    %c0_312 = arith.constant 0 : index
    %c0_313 = arith.constant 0 : index
    %551 = vector.load %arg17[%c7_311, %c0_312, %c0_313] : memref<9x16x16xbf16, #tpu.memory_space<vmem>>, vector<1x16x16xbf16>
    %552 = vector.shape_cast %551 : vector<1x16x16xbf16> to vector<16x16xbf16>
    %cst_314 = arith.constant dense<0.000000e+00> : vector<16x256xf32>
    %553 = tpu.matmul %552, %550, %cst_314 {dimension_numbers = #tpu.dot_dimension_numbers<[1], [0], [0], [1], [0, 0, 1, 1], [], []>} : vector<16x16xbf16>, vector<16x256xbf16>, vector<16x256xf32> -> vector<16x256xf32>
    %554 = arith.addf %545, %553 : vector<16x256xf32>
    %555 = vector.extract_strided_slice %2 {offsets = [8, 0], sizes = [1, 256], strides = [1, 1]} : vector<9x256xf32> to vector<1x256xf32>
    %c239_i32_315 = arith.constant 239 : i32
    %556 = tpu.dynamic_rotate %487 by %c239_i32_315 dim 1 : vector<16x256xf32>, i32 -> vector<16x256xf32>
    %557 = vector.broadcast %555 : vector<1x256xf32> to vector<16x256xf32>
    %558 = arith.mulf %556, %557 : vector<16x256xf32>
    %559 = arith.truncf %558 : vector<16x256xf32> to vector<16x256xbf16>
    %c8_316 = arith.constant 8 : index
    %c0_317 = arith.constant 0 : index
    %c0_318 = arith.constant 0 : index
    %560 = vector.load %arg17[%c8_316, %c0_317, %c0_318] : memref<9x16x16xbf16, #tpu.memory_space<vmem>>, vector<1x16x16xbf16>
    %561 = vector.shape_cast %560 : vector<1x16x16xbf16> to vector<16x16xbf16>
    %cst_319 = arith.constant dense<0.000000e+00> : vector<16x256xf32>
    %562 = tpu.matmul %561, %559, %cst_319 {dimension_numbers = #tpu.dot_dimension_numbers<[1], [0], [0], [1], [0, 0, 1, 1], [], []>} : vector<16x16xbf16>, vector<16x256xbf16>, vector<16x256xf32> -> vector<16x256xf32>
    %563 = arith.addf %554, %562 : vector<16x256xf32>
    %c0_320 = arith.constant 0 : index
    %c0_321 = arith.constant 0 : index
    %564 = vector.load %arg18[%c0_320, %c0_321] : memref<16x1xf32, #tpu.memory_space<vmem>>, vector<16x1xf32>
    %565 = vector.broadcast %564 : vector<16x1xf32> to vector<16x256xf32>
    %566 = arith.addf %563, %565 : vector<16x256xf32>
    %cst_322 = arith.constant 0.000000e+00 : f32
    %567 = vector.broadcast %cst_322 : f32 to vector<16x256xf32>
    %568 = arith.maximumf %566, %567 : vector<16x256xf32>
    %c0_323 = arith.constant 0 : index
    %c0_324 = arith.constant 0 : index
    %569 = vector.load %arg19[%c0_323, %c0_324] : memref<4x16xbf16, #tpu.memory_space<vmem>>, vector<4x16xbf16>
    %570 = arith.truncf %568 : vector<16x256xf32> to vector<16x256xbf16>
    %cst_325 = arith.constant dense<0.000000e+00> : vector<4x256xf32>
    %571 = tpu.matmul %569, %570, %cst_325 {dimension_numbers = #tpu.dot_dimension_numbers<[1], [0], [0], [1], [0, 0, 1, 1], [], []>} : vector<4x16xbf16>, vector<16x256xbf16>, vector<4x256xf32> -> vector<4x256xf32>
    %c0_326 = arith.constant 0 : index
    %c0_327 = arith.constant 0 : index
    %572 = vector.load %arg20[%c0_326, %c0_327] : memref<4x1xf32, #tpu.memory_space<vmem>>, vector<4x1xf32>
    %573 = vector.broadcast %572 : vector<4x1xf32> to vector<4x256xf32>
    %574 = arith.addf %571, %573 : vector<4x256xf32>
    %c0_328 = arith.constant 0 : index
    %c0_329 = arith.constant 0 : index
    %c0_330 = arith.constant 0 : index
    %575 = vector.load %arg21[%c0_328, %c0_329, %c0_330] : memref<1x4x256xf32, #tpu.memory_space<vmem>>, vector<1x4x256xf32>
    %576 = vector.shape_cast %575 : vector<1x4x256xf32> to vector<4x256xf32>
    %577 = vector.shape_cast %574 : vector<4x256xf32> to vector<1x4x256xf32>
    tpu.vector_store %arg21[%c0_328, %c0_329, %c0_330], %577 {strides = array<i32>} : memref<1x4x256xf32, #tpu.memory_space<vmem>>, vector<1x4x256xf32>,
    return
  }
  func.func @transform_0(%arg0: i32) -> (i32, i32, i32) {
    %c0_i32 = arith.constant 0 : i32
    %c0_i32_0 = arith.constant 0 : i32
    %c0_i32_1 = arith.constant 0 : i32
    return %arg0, %c0_i32, %c0_i32_0 : i32, i32, i32
  }
  func.func @transform_1(%arg0: i32) -> (i32, i32) {
    %c0_i32 = arith.constant 0 : i32
    %c0_i32_0 = arith.constant 0 : i32
    %c0_i32_1 = arith.constant 0 : i32
    return %c0_i32, %c0_i32_0 : i32, i32
  }
  func.func @transform_2(%arg0: i32) -> (i32, i32) {
    %c0_i32 = arith.constant 0 : i32
    %c0_i32_0 = arith.constant 0 : i32
    %c0_i32_1 = arith.constant 0 : i32
    return %c0_i32, %c0_i32_0 : i32, i32
  }
  func.func @transform_3(%arg0: i32) -> (i32, i32) {
    %c0_i32 = arith.constant 0 : i32
    %c0_i32_0 = arith.constant 0 : i32
    %c0_i32_1 = arith.constant 0 : i32
    return %c0_i32, %c0_i32_0 : i32, i32
  }
  func.func @transform_4(%arg0: i32) -> (i32, i32) {
    %c0_i32 = arith.constant 0 : i32
    %c0_i32_0 = arith.constant 0 : i32
    %c0_i32_1 = arith.constant 0 : i32
    return %c0_i32, %c0_i32_0 : i32, i32
  }
  func.func @transform_5(%arg0: i32) -> (i32, i32, i32) {
    %c0_i32 = arith.constant 0 : i32
    %c0_i32_0 = arith.constant 0 : i32
    %c0_i32_1 = arith.constant 0 : i32
    %c0_i32_2 = arith.constant 0 : i32
    return %c0_i32, %c0_i32_0, %c0_i32_1 : i32, i32, i32
  }
  func.func @transform_6(%arg0: i32) -> (i32, i32) {
    %c0_i32 = arith.constant 0 : i32
    %c0_i32_0 = arith.constant 0 : i32
    %c0_i32_1 = arith.constant 0 : i32
    return %c0_i32, %c0_i32_0 : i32, i32
  }
  func.func @transform_7(%arg0: i32) -> (i32, i32, i32) {
    %c0_i32 = arith.constant 0 : i32
    %c0_i32_0 = arith.constant 0 : i32
    %c0_i32_1 = arith.constant 0 : i32
    %c0_i32_2 = arith.constant 0 : i32
    return %c0_i32, %c0_i32_0, %c0_i32_1 : i32, i32, i32
  }
  func.func @transform_8(%arg0: i32) -> (i32, i32) {
    %c0_i32 = arith.constant 0 : i32
    %c0_i32_0 = arith.constant 0 : i32
    %c0_i32_1 = arith.constant 0 : i32
    return %c0_i32, %c0_i32_0 : i32, i32
  }
  func.func @transform_9(%arg0: i32) -> (i32, i32, i32) {
    %c0_i32 = arith.constant 0 : i32
    %c0_i32_0 = arith.constant 0 : i32
    %c0_i32_1 = arith.constant 0 : i32
    %c0_i32_2 = arith.constant 0 : i32
    return %c0_i32, %c0_i32_0, %c0_i32_1 : i32, i32, i32
  }
  func.func @transform_10(%arg0: i32) -> (i32, i32) {
    %c0_i32 = arith.constant 0 : i32
    %c0_i32_0 = arith.constant 0 : i32
    %c0_i32_1 = arith.constant 0 : i32
    return %c0_i32, %c0_i32_0 : i32, i32
  }
  func.func @transform_11(%arg0: i32) -> (i32, i32, i32) {
    %c0_i32 = arith.constant 0 : i32
    %c0_i32_0 = arith.constant 0 : i32
    %c0_i32_1 = arith.constant 0 : i32
    %c0_i32_2 = arith.constant 0 : i32
    return %c0_i32, %c0_i32_0, %c0_i32_1 : i32, i32, i32
  }
  func.func @transform_12(%arg0: i32) -> (i32, i32) {
    %c0_i32 = arith.constant 0 : i32
    %c0_i32_0 = arith.constant 0 : i32
    %c0_i32_1 = arith.constant 0 : i32
    return %c0_i32, %c0_i32_0 : i32, i32
  }
  func.func @transform_13(%arg0: i32) -> (i32, i32, i32) {
    %c0_i32 = arith.constant 0 : i32
    %c0_i32_0 = arith.constant 0 : i32
    %c0_i32_1 = arith.constant 0 : i32
    %c0_i32_2 = arith.constant 0 : i32
    return %c0_i32, %c0_i32_0, %c0_i32_1 : i32, i32, i32
  }
  func.func @transform_14(%arg0: i32) -> (i32, i32, i32) {
    %c0_i32 = arith.constant 0 : i32
    %c0_i32_0 = arith.constant 0 : i32
    %c0_i32_1 = arith.constant 0 : i32
    %c0_i32_2 = arith.constant 0 : i32
    return %c0_i32, %c0_i32_0, %c0_i32_1 : i32, i32, i32
  }
  func.func @transform_15(%arg0: i32) -> (i32, i32) {
    %c0_i32 = arith.constant 0 : i32
    %c0_i32_0 = arith.constant 0 : i32
    %c0_i32_1 = arith.constant 0 : i32
    return %c0_i32, %c0_i32_0 : i32, i32
  }
  func.func @transform_16(%arg0: i32) -> (i32, i32, i32) {
    %c0_i32 = arith.constant 0 : i32
    %c0_i32_0 = arith.constant 0 : i32
    %c0_i32_1 = arith.constant 0 : i32
    %c0_i32_2 = arith.constant 0 : i32
    return %c0_i32, %c0_i32_0, %c0_i32_1 : i32, i32, i32
  }
  func.func @transform_17(%arg0: i32) -> (i32, i32) {
    %c0_i32 = arith.constant 0 : i32
    %c0_i32_0 = arith.constant 0 : i32
    %c0_i32_1 = arith.constant 0 : i32
    return %c0_i32, %c0_i32_0 : i32, i32
  }
  func.func @transform_18(%arg0: i32) -> (i32, i32) {
    %c0_i32 = arith.constant 0 : i32
    %c0_i32_0 = arith.constant 0 : i32
    %c0_i32_1 = arith.constant 0 : i32
    return %c0_i32, %c0_i32_0 : i32, i32
  }
  func.func @transform_19(%arg0: i32) -> (i32, i32) {
    %c0_i32 = arith.constant 0 : i32
    %c0_i32_0 = arith.constant 0 : i32
    %c0_i32_1 = arith.constant 0 : i32
    return %c0_i32, %c0_i32_0 : i32, i32
  }
  func.func @transform_20(%arg0: i32) -> (i32, i32, i32) {
    %c0_i32 = arith.constant 0 : i32
    %c0_i32_0 = arith.constant 0 : i32
    %c0_i32_1 = arith.constant 0 : i32
    return %arg0, %c0_i32, %c0_i32_0 : i32, i32, i32
  }
}

</mosaic_0001>

<bundles_post_ra>
// kernel: combined_model_forward.1
= control target key start
LH: loop header
LB: loop body
LE: loop exit
PB: predicated region body
PF: predicated region fallthrough
CT: control target
= control target key end

     0   :  { %s10427_s0 = inlined_call_operand.vmem [shape: f32[2,4,256], index: 0, kind: input, shape index: {}]   ;;  %s10428_s1 = inlined_call_operand.vmem [shape: f32[9,256], index: 1, kind: input, shape index: {}]   ;;  %s10429_s2 = inlined_call_operand.vmem [shape: f32[9,256], index: 2, kind: input, shape index: {}]   ;;  %s10430_s3 = inlined_call_operand.vmem [shape: bf16[256,256], index: 3, kind: input, shape index: {}]   ;;  %s10431_s4 = inlined_call_operand.vmem [shape: bf16[256,256], index: 4, kind: input, shape index: {}]   ;;  %s10432_s5 = inlined_call_operand.vmem [shape: bf16[9,16,4], index: 5, kind: input, shape index: {}]   ;;  %s10433_s6 = inlined_call_operand.vmem [shape: f32[16,1], index: 6, kind: input, shape index: {}]   ;;  %s10434_s7 = inlined_call_operand.vmem [shape: bf16[9,16,16], index: 7, kind: input, shape index: {}]   ;;  %s10435_s8 = inlined_call_operand.vmem [shape: f32[16,1], index: 8, kind: input, shape index: {}]   ;;  %s10436_s9 = inlined_call_operand.vmem [shape: bf16[9,32,16], index: 9, kind: input, shape index: {}]   ;;  %s10437_s10 = inlined_call_operand.vmem [shape: f32[32,1], index: 10, kind: input, shape index: {}]   ;;  %s10438_s11 = inlined_call_operand.vmem [shape: bf16[9,32,32], index: 11, kind: input, shape index: {}]   ;;  %s10439_s12 = inlined_call_operand.vmem [shape: f32[32,1], index: 12, kind: input, shape index: {}]   ;;  %s10440_s13 = inlined_call_operand.vmem [shape: bf16[9,16,16], index: 13, kind: input, shape index: {}]   ;;  %s10441_s14 = inlined_call_operand.vmem [shape: bf16[9,16,32], index: 14, kind: input, shape index: {}]   ;;  %s10442_s15 = inlined_call_operand.vmem [shape: f32[16,1], index: 15, kind: input, shape index: {}]   ;;  %s10443_s16 = inlined_call_operand.vmem [shape: bf16[9,16,16], index: 16, kind: input, shape index: {}]   ;;  %s10444_s17 = inlined_call_operand.vmem [shape: f32[16,1], index: 17, kind: input, shape index: {}]   ;;  %s10445_s18 = inlined_call_operand.vmem [shape: bf16[4,16], index: 18, kind: input, shape index: {}]   ;;  %s10446_s19 = inlined_call_operand.vmem [shape: f32[4,1], index: 19, kind: input, shape index: {}]   ;;  %s10447_s20 = inlined_call_operand.vmem [shape: f32[2,4,256], index: 20, kind: output, shape index: {}]  }
   0x1   :  { %10487 = sst [smem:[#allocation11_spill]] %s10427_s0 }
   0x2   :  { %10488 = sst [smem:[#allocation12_spill]] %s10428_s1  ;;  %s7903_s1 = smov 0  }
   0x3   :  { %10489 = sst [smem:[#allocation13_spill]] %s10429_s2 }
   0x4   :  { %10490 = sst [smem:[#allocation14_spill]] %s10430_s3 }
   0x5   :  { %10491 = sst [smem:[#allocation15_spill]] %s10431_s4 }
   0x6   :  { %10492 = sst [smem:[#allocation16_spill]] %s10432_s5 }
   0x7   :  { %10493 = sst [smem:[#allocation17_spill]] %s10433_s6 }
   0x8   :  { %10494 = sst [smem:[#allocation18_spill]] %s10434_s7 }
   0x9   :  { %10495 = sst [smem:[#allocation19_spill]] %s10435_s8 }
   0xa   :  { %10496 = sst [smem:[#allocation20_spill]] %s10436_s9 }
   0xb   :  { %10497 = sst [smem:[#allocation21_spill]] %s10437_s10 }
   0xc   :  { %10498 = sst [smem:[#allocation22_spill]] %s10447_s20 }
   0xd LB: > { %10499 = sst [smem:[#allocation2_spill]] %s7787_s1  ;;  %s6883_s22 = sadd.s32 4294967295, %s7787_s1   ;;  %s7787_s1 = sphi %s7903_s1, %s30_s1  }
   0xe   : > { %p6887_p0 = scmp.ge.s32.totalorder %s7787_s1, 1  ;;  %p562_p1 = scmp.lt.s32.totalorder %s7787_s1, 3 }
  0x10   : > { %p563_p2 = pnand %p6887_p0, %p562_p1 }
  0x12   : > { %566 = sbr.rel (%p563_p2) target bundleno = 3763 (0xeb3), region = 100 }
  0x19   : > { %p620_p3 = scmp.lt.s32.totalorder %s6883_s22, 1  ;;  %s10500_s25 = sld [smem:[#allocation11_spill]]  ;;  %v10471_v2 = vmov 0   ;;  %v647_v5 = vlaneseq  ;;  %vm697_vm3 = vcmask 1041408   ;;  %vm693_vm4 = vcmask 31744  }
  0x1a   : > { %s10465_s26 = smov 16   ;;  %s10463_s27 = smov 17   ;;  %736 = vmatprep.mubr.bf16.mxu0 %v10471_v2  ;;  %7589 = vset.pattern.permute.xlu0 %v10471_v2  ;;  %vm1434_vm10 = vcmask 130048   ;;  %vm3399_vm11 = vcmask 261120  }
  0x1b   : > { %s10543_s22 = smov (!%p620_p3, %s6883_s22), 1  ;;  %7590 = vset.pattern.permute.xlu1 %v10471_v2  ;;  %1470 = vmatprep.mubr.bf16.mxu1 %v10471_v2  ;;  %s10461_s28 = smov 15   ;;  %v7967_v6 = vshrl.u32 %v647_v5, 7  ;;  %v7969_v7 = vand.u32 127, %v647_v5 }
  0x1c   : > { %s10452_s23 = sshll.u32 %s10543_s22, 3  ;;  %s10459_s4 = smov 1  }
  0x1d   : > { %s10467_s29 = smov 127   ;;  %s10457_s30 = smov 113   ;;  %v7972_v8 = vsub.s32 1, %v7967_v6  ;;  %v7975_v9 = vsub.s32 0, %v7967_v6  ;;  %v7988_v14 = vsub.s32 2, %v7967_v6  ;;  %vm670_vm0 = vcmp.lt.s32.totalorder %v7969_v7, 16 }
  0x1e   : > { %s10455_s0 = smov 112   ;;  %s10453_s21 = smov 111   ;;  %vm649_vm1 = vcmp.lt.s32.totalorder %v7969_v7, 17  ;;  %vm808_vm2 = vcmp.lt.s32.totalorder %v7969_v7, 15  ;;  %v8040_v43 = vsub.s32 3, %v7967_v6  ;;  %vm891_vm5 = vcmp.lt.s32.totalorder %v7969_v7, 1 }
  0x1f   : > { %s624_s3 = scalar_lea.vmem %s10500_s25, %s10452_s23  ;;  %s10501_s6 = sld [smem:[#allocation17_spill]]  ;;  %v8077_v62 = vsub.s32 5, %v7967_v6  ;;  %vm1040_vm6 = vcmp.lt.s32.totalorder %v7969_v7, 127  ;;  %vm1123_vm7 = vcmp.lt.s32.totalorder %v7969_v7, 113  ;;  %vm1206_vm8 = vcmp.lt.s32.totalorder %v7969_v7, 112 }
  0x20   : > { %v7919_v0 = vld [vmem:[%s624_s3] sm:$0xff]  ;;  %s10502_s2 = sld [smem:[#allocation12_spill]]  ;;  %s10503_s5 = sld [smem:[#allocation16_spill]]  ;;  %vm1289_vm9 = vcmp.lt.s32.totalorder %v7969_v7, 111 }
  0x21   : > { %666 = vrot.lane.b32.xlu0 %v7919_v0, %s10465_s26  ;;  %v7925_v1 = vcombine.high %v7919_v0, %v7919_v0  ;;  %643 = vrot.lane.b32.xlu1 %v7919_v0, %s10463_s27  ;;  %v970_v5 = vpack.c.bf16 %v7919_v0, %v7919_v0  ;;  %s10510_s25 = smov 112   ;;  %s10511_s3 = smov 111  }
  0x22   : > { %s10512_s8 = sld [smem:[#allocation19_spill]]  ;;  %s10513_s7 = sld [smem:[#allocation18_spill]] }
  0x23   : > { %v971_v61 = vpack.c.bf16 %v7925_v1, %v7925_v1  ;;  %s10517_s23 = smov 16   ;;  %s10518_s24 = smov 17  }
  0x24   : > { %s10523_s10 = sld [smem:[#allocation21_spill]]  ;;  %s10526_s9 = sld [smem:[#allocation20_spill]] }
  0x25   : > { %668 = vrot.lane.b32.xlu0 %v7925_v1, %s10465_s26  ;;  %645 = vrot.lane.b32.xlu1 %v7925_v1, %s10463_s27  ;;  %v1368_v3 = vld [vmem:[%s10501_s6] sm:$0xff]  ;;  %v1369_v4 = vld [vmem:[%s10501_s6 + $0x8] sm:$0xff]  ;;  %s10524_s1 = sld [smem:[#allocation13_spill]]  ;;  %s10540_s6 = sld [smem:[#allocation22_spill]] }
  0x26   : > { %v7980_v10 = vld [vmem:[%s10502_s2 + $0x8] sm:$0xff]  ;;  %v7985_v11 = vld [vmem:[%s10502_s2] sm:$0xff]  ;;  %v7604_v59 = vld [vmem:[%s10503_s5 + $0x10] sm:$0xff]  }
  0x27   : > { %v7994_v15 = vrot.slane %v7980_v10, %v7972_v8  ;;  %v7998_v16 = vrot.slane %v7985_v11, %v7972_v8  ;;  %v8002_v17 = vrot.slane %v7985_v11, %v7975_v9  ;;  %v8006_v18 = vrot.slane %v7980_v10, %v7975_v9  ;;  %v7602_v38 = vld [vmem:[%s10503_s5 + $0x8] sm:$0xff]   ;;  %v7603_v52 = vld [vmem:[%s10503_s5] sm:$0xff]  }
  0x28   : > { %v8011_v21 = vrot.slane %v7980_v10, %v7988_v14  ;;  %v8037_v41 = vrot.slane %v7985_v11, %v7988_v14  ;;  %v8051_v48 = vrot.slane %v7980_v10, %v8040_v43  ;;  %v8062_v54 = vrot.slane %v7985_v11, %v8040_v43 }
  0x29   : > { %806 = vrot.lane.b32.xlu1 %v7925_v1, %s10461_s28  ;;  %804 = vrot.lane.b32.xlu0 %v7919_v0, %s10461_s28 }
  0x2b   : > { %s10525_s20 = smov %s10524_s1 }
  0x2d   : > { %889 = vrot.lane.b32.xlu1 %v7925_v1, %s10459_s4  ;;  %887 = vrot.lane.b32.xlu0 %v7919_v0, %s10459_s4 }
  0x31   : > { %1038 = vrot.lane.b32.xlu1 %v7925_v1, %s10467_s29  ;;  %1036 = vrot.lane.b32.xlu0 %v7919_v0, %s10467_s29 }
  0x35   : > { %1121 = vrot.lane.b32.xlu1 %v7925_v1, %s10457_s30  ;;  %1119 = vrot.lane.b32.xlu0 %v7919_v0, %s10457_s30 }
  0x39   : > { %1204 = vrot.lane.b32.xlu1 %v7925_v1, %s10455_s0  ;;  %1202 = vrot.lane.b32.xlu0 %v7919_v0, %s10455_s0  ;;  %s10521_s0 = smov 127  }
  0x3d   : > { %1287 = vrot.lane.b32.xlu1 %v7925_v1, %s10453_s21  ;;  %1285 = vrot.lane.b32.xlu0 %v7919_v0, %s10453_s21  ;;  %s10522_s21 = smov 113  }
  0x41   : > { %1372 = vperm.xlu0 %7589, %v1368_v3   ;;  %1377 = vperm.xlu1 %7590, %v1369_v4   ;;  %v8085_v4 = vrot.slane %v7980_v10, %v8077_v62 }
  0x43   : > { %10504 = vst [vmem:[#allocation3_spill] sm:$0xff] %v8085_v4 }
  0x93   : > { %v667_v12 = vpop.permute.xlu0 %666  ;;  %v644_v13 = vpop.permute.xlu1 %643 }
  0x97   : > { %v669_v19 = vpop.permute.xlu0 %668  ;;  %v646_v20 = vpop.permute.xlu1 %645 }
  0x98   : > { %v672_v22 = vsel %vm670_vm0, %v669_v19, %v667_v12  ;;  %v671_v23 = vsel %vm670_vm0, %v667_v12, %v669_v19  ;;  %v650_v24 = vsel %vm649_vm1, %v644_v13, %v646_v20  ;;  %v651_v25 = vsel %vm649_vm1, %v646_v20, %v644_v13  ;;  %v7605_v13 = vld [vmem:[%s10503_s5 + $0x18] sm:$0xff]  }
  0x99   : > { %v682_v26 = vmul.f32 %v7994_v15, %v671_v23  ;;  %v681_v27 = vmul.f32 %v7998_v16, %v672_v22  ;;  %v660_v28 = vmul.f32 %v8002_v17, %v651_v25  ;;  %v661_v29 = vmul.f32 %v8006_v18, %v650_v24 }
  0x9a   : > { %v984_v19 = vsel %vm697_vm3, %v970_v5, 0  ;;  %v8098_v20 = vrot.slane %v7985_v11, %v8077_v62  ;;  %v8101_v23 = vsub.s32 6, %v7967_v6 }
  0x9b   : > { %v684_v30 = vpack.c.bf16 %v682_v26, %v682_v26  ;;  %v683_v31 = vpack.c.bf16 %v681_v27, %v681_v27  ;;  %v662_v32 = vpack.c.bf16 %v660_v28, %v660_v28  ;;  %v663_v33 = vpack.c.bf16 %v661_v29, %v661_v29  ;;  %v807_v34 = vpop.permute.xlu1 %806  ;;  %v805_v35 = vpop.permute.xlu0 %804 }
  0x9c   : > { %v809_v36 = vsel %vm808_vm2, %v805_v35, %v807_v34  ;;  %v810_v44 = vsel %vm808_vm2, %v807_v34, %v805_v35  ;;  %10505 = vst [vmem:[#allocation4_spill] sm:$0xff] %v8098_v20  ;;  %v8112_v27 = vrot.slane %v7980_v10, %v8101_v23  ;;  %v8126_v35 = vsub.s32 7, %v7967_v6 }
  0x9d   : > { %6895 = vmatprep.subr.msk.bf16.mxu0 %vm697_vm3, %v684_v30  ;;  %v699_v37 = vsel %vm697_vm3, %v683_v31, 0  ;;  %v820_v39 = vmul.f32 %v8011_v21, %v809_v36  ;;  %v756_v40 = vsel %vm697_vm3, %v662_v32, 0  ;;  %v819_v47 = vmul.f32 %v8037_v41, %v810_v44  ;;  %v7606_v31 = vld [vmem:[%s10503_s5 + $0x20] sm:$0xff]  }
  0x9e   : > { %705 = vmatpush1.bf16.msra.mxu0 %v699_v37  ;;  %10506 = vst [vmem:[#allocation5_spill] sm:$0xff] %v8112_v27  ;;  %v8137_v6 = vrot.slane %v7980_v10, %v8126_v35 }
  0x9f   : > { %6898 = vmatprep.subr.msk.bf16.mxu0 %vm697_vm3, %v663_v33  ;;  %v822_v42 = vpack.c.bf16 %v820_v39, %v820_v39  ;;  %v890_v45 = vpop.permute.xlu1 %889  ;;  %v888_v46 = vpop.permute.xlu0 %887  ;;  %v821_v50 = vpack.c.bf16 %v819_v47, %v819_v47  ;;  %v8123_v33 = vrot.slane %v7985_v11, %v8101_v23  ;;  %v8148_v47 = vrot.slane %v7985_v11, %v8126_v35  ;;  %v8160_v11 = vld [vmem:[%s10502_s2 + $0x18] ss:$0 sm:$0xff] }
  0xa0   : > { %v892_v49 = vsel %vm891_vm5, %v888_v46, %v890_v45  ;;  %v893_v56 = vsel %vm891_vm5, %v890_v45, %v888_v46  ;;  %10508 = vst [vmem:[#allocation7_spill] sm:$0xff] %v8137_v6  ;;  %v7607_v45 = vld [vmem:[%s10503_s5 + $0x28] sm:$0xff]  }
  0xa1   : > { %6896 = vmatmul.mubr.msk.bf16.vlgmr.msra.gmra.mrb[0].mxu0 %vm693_vm4, %v7602_v38  ;;  %v903_v51 = vmul.f32 %v8051_v48, %v892_v49  ;;  %v835_v53 = vsel %vm697_vm3, %v821_v50, 0  ;;  %v902_v57 = vmul.f32 %v8062_v54, %v893_v56  ;;  %10507 = vst [vmem:[#allocation6_spill] sm:$0xff] %v8123_v33  ;;  %10509 = vst [vmem:[#allocation8_spill] sm:$0xff] %v8148_v47 }
  0xa2   : > { %762 = vmatpush1.bf16.msra.mxu0 %v756_v40  ;;  %793 = vmatprep.mubr.bf16.mxu0 %v10471_v2 }
  0xa3   : > { %6903 = vmatprep.subr.msk.bf16.mxu0 %vm697_vm3, %v822_v42  ;;  %v905_v55 = vpack.c.bf16 %v903_v51, %v903_v51  ;;  %v904_v58 = vpack.c.bf16 %v902_v57, %v902_v57  ;;  %v1039_v63 = vpop.permute.xlu1 %1038  ;;  %v1037_v3 = vpop.permute.xlu0 %1036  ;;  %v7608_v57 = vld [vmem:[%s10503_s5 + $0x30] sm:$0xff]  }
  0xa4   : > { %v1042_v1 = vsel %vm1040_vm6, %v1039_v63, %v1037_v3  ;;  %v1041_v24 = vsel %vm1040_vm6, %v1037_v3, %v1039_v63 }
  0xa5   : > { %v918_v60 = vsel %vm697_vm3, %v904_v58, 0  ;;  %v1052_v12 = vmul.f32 %v8085_v4, %v1042_v1  ;;  %v1051_v26 = vmul.f32 %v8098_v20, %v1041_v24  ;;  %v7609_v1 = vld [vmem:[%s10503_s5 + $0x38] sm:$0xff]  }
  0xa7   : > { %v1054_v22 = vpack.c.bf16 %v1052_v12, %v1052_v12  ;;  %v1122_v0 = vpop.permute.xlu1 %1121  ;;  %v1120_v25 = vpop.permute.xlu0 %1119  ;;  %v1053_v29 = vpack.c.bf16 %v1051_v26, %v1051_v26  ;;  %v7610_v12 = vld [vmem:[%s10503_s5 + $0x40] sm:$0xff]   ;;  %s10539_s5 = sshll.u32 %s10543_s22, 3 }
  0xa8   : > { %v1125_v28 = vsel %vm1123_vm7, %v1122_v0, %v1120_v25  ;;  %v1124_v36 = vsel %vm1123_vm7, %v1120_v25, %v1122_v0 }
  0xa9   : > { %v1135_v30 = vmul.f32 %v8112_v27, %v1125_v28  ;;  %v1067_v32 = vsel %vm697_vm3, %v1053_v29, 0  ;;  %v1134_v39 = vmul.f32 %v8123_v33, %v1124_v36 }
  0xab   : > { %v1137_v34 = vpack.c.bf16 %v1135_v30, %v1135_v30  ;;  %v1205_v37 = vpop.permute.xlu1 %1204  ;;  %v1203_v38 = vpop.permute.xlu0 %1202  ;;  %v1136_v42 = vpack.c.bf16 %v1134_v39, %v1134_v39  ;;  %v2048_v39 = vld [vmem:[%s10512_s8] sm:$0xff] }
  0xac   : > { %v1208_v40 = vsel %vm1206_vm8, %v1205_v37, %v1203_v38  ;;  %v1207_v10 = vsel %vm1206_vm8, %v1203_v38, %v1205_v37 }
  0xad   : > { %6899 = vmatmul.mubr.msk.bf16.vlgmr.msra.gmra.mrb[0].mxu0 %vm693_vm4, %v7603_v52  ;;  %v1218_v44 = vmul.f32 %v8137_v6, %v1208_v40  ;;  %v1150_v46 = vsel %vm697_vm3, %v1136_v42, 0  ;;  %v1217_v52 = vmul.f32 %v8148_v47, %v1207_v10  ;;  %v2049_v40 = vld [vmem:[%s10512_s8 + $0x8] sm:$0xff] }
  0xae   : > { %841 = vmatpush1.bf16.msra.mxu0 %v835_v53  ;;  %872 = vmatprep.mubr.bf16.mxu0 %v10471_v2 }
  0xaf   : > { %6908 = vmatprep.subr.msk.bf16.mxu0 %vm697_vm3, %v905_v55  ;;  %v1220_v49 = vpack.c.bf16 %v1218_v44, %v1218_v44  ;;  %v1288_v50 = vpop.permute.xlu1 %1287  ;;  %v1286_v51 = vpop.permute.xlu0 %1285  ;;  %v1219_v55 = vpack.c.bf16 %v1217_v52, %v1217_v52 }
  0xb0   : > { %v1291_v53 = vsel %vm1289_vm9, %v1288_v50, %v1286_v51 }
  0xb1   : > { %v1301_v56 = vmul.f32 %v8160_v11, %v1291_v53  ;;  %v1233_v58 = vsel %vm697_vm3, %v1219_v55, 0 }
  0xb9   : > { %6904 = vmatmul.mubr.msk.bf16.vlgmr.msra.gmra.mrb[0].mxu0 %vm693_vm4, %v7604_v59  ;;  %v1303_v59 = vpack.c.bf16 %v1301_v56, %v1301_v56 }
  0xba   : > { %924 = vmatpush1.bf16.msra.mxu0 %v918_v60  ;;  %955 = vmatprep.mubr.bf16.mxu0 %v10471_v2  ;;  %v8172_v60 = vld [vmem:[%s10502_s2 + $0x10] ss:$0 sm:$0xff] }
  0xbb   : > { %6913 = vmatprep.subr.msk.bf16.mxu0 %vm697_vm3, %v971_v61  ;;  %v1290_v61 = vsel %vm1289_vm9, %v1286_v51, %v1288_v50 }
  0xbc   : > { %v1300_v63 = vmul.f32 %v8172_v60, %v1290_v61 }
  0xbe   : > { %v1302_v3 = vpack.c.bf16 %v1300_v63, %v1300_v63 }
  0xc0   : > { %v1316_v5 = vsel %vm697_vm3, %v1302_v3, 0  ;;  %v7611_v3 = vld [vmem:[%s10513_s7 + $0x8] sm:$0xff]  }
  0xc5   : > { %6909 = vmatmul.mubr.msk.bf16.vlgmr.msra.gmra.mrb[0].mxu0 %vm693_vm4, %v7605_v13  ;;  %v1373_v13 = vpop.permute.xlu0 %1372 }
  0xc6   : > { %990 = vmatpush1.bf16.msra.mxu0 %v984_v19  ;;  %1021 = vmatprep.mubr.bf16.mxu0 %v10471_v2 }
  0xc7   : > { %6918 = vmatprep.subr.msk.bf16.mxu0 %vm697_vm3, %v1054_v22  ;;  %v1378_v22 = vpop.permute.xlu1 %1377 }
  0xd1   : > { %6914 = vmatmul.mubr.msk.bf16.vlgmr.msra.gmra.mrb[0].mxu0 %vm693_vm4, %v7606_v31 }
  0xd2   : > { %1073 = vmatpush1.bf16.msra.mxu0 %v1067_v32  ;;  %1104 = vmatprep.mubr.bf16.mxu0 %v10471_v2 }
  0xd3   : > { %6923 = vmatprep.subr.msk.bf16.mxu0 %vm697_vm3, %v1137_v34 }
  0xdd   : > { %6919 = vmatmul.mubr.msk.bf16.vlgmr.msra.gmra.mrb[0].mxu0 %vm693_vm4, %v7607_v45 }
  0xde   : > { %1156 = vmatpush1.bf16.msra.mxu0 %v1150_v46  ;;  %1187 = vmatprep.mubr.bf16.mxu0 %v10471_v2 }
  0xdf   : > { %6928 = vmatprep.subr.msk.bf16.mxu0 %vm697_vm3, %v1220_v49 }
  0xe9   : > { %6924 = vmatmul.mubr.msk.bf16.vlgmr.msra.gmra.mrb[0].mxu0 %vm693_vm4, %v7608_v57 }
  0xea   : > { %1239 = vmatpush1.bf16.msra.mxu0 %v1233_v58  ;;  %1270 = vmatprep.mubr.bf16.mxu0 %v10471_v2 }
  0xeb   : > { %6935 = vmatprep.subr.msk.bf16.mxu0 %vm697_vm3, %v1303_v59 }
  0xf5   : > { %6929 = vmatmul.mubr.msk.bf16.vlgmr.msra.gmra.mrb[0].mxu0 %vm693_vm4, %v7609_v1 }
  0xf6   : > { %1322 = vmatpush1.bf16.msra.mxu0 %v1316_v5  ;;  %1353 = vmatprep.mubr.bf16.mxu0 %v10471_v2 }
 0x101   : > { %6936 = vmatmul.mubr.msk.bf16.vlgmr.msra.gmra.mrb[0].mxu0 %vm693_vm4, %v7610_v12 }
 0x1d4   : > { %v1355_v19 = vpop.f32.mrb[0].mxu0 }
 0x1d5   : > { %v1380_v24 = vadd.f32 %v1373_v13, %v1355_v19  ;;  %v1357_v0 = vpop.f32.mrb[1].mxu0 }
 0x1d6   : > { %v1381_v25 = vadd.f32 %v1373_v13, %v1357_v0  ;;  %v1359_v26 = vpop.f32.mrb[2].mxu0 }
 0x1d7   : > { %v8190_v28 = vmax.f32 %v1380_v24, 0.0  ;;  %v1382_v29 = vadd.f32 %v1378_v22, %v1359_v26  ;;  %v1361_v30 = vpop.f32.mrb[3].mxu0 }
 0x1d8   : > { %v1383_v31 = vadd.f32 %v1378_v22, %v1361_v30  ;;  %v8196_v34 = vmax.f32 %v1381_v25, 0.0 }
 0x1d9   : > { %v8192_v32 = vmax.f32 %v1382_v29, 0.0  ;;  %1408 = vrot.lane.b32.xlu1 %v8190_v28, %s10465_s26 }
 0x1da   : > { %v8198_v36 = vmax.f32 %v1383_v31, 0.0 }
 0x1db   : > { %1410 = vrot.lane.b32.xlu0 %v8192_v32, %s10465_s26  ;;  %v1684_v37 = vpack.c.bf16 %v8192_v32, %v8190_v28 }
 0x1dc   : > { %v1685_v38 = vpack.c.bf16 %v8198_v36, %v8196_v34 }
 0x1dd   : > { %1412 = vrot.lane.b32.xlu1 %v8196_v34, %s10465_s26 }
 0x1df   : > { %1414 = vrot.lane.b32.xlu0 %v8198_v36, %s10465_s26 }
 0x1e1   : > { %1388 = vrot.lane.b32.xlu1 %v8190_v28, %s10463_s27 }
 0x1e3   : > { %1390 = vrot.lane.b32.xlu0 %v8192_v32, %s10463_s27 }
 0x1e5   : > { %1392 = vrot.lane.b32.xlu1 %v8196_v34, %s10463_s27 }
 0x1e7   : > { %1394 = vrot.lane.b32.xlu0 %v8198_v36, %s10463_s27 }
 0x1e9   : > { %1532 = vrot.lane.b32.xlu1 %v8190_v28, %s10461_s28 }
 0x1eb   : > { %1534 = vrot.lane.b32.xlu0 %v8192_v32, %s10461_s28 }
 0x1ed   : > { %1536 = vrot.lane.b32.xlu1 %v8196_v34, %s10461_s28 }
 0x1ef   : > { %1538 = vrot.lane.b32.xlu0 %v8198_v36, %s10461_s28  ;;  %s10519_s28 = smov 15  }
 0x1f1   : > { %1608 = vrot.lane.b32.xlu1 %v8190_v28, %s10459_s4 }
 0x1f3   : > { %1610 = vrot.lane.b32.xlu0 %v8192_v32, %s10459_s4 }
 0x1f5   : > { %1612 = vrot.lane.b32.xlu1 %v8196_v34, %s10459_s4 }
 0x1f7   : > { %1614 = vrot.lane.b32.xlu0 %v8198_v36, %s10459_s4  ;;  %s10520_s4 = smov 1  }
 0x1f9   : > { %1744 = vrot.lane.b32.xlu1 %v8190_v28, %s10467_s29 }
 0x1fb   : > { %1746 = vrot.lane.b32.xlu0 %v8192_v32, %s10467_s29 }
 0x1fd   : > { %1748 = vrot.lane.b32.xlu1 %v8196_v34, %s10467_s29 }
 0x1ff   : > { %1750 = vrot.lane.b32.xlu0 %v8198_v36, %s10467_s29 }
 0x201   : > { %1820 = vrot.lane.b32.xlu1 %v8190_v28, %s10457_s30 }
 0x203   : > { %1822 = vrot.lane.b32.xlu0 %v8192_v32, %s10457_s30 }
 0x205   : > { %1824 = vrot.lane.b32.xlu1 %v8196_v34, %s10457_s30 }
 0x207   : > { %1826 = vrot.lane.b32.xlu0 %v8198_v36, %s10457_s30  ;;  %s10514_s30 = sld [smem:[#allocation14_spill]] }
 0x209   : > { %1896 = vrot.lane.b32.xlu1 %v8190_v28, %s10510_s25 }
 0x20b   : > { %1898 = vrot.lane.b32.xlu0 %v8192_v32, %s10510_s25 }
 0x20d   : > { %1900 = vrot.lane.b32.xlu1 %v8196_v34, %s10510_s25 }
 0x20f   : > { %1902 = vrot.lane.b32.xlu0 %v8198_v36, %s10510_s25 }
 0x211   : > { %1972 = vrot.lane.b32.xlu1 %v8190_v28, %s10511_s3 }
 0x213   : > { %1974 = vrot.lane.b32.xlu0 %v8192_v32, %s10511_s3 }
 0x215   : > { %1976 = vrot.lane.b32.xlu1 %v8196_v34, %s10511_s3 }
 0x217   : > { %1978 = vrot.lane.b32.xlu0 %v8198_v36, %s10511_s3 }
 0x219   : > { %2052 = vperm.xlu1 %7590, %v2048_v39  }
 0x21b   : > { %2057 = vperm.xlu0 %7589, %v2049_v40  }
 0x24b   : > { %v1409_v42 = vpop.permute.xlu1 %1408 }
 0x24d   : > { %v1411_v44 = vpop.permute.xlu0 %1410 }
 0x24f   : > { %v1413_v45 = vpop.permute.xlu1 %1412 }
 0x250   : > { %v1418_v46 = vsel %vm670_vm0, %v1413_v45, %v1409_v42  ;;  %v1416_v49 = vsel %vm670_vm0, %v1409_v42, %v1413_v45 }
 0x251   : > { %v1415_v10 = vpop.permute.xlu0 %1414  ;;  %v1421_v53 = vmul.f32 %v1416_v49, %v7994_v15  ;;  %v1420_v56 = vmul.f32 %v1418_v46, %v7998_v16 }
 0x252   : > { %v1419_v50 = vsel %vm670_vm0, %v1415_v10, %v1411_v44  ;;  %v1417_v51 = vsel %vm670_vm0, %v1411_v44, %v1415_v10 }
 0x253   : > { %v1389_v52 = vpop.permute.xlu1 %1388  ;;  %v1423_v55 = vmul.f32 %v1417_v51, %v7994_v15  ;;  %v1422_v57 = vmul.f32 %v1419_v50, %v7998_v16 }
 0x255   : > { %v1391_v58 = vpop.permute.xlu0 %1390  ;;  %v1425_v59 = vpack.c.bf16 %v1423_v55, %v1421_v53  ;;  %v1424_v61 = vpack.c.bf16 %v1422_v57, %v1420_v56  ;;  %v7612_v53 = vld [vmem:[%s10513_s7] sm:$0xff]  }
 0x257   : > { %v1393_v63 = vpop.permute.xlu1 %1392  ;;  %1438 = vmatprep.subr.bf16.mxu1 %v1425_v59 }
 0x258   : > { %v1396_v1 = vsel %vm649_vm1, %v1389_v52, %v1393_v63  ;;  %v1398_v5 = vsel %vm649_vm1, %v1393_v63, %v1389_v52  ;;  %1439 = vmatpush1.bf16.msra.mxu1 %v1424_v61 }
 0x259   : > { %v1395_v12 = vpop.permute.xlu0 %1394  ;;  %v1400_v22 = vmul.f32 %v1398_v5, %v8002_v17  ;;  %v1401_v24 = vmul.f32 %v1396_v1, %v8006_v18 }
 0x25a   : > { %v1397_v13 = vsel %vm649_vm1, %v1391_v58, %v1395_v12  ;;  %v1399_v19 = vsel %vm649_vm1, %v1395_v12, %v1391_v58 }
 0x25b   : > { %v1402_v0 = vmul.f32 %v1399_v19, %v8002_v17  ;;  %v1403_v25 = vmul.f32 %v1397_v13, %v8006_v18  ;;  %v1533_v26 = vpop.permute.xlu1 %1532  ;;  %6940 = vmatmul.mubr.msk.bf16.vlgmr.msra.gmra.mrb[0].mxu1 %vm1434_vm10, %v7611_v3 }
 0x25c   : > { %1521 = vmatprep.mubr.bf16.mxu1 %v10471_v2 }
 0x25d   : > { %v1404_v29 = vpack.c.bf16 %v1402_v0, %v1400_v22  ;;  %v1535_v30 = vpop.permute.xlu0 %1534  ;;  %v1405_v31 = vpack.c.bf16 %v1403_v25, %v1401_v24  ;;  %v7613_v24 = vld [vmem:[%s10513_s7 + $0x10] sm:$0xff]  }
 0x25f   : > { %v1537_v39 = vpop.permute.xlu1 %1536  ;;  %1489 = vmatprep.subr.bf16.mxu1 %v1405_v31 }
 0x260   : > { %v1540_v40 = vsel %vm808_vm2, %v1533_v26, %v1537_v39  ;;  %v1542_v42 = vsel %vm808_vm2, %v1537_v39, %v1533_v26  ;;  %1490 = vmatpush1.bf16.msra.mxu1 %v1404_v29 }
 0x261   : > { %v1539_v44 = vpop.permute.xlu0 %1538  ;;  %v1544_v49 = vmul.f32 %v1542_v42, %v8037_v41  ;;  %v1545_v10 = vmul.f32 %v1540_v40, %v8011_v21 }
 0x262   : > { %v1541_v45 = vsel %vm808_vm2, %v1535_v30, %v1539_v44  ;;  %v1543_v46 = vsel %vm808_vm2, %v1539_v44, %v1535_v30  ;;  %v7614_v44 = vld [vmem:[%s10513_s7 + $0x18] sm:$0xff]  }
 0x263   : > { %v1546_v50 = vmul.f32 %v1543_v46, %v8037_v41  ;;  %v1547_v51 = vmul.f32 %v1541_v45, %v8011_v21  ;;  %v1609_v52 = vpop.permute.xlu1 %1608 }
 0x265   : > { %v1548_v55 = vpack.c.bf16 %v1546_v50, %v1544_v49  ;;  %v1611_v56 = vpop.permute.xlu0 %1610  ;;  %v1549_v57 = vpack.c.bf16 %v1547_v51, %v1545_v10 }
 0x267   : > { %v1613_v58 = vpop.permute.xlu1 %1612  ;;  %6942 = vmatmul.mubr.msk.bf16.vlgmr.msra.gmra.mrb[0].mxu1 %vm1434_vm10, %v7612_v53  ;;  %1561 = vmatprep.subr.bf16.mxu1 %v1549_v57 }
 0x268   : > { %v1616_v59 = vsel %vm891_vm5, %v1609_v52, %v1613_v58  ;;  %1562 = vmatpush1.bf16.msra.mxu1 %v1548_v55  ;;  %1593 = vmatprep.mubr.bf16.mxu1 %v10471_v2  ;;  %v1618_v12 = vsel %vm891_vm5, %v1613_v58, %v1609_v52  ;;  %v7615_v52 = vld [vmem:[%s10513_s7 + $0x20] sm:$0xff]  }
 0x269   : > { %v1615_v61 = vpop.permute.xlu0 %1614  ;;  %v1621_v3 = vmul.f32 %v1616_v59, %v8051_v48  ;;  %v1620_v0 = vmul.f32 %v1618_v12, %v8062_v54 }
 0x26a   : > { %v1617_v63 = vsel %vm891_vm5, %v1611_v56, %v1615_v61  ;;  %v1619_v1 = vsel %vm891_vm5, %v1615_v61, %v1611_v56 }
 0x26b   : > { %v1623_v5 = vmul.f32 %v1617_v63, %v8051_v48  ;;  %v1622_v19 = vmul.f32 %v1619_v1, %v8062_v54  ;;  %v1745_v25 = vpop.permute.xlu1 %1744 }
 0x26d   : > { %v1625_v13 = vpack.c.bf16 %v1623_v5, %v1621_v3  ;;  %v1747_v22 = vpop.permute.xlu0 %1746  ;;  %v1624_v26 = vpack.c.bf16 %v1622_v19, %v1620_v0 }
 0x26f   : > { %1637 = vmatprep.subr.bf16.mxu1 %v1625_v13  ;;  %v1749_v30 = vpop.permute.xlu1 %1748 }
 0x270   : > { %v1754_v39 = vsel %vm1040_vm6, %v1749_v30, %v1745_v25  ;;  %v1752_v50 = vsel %vm1040_vm6, %v1745_v25, %v1749_v30 }
 0x271   : > { %v1751_v29 = vpop.permute.xlu0 %1750  ;;  %v1757_v45 = vmul.f32 %v1754_v39, %v8085_v4  ;;  %v1756_v53 = vmul.f32 %v1752_v50, %v8098_v20 }
 0x272   : > { %v1755_v31 = vsel %vm1040_vm6, %v1751_v29, %v1747_v22 }
 0x273   : > { %6946 = vmatmul.mubr.msk.bf16.vlgmr.msra.gmra.mrb[0].mxu1 %vm1434_vm10, %v7613_v24  ;;  %v1759_v40 = vmul.f32 %v1755_v31, %v8085_v4  ;;  %v1821_v46 = vpop.permute.xlu1 %1820 }
 0x274   : > { %1638 = vmatpush1.bf16.msra.mxu1 %v1624_v26  ;;  %1669 = vmatprep.mubr.bf16.mxu1 %v10471_v2 }
 0x275   : > { %1697 = vmatprep.subr.bf16.mxu1 %v1685_v38  ;;  %v1823_v42 = vpop.permute.xlu0 %1822  ;;  %v1761_v34 = vpack.c.bf16 %v1759_v40, %v1757_v45  ;;  %v1753_v38 = vsel %vm1040_vm6, %v1747_v22, %v1751_v29  ;;  %v7616_v22 = vld [vmem:[%s10513_s7 + $0x28] sm:$0xff]  }
 0x276   : > { %v1758_v51 = vmul.f32 %v1753_v38, %v8098_v20 }
 0x277   : > { %v1825_v49 = vpop.permute.xlu1 %1824 }
 0x278   : > { %v1830_v28 = vsel %vm1123_vm7, %v1825_v49, %v1821_v46  ;;  %v1760_v57 = vpack.c.bf16 %v1758_v51, %v1756_v53  ;;  %v1828_v1 = vsel %vm1123_vm7, %v1821_v46, %v1825_v49 }
 0x279   : > { %v1827_v36 = vpop.permute.xlu0 %1826  ;;  %v1833_v55 = vmul.f32 %v1830_v28, %v8112_v27  ;;  %v1832_v24 = vmul.f32 %v1828_v1, %v8123_v33  ;;  %v7620_v1 = vld [vmem:[%s10514_s30] ss:$8 sps:$4 sm:$0xff]  }
 0x27a   : > { %v1831_v10 = vsel %vm1123_vm7, %v1827_v36, %v1823_v42  ;;  %v1829_v61 = vsel %vm1123_vm7, %v1823_v42, %v1827_v36 }
 0x27b   : > { %v1835_v32 = vmul.f32 %v1831_v10, %v8112_v27  ;;  %v1897_v56 = vpop.permute.xlu1 %1896  ;;  %v1834_v5 = vmul.f32 %v1829_v61, %v8123_v33 }
 0x27d   : > { %v1837_v58 = vpack.c.bf16 %v1835_v32, %v1833_v55  ;;  %v1836_v26 = vpack.c.bf16 %v1834_v5, %v1832_v24  ;;  %v7622_v5 = vld [vmem:[%s10514_s30 + $0x4] ss:$8 sps:$4 sm:$0xff]  }
 0x27e   : > { %2294 = vmatprep.subr.bf16.mxu0 %v7622_v5 }
 0x27f   : > { %6950 = vmatmul.mubr.msk.bf16.vlgmr.msra.gmra.mrb[0].mxu1 %vm1434_vm10, %v7614_v44  ;;  %v1901_v63 = vpop.permute.xlu1 %1900  ;;  %2295 = vmatpush1.bf16.msra.mxu0 %v7620_v1 }
 0x280   : > { %1698 = vmatpush1.bf16.msra.mxu1 %v1684_v37  ;;  %1729 = vmatprep.mubr.bf16.mxu1 %v10471_v2  ;;  %v1899_v37 = vpop.permute.xlu0 %1898  ;;  %v1906_v12 = vsel %vm1206_vm8, %v1901_v63, %v1897_v56  ;;  %v1904_v42 = vsel %vm1206_vm8, %v1897_v56, %v1901_v63 }
 0x281   : > { %1773 = vmatprep.subr.bf16.mxu1 %v1761_v34  ;;  %v1909_v0 = vmul.f32 %v1906_v12, %v8137_v6  ;;  %v7617_v34 = vld [vmem:[%s10513_s7 + $0x30] sm:$0xff]   ;;  %v1908_v36 = vmul.f32 %v1904_v42, %v8148_v47 }
 0x282   : > { %v7625_v12 = vld [vmem:[%s10514_s30 + $0x14] ss:$8 sps:$4 sm:$0xff]   ;;  %v7635_v42 = vld [vmem:[%s10514_s30 + $0x50] ss:$8 sps:$4 sm:$0xff]  }
 0x283   : > { %v1973_v25 = vpop.permute.xlu1 %1972  ;;  %2296 = vmatprep.subr.bf16.mxu0 %v7625_v12 }
 0x284   : > { %v1903_v59 = vpop.permute.xlu0 %1902 }
 0x285   : > { %v1907_v3 = vsel %vm1206_vm8, %v1903_v59, %v1899_v37  ;;  %v1905_v31 = vsel %vm1206_vm8, %v1899_v37, %v1903_v59 }
 0x286   : > { %v1911_v13 = vmul.f32 %v1907_v3, %v8137_v6  ;;  %v1910_v44 = vmul.f32 %v1905_v31, %v8148_v47  ;;  %v7634_v31 = vld [vmem:[%s10514_s30 + $0x44] ss:$8 sps:$4 sm:$0xff]  }
 0x287   : > { %v1977_v39 = vpop.permute.xlu1 %1976 }
 0x288   : > { %v1975_v19 = vpop.permute.xlu0 %1974  ;;  %v1913_v29 = vpack.c.bf16 %v1911_v13, %v1909_v0  ;;  %v1982_v45 = vsel %vm1289_vm9, %v1977_v39, %v1973_v25  ;;  %v1912_v49 = vpack.c.bf16 %v1910_v44, %v1908_v36  ;;  %v1980_v51 = vsel %vm1289_vm9, %v1973_v25, %v1977_v39  ;;  %v7628_v0 = vld [vmem:[%s10514_s30 + $0x24] ss:$8 sps:$4 sm:$0xff]   ;;  %v7632_v39 = vld [vmem:[%s10514_s30 + $0x40] ss:$8 sps:$4 sm:$0xff]  }
 0x289   : > { %v1985_v38 = vmul.f32 %v8160_v11, %v1982_v45  ;;  %v1984_v32 = vmul.f32 %v8172_v60, %v1980_v51  ;;  %v7640_v44 = vld [vmem:[%s10514_s30 + $0x64] ss:$8 sps:$4 sm:$0xff]   ;;  %v7638_v45 = vld [vmem:[%s10514_s30 + $0x60] ss:$8 sps:$4 sm:$0xff]  }
 0x28a   : > { %v7646_v36 = vld [vmem:[%s10514_s30 + $0x84] ss:$8 sps:$4 sm:$0xff]   ;;  %v7650_v51 = vld [vmem:[%s10514_s30 + $0xa0] ss:$8 sps:$4 sm:$0xff]  }
 0x28b   : > { %6954 = vmatmul.mubr.msk.bf16.vlgmr.msra.gmra.mrb[0].mxu1 %vm1434_vm10, %v7615_v52  ;;  %v7619_v52 = vld [vmem:[%s10513_s7 + $0x40] sm:$0xff]  }
 0x28c   : > { %1774 = vmatpush1.bf16.msra.mxu1 %v1760_v57  ;;  %1805 = vmatprep.mubr.bf16.mxu1 %v10471_v2  ;;  %v1979_v30 = vpop.permute.xlu0 %1978 }
 0x28d   : > { %1849 = vmatprep.subr.bf16.mxu1 %v1837_v58  ;;  %v1983_v40 = vsel %vm1289_vm9, %v1979_v30, %v1975_v19  ;;  %v1981_v50 = vsel %vm1289_vm9, %v1975_v19, %v1979_v30  ;;  %v7629_v30 = vld [vmem:[%s10514_s30 + $0x30] ss:$8 sps:$4 sm:$0xff]  }
 0x28e   : > { %v1987_v46 = vmul.f32 %v8160_v11, %v1983_v40  ;;  %v1986_v28 = vmul.f32 %v8172_v60, %v1981_v50  ;;  %v7618_v11 = vld [vmem:[%s10513_s7 + $0x38] sm:$0xff]   ;;  %v7652_v50 = vld [vmem:[%s10514_s30 + $0xa4] ss:$8 sps:$4 sm:$0xff]   ;;  %s629_s7 = scalar_lea.vmem %s10540_s6, %s10539_s5 }
 0x28f   : > { %v7637_v40 = vld [vmem:[%s10514_s30 + $0x54] ss:$8 sps:$4 sm:$0xff]  }
 0x290   : > { %v1989_v10 = vpack.c.bf16 %v1987_v46, %v1985_v38  ;;  %v1988_v37 = vpack.c.bf16 %v1986_v28, %v1984_v32  ;;  %v7643_v46 = vld [vmem:[%s10514_s30 + $0x74] ss:$8 sps:$4 sm:$0xff]   ;;  %v7644_v38 = vld [vmem:[%s10514_s30 + $0x80] ss:$8 sps:$4 sm:$0xff]   ;;  %v7658_v32 = vld [vmem:[%s10514_s30 + $0xc4] ss:$8 sps:$4 sm:$0xff]  }
 0x291   : > { %v7655_v28 = vld [vmem:[%s10514_s30 + $0xb4] ss:$8 sps:$4 sm:$0xff]  }
 0x297   : > { %6958 = vmatmul.mubr.msk.bf16.vlgmr.msra.gmra.mrb[0].mxu1 %vm1434_vm10, %v7616_v22  ;;  %v7623_v22 = vld [vmem:[%s10514_s30 + $0x10] ss:$8 sps:$4 sm:$0xff]  }
 0x298   : > { %1850 = vmatpush1.bf16.msra.mxu1 %v1836_v26  ;;  %1881 = vmatprep.mubr.bf16.mxu1 %v10471_v2  ;;  %v2053_v53 = vpop.permute.xlu1 %2052  ;;  %v7626_v26 = vld [vmem:[%s10514_s30 + $0x20] ss:$8 sps:$4 sm:$0xff]  }
 0x299   : > { %1925 = vmatprep.subr.bf16.mxu1 %v1913_v29  ;;  %2297 = vmatpush1.bf16.msra.mxu0 %v7623_v22  ;;  %v7631_v29 = vld [vmem:[%s10514_s30 + $0x34] ss:$8 sps:$4 sm:$0xff]  }
 0x29a   : > { %v2058_v58 = vpop.permute.xlu0 %2057  ;;  %2298 = vmatprep.subr.bf16.mxu0 %v7628_v0 }
 0x29d   : > { %2299 = vmatpush1.bf16.msra.mxu0 %v7626_v26 }
 0x29e   : > { %2300 = vmatprep.subr.bf16.mxu0 %v7631_v29 }
 0x2a1   : > { %2301 = vmatpush1.bf16.msra.mxu0 %v7629_v30 }
 0x2a2   : > { %2302 = vmatprep.subr.bf16.mxu0 %v7634_v31 }
 0x2a3   : > { %6962 = vmatmul.mubr.msk.bf16.vlgmr.msra.gmra.mrb[0].mxu1 %vm1434_vm10, %v7617_v34  ;;  %v7641_v34 = vld [vmem:[%s10514_s30 + $0x70] ss:$8 sps:$4 sm:$0xff]  }
 0x2a4   : > { %1926 = vmatpush1.bf16.msra.mxu1 %v1912_v49  ;;  %1957 = vmatprep.mubr.bf16.mxu1 %v10471_v2  ;;  %v7649_v49 = vld [vmem:[%s10514_s30 + $0x94] ss:$8 sps:$4 sm:$0xff]  }
 0x2a5   : > { %2001 = vmatprep.subr.bf16.mxu1 %v1989_v10  ;;  %2303 = vmatpush1.bf16.msra.mxu0 %v7632_v39  ;;  %v7647_v10 = vld [vmem:[%s10514_s30 + $0x90] ss:$8 sps:$4 sm:$0xff]  }
 0x2a6   : > { %2304 = vmatprep.subr.bf16.mxu0 %v7637_v40 }
 0x2a9   : > { %2305 = vmatpush1.bf16.msra.mxu0 %v7635_v42  ;;  %v4324_v42 = vld [vmem:[%s10439_s12 + $0x10] sm:$0xff] }
 0x2aa   : > { %2306 = vmatprep.subr.bf16.mxu0 %v7640_v44 }
 0x2ad   : > { %2307 = vmatpush1.bf16.msra.mxu0 %v7638_v45 }
 0x2ae   : > { %2308 = vmatprep.subr.bf16.mxu0 %v7643_v46 }
 0x2af   : > { %6966 = vmatmul.mubr.msk.bf16.vlgmr.msra.gmra.mrb[0].mxu1 %vm1434_vm10, %v7618_v11  ;;  %v7653_v11 = vld [vmem:[%s10514_s30 + $0xb0] ss:$8 sps:$4 sm:$0xff]  }
 0x2b0   : > { %2002 = vmatpush1.bf16.msra.mxu1 %v1988_v37  ;;  %2033 = vmatprep.mubr.bf16.mxu1 %v10471_v2  ;;  %v7656_v37 = vld [vmem:[%s10514_s30 + $0xc0] ss:$8 sps:$4 sm:$0xff]  }
 0x2b1   : > { %2309 = vmatpush1.bf16.msra.mxu0 %v7641_v34 }
 0x2b2   : > { %2310 = vmatprep.subr.bf16.mxu0 %v7646_v36 }
 0x2b5   : > { %2311 = vmatpush1.bf16.msra.mxu0 %v7644_v38 }
 0x2b6   : > { %2312 = vmatprep.subr.bf16.mxu0 %v7649_v49 }
 0x2b9   : > { %2313 = vmatpush1.bf16.msra.mxu0 %v7647_v10 }
 0x2ba   : > { %2314 = vmatprep.subr.bf16.mxu0 %v7652_v50 }
 0x2bb   : > { %6970 = vmatmul.mubr.msk.bf16.vlgmr.msra.gmra.mrb[0].mxu1 %vm1434_vm10, %v7619_v52  ;;  %v7661_v52 = vld [vmem:[%s10514_s30 + $0xd4] ss:$8 sps:$4 sm:$0xff]  }
 0x2bc   : > { %2446 = vmatprep.mubr.bf16.mxu1 %v10471_v2 }
 0x2bd   : > { %2315 = vmatpush1.bf16.msra.mxu0 %v7650_v51 }
 0x2be   : > { %2316 = vmatprep.subr.bf16.mxu0 %v7655_v28 }
 0x2c1   : > { %2317 = vmatpush1.bf16.msra.mxu0 %v7653_v11 }
 0x2c2   : > { %2318 = vmatprep.subr.bf16.mxu0 %v7658_v32 }
 0x2c5   : > { %2319 = vmatpush1.bf16.msra.mxu0 %v7656_v37 }
 0x2c6   : > { %2320 = vmatprep.subr.bf16.mxu0 %v7661_v52 }
 0x38e   : > { %v2035_v55 = vpop.f32.mrb[0].mxu1 }
 0x38f   : > { %v2060_v56 = vadd.f32 %v2053_v53, %v2035_v55  ;;  %v2037_v57 = vpop.f32.mrb[1].mxu1  ;;  %v7664_v55 = vld [vmem:[%s10514_s30 + $0xe4] ss:$8 sps:$4 sm:$0xff]  }
 0x390   : > { %v2039_v60 = vpop.f32.mrb[2].mxu1  ;;  %v2061_v61 = vadd.f32 %v2053_v53, %v2037_v57  ;;  %v7659_v53 = vld [vmem:[%s10514_s30 + $0xd0] ss:$8 sps:$4 sm:$0xff]  }
 0x391   : > { %v8419_v59 = vmax.f32 %v2060_v56, 0.0  ;;  %v2062_v63 = vadd.f32 %v2058_v58, %v2039_v60  ;;  %v2041_v3 = vpop.f32.mrb[3].mxu1  ;;  %2321 = vmatpush1.bf16.msra.mxu0 %v7659_v53  ;;  %v7662_v56 = vld [vmem:[%s10514_s30 + $0xe0] ss:$8 sps:$4 sm:$0xff]   ;;  %v7665_v60 = vld [vmem:[%s10514_s30 + $0xf0] ss:$8 sps:$4 sm:$0xff]  }
 0x392   : > { %v2063_v19 = vadd.f32 %v2058_v58, %v2041_v3  ;;  %v8437_v24 = vmax.f32 %v2061_v61, 0.0  ;;  %2322 = vmatprep.subr.bf16.mxu0 %v7664_v55  ;;  %v7667_v61 = vld [vmem:[%s10514_s30 + $0xf4] ss:$8 sps:$4 sm:$0xff]  }
 0x393   : > { %v8430_v13 = vmax.f32 %v2062_v63, 0.0  ;;  %2068 = vrot.lane.b32.xlu1 %v8419_v59, %s10467_s29 }
 0x394   : > { %v8444_v25 = vmax.f32 %v2063_v19, 0.0 }
 0x395   : > { %2070 = vrot.lane.b32.xlu0 %v8430_v13, %s10467_s29  ;;  %2323 = vmatpush1.bf16.msra.mxu0 %v7662_v56 }
 0x396   : > { %2324 = vmatprep.subr.bf16.mxu0 %v7667_v61 }
 0x397   : > { %2072 = vrot.lane.b32.xlu1 %v8437_v24, %s10467_s29 }
 0x399   : > { %2074 = vrot.lane.b32.xlu0 %v8444_v25, %s10467_s29  ;;  %2325 = vmatpush1.bf16.msra.mxu0 %v7665_v60  ;;  %s10528_s29 = sld [smem:[#allocation15_spill]] }
 0x405   : > { %v2069_v57 = vpop.permute.xlu1 %2068 }
 0x407   : > { %v2071_v58 = vpop.permute.xlu0 %2070 }
 0x409   : > { %v2073_v63 = vpop.permute.xlu1 %2072 }
 0x40a   : > { %v2076_v3 = vsel %vm1040_vm6, %v2069_v57, %v2073_v63  ;;  %v2078_v1 = vsel %vm1040_vm6, %v2073_v63, %v2069_v57 }
 0x40b   : > { %v2080_v5 = vmax.f32 %v8419_v59, %v2076_v3  ;;  %v2081_v12 = vmax.f32 %v8437_v24, %v2078_v1  ;;  %v2075_v19 = vpop.permute.xlu0 %2074  ;;  %v8538_v22 = vmul.f32 %v2076_v3, %v8098_v20  ;;  %v8541_v0 = vmul.f32 %v2078_v1, %v8085_v4 }
 0x40c   : > { %v2077_v26 = vsel %vm1040_vm6, %v2071_v58, %v2075_v19  ;;  %v2079_v29 = vsel %vm1040_vm6, %v2075_v19, %v2071_v58  ;;  %v3270_v19 = vld [vmem:[%s10523_s10 + $0x10] sm:$0xff] }
 0x40d   : > { %10515 = vst [vmem:[#allocation9_spill] sm:$0xff] %v8538_v22  ;;  %v2082_v30 = vmax.f32 %v8430_v13, %v2077_v26  ;;  %v2083_v31 = vmax.f32 %v8444_v25, %v2079_v29  ;;  %v8550_v39 = vmul.f32 %v2077_v26, %v8098_v20  ;;  %v8553_v40 = vmul.f32 %v2079_v29, %v8085_v4  ;;  %v3271_v26 = vld [vmem:[%s10523_s10 + $0x18] sm:$0xff] }
 0x40f   : > { %10516 = vst [vmem:[#allocation10_spill] sm:$0xff] %v8550_v39  ;;  %v7596_v44 = vpack.i.bf16 %v2083_v31, %v2081_v12  ;;  %v7591_v45 = vpack.i.bf16 %v2082_v30, %v2080_v5 }
 0x411   : > { %7597 = vrot.lane.b32.xlu0 %v7596_v44, %s10510_s25  ;;  %7592 = vrot.lane.b32.xlu1 %v7591_v45, %s10510_s25 }
 0x483   : > { %v7598_v34 = vpop.permute.xlu0 %7597  ;;  %v7593_v36 = vpop.permute.xlu1 %7592 }
 0x484   : > { %v7600_v38 = vunpack.i.h.bf16 %v7598_v34  ;;  %v7599_v49 = vunpack.i.l.bf16 %v7598_v34  ;;  %v7595_v10 = vunpack.i.h.bf16 %v7593_v36  ;;  %v7594_v50 = vunpack.i.l.bf16 %v7593_v36 }
 0x486   : > { %v2093_v51 = vsel %vm1206_vm8, %v7595_v10, %v7600_v38  ;;  %v2092_v28 = vsel %vm1206_vm8, %v7594_v50, %v7599_v49  ;;  %v2094_v11 = vsel %vm1206_vm8, %v7599_v49, %v7594_v50  ;;  %v2095_v32 = vsel %vm1206_vm8, %v7600_v38, %v7595_v10 }
 0x487   : > { %v2098_v37 = vmax.f32 %v2082_v30, %v2093_v51  ;;  %v2096_v52 = vmax.f32 %v2080_v5, %v2092_v28  ;;  %v2097_v53 = vmax.f32 %v2081_v12, %v2094_v11  ;;  %v2099_v55 = vmax.f32 %v2083_v31, %v2095_v32  ;;  %v3268_v5 = vld [vmem:[%s10523_s10] sm:$0xff]  ;;  %v3269_v12 = vld [vmem:[%s10523_s10 + $0x8] sm:$0xff] }
 0x488   : > { %v8661_v30 = vld [vmem:[%s10524_s1] sm:$0xff]  ;;  %v8666_v31 = vld [vmem:[%s10525_s20 + $0x8] sm:$0xff] }
 0x489   : > { %v2101_v56 = vpack.c.bf16 %v2099_v55, %v2097_v53  ;;  %v2100_v57 = vpack.c.bf16 %v2098_v37, %v2096_v52  ;;  %v8670_v45 = vrot.slane %v8661_v30, %v7972_v8  ;;  %v8674_v34 = vrot.slane %v8666_v31, %v7972_v8 }
 0x48b   : > { %2326 = vmatprep.mubr.bf16.mxu0 %v2101_v56  ;;  %v8690_v56 = vrot.slane %v8661_v30, %v7975_v9 }
 0x48c   : > { %2327 = vmatmul.mubr.bf16.vlgmr.msra.gmra.mrb[4].mxu0 %v2100_v57  ;;  %v8694_v57 = vrot.slane %v8666_v31, %v7975_v9 }
 0x48d   : > { %3617 = vmatprep.mubr.bf16.mxu0 %v10471_v2 }
 0x55f   : > { %v8570_v58 = vpop.f32.mrb[4].mxu0 }
 0x560   : > { %2367 = vrot.lane.b32.xlu1 %v8570_v58, %s10517_s23  ;;  %v8574_v60 = vpop.f32.mrb[5].mxu0 }
 0x561   : > { %v8576_v61 = vpop.f32.mrb[6].mxu0 }
 0x562   : > { %2369 = vrot.lane.b32.xlu0 %v8576_v61, %s10517_s23  ;;  %v8580_v63 = vpop.f32.mrb[7].mxu0  ;;  %v2752_v3 = vpack.c.bf16 %v8576_v61, %v8570_v58 }
 0x563   : > { %v2753_v1 = vpack.c.bf16 %v8580_v63, %v8574_v60 }
 0x564   : > { %2371 = vrot.lane.b32.xlu1 %v8574_v60, %s10517_s23 }
 0x566   : > { %2373 = vrot.lane.b32.xlu0 %v8580_v63, %s10517_s23 }
 0x568   : > { %2337 = vrot.lane.b32.xlu1 %v8570_v58, %s10518_s24 }
 0x56a   : > { %2339 = vrot.lane.b32.xlu0 %v8576_v61, %s10518_s24 }
 0x56c   : > { %2341 = vrot.lane.b32.xlu1 %v8574_v60, %s10518_s24 }
 0x56e   : > { %2343 = vrot.lane.b32.xlu0 %v8580_v63, %s10518_s24 }
 0x570   : > { %2536 = vrot.lane.b32.xlu1 %v8570_v58, %s10519_s28 }
 0x572   : > { %2538 = vrot.lane.b32.xlu0 %v8576_v61, %s10519_s28 }
 0x574   : > { %2540 = vrot.lane.b32.xlu1 %v8574_v60, %s10519_s28 }
 0x576   : > { %2542 = vrot.lane.b32.xlu0 %v8580_v63, %s10519_s28 }
 0x578   : > { %2644 = vrot.lane.b32.xlu1 %v8570_v58, %s10520_s4 }
 0x57a   : > { %2646 = vrot.lane.b32.xlu0 %v8576_v61, %s10520_s4 }
 0x57c   : > { %2648 = vrot.lane.b32.xlu1 %v8574_v60, %s10520_s4 }
 0x57e   : > { %2650 = vrot.lane.b32.xlu0 %v8580_v63, %s10520_s4 }
 0x580   : > { %2836 = vrot.lane.b32.xlu1 %v8570_v58, %s10521_s0 }
 0x582   : > { %2838 = vrot.lane.b32.xlu0 %v8576_v61, %s10521_s0 }
 0x584   : > { %2840 = vrot.lane.b32.xlu1 %v8574_v60, %s10521_s0 }
 0x586   : > { %2842 = vrot.lane.b32.xlu0 %v8580_v63, %s10521_s0 }
 0x588   : > { %2944 = vrot.lane.b32.xlu1 %v8570_v58, %s10522_s21 }
 0x58a   : > { %2946 = vrot.lane.b32.xlu0 %v8576_v61, %s10522_s21 }
 0x58c   : > { %2948 = vrot.lane.b32.xlu1 %v8574_v60, %s10522_s21 }
 0x58e   : > { %2950 = vrot.lane.b32.xlu0 %v8580_v63, %s10522_s21 }
 0x590   : > { %3052 = vrot.lane.b32.xlu1 %v8570_v58, %s10510_s25 }
 0x592   : > { %3054 = vrot.lane.b32.xlu0 %v8576_v61, %s10510_s25 }
 0x594   : > { %3056 = vrot.lane.b32.xlu1 %v8574_v60, %s10510_s25 }
 0x596   : > { %3058 = vrot.lane.b32.xlu0 %v8580_v63, %s10510_s25 }
 0x598   : > { %3160 = vrot.lane.b32.xlu1 %v8570_v58, %s10511_s3 }
 0x59a   : > { %3162 = vrot.lane.b32.xlu0 %v8576_v61, %s10511_s3 }
 0x59c   : > { %3164 = vrot.lane.b32.xlu1 %v8574_v60, %s10511_s3 }
 0x59e   : > { %3166 = vrot.lane.b32.xlu0 %v8580_v63, %s10511_s3 }
 0x5a0   : > { %3274 = vperm.xlu1 %7590, %v3268_v5  }
 0x5a2   : > { %3279 = vperm.xlu0 %7589, %v3269_v12   ;;  %v7668_v12 = vld [vmem:[%s10526_s9 + $0x10] sm:$0xff]  }
 0x5a4   : > { %3284 = vperm.xlu1 %7590, %v3270_v19  }
 0x5a6   : > { %3289 = vperm.xlu0 %7589, %v3271_v26  }
 0x5d2   : > { %v2368_v29 = vpop.permute.xlu1 %2367 }
 0x5d4   : > { %v2370_v44 = vpop.permute.xlu0 %2369 }
 0x5d6   : > { %v2372_v36 = vpop.permute.xlu1 %2371 }
 0x5d7   : > { %v2375_v38 = vsel %vm670_vm0, %v2368_v29, %v2372_v36  ;;  %v2377_v49 = vsel %vm670_vm0, %v2372_v36, %v2368_v29 }
 0x5d8   : > { %v2374_v10 = vpop.permute.xlu0 %2373  ;;  %v2387_v28 = vmul.f32 %v8670_v45, %v2377_v49  ;;  %v2388_v11 = vmul.f32 %v8674_v34, %v2375_v38 }
 0x5d9   : > { %v2376_v50 = vsel %vm670_vm0, %v2370_v44, %v2374_v10  ;;  %v2378_v51 = vsel %vm670_vm0, %v2374_v10, %v2370_v44 }
 0x5da   : > { %v2389_v8 = vmul.f32 %v8670_v45, %v2378_v51  ;;  %v2390_v32 = vmul.f32 %v8674_v34, %v2376_v50  ;;  %v2338_v37 = vpop.permute.xlu1 %2337 }
 0x5dc   : > { %v2391_v52 = vpack.c.bf16 %v2389_v8, %v2387_v28  ;;  %v2340_v53 = vpop.permute.xlu0 %2339  ;;  %v2392_v55 = vpack.c.bf16 %v2390_v32, %v2388_v11  ;;  %v8715_v8 = vrot.slane %v8666_v31, %v7988_v14 }
 0x5de   : > { %v2342_v5 = vpop.permute.xlu1 %2341  ;;  %2414 = vmatprep.subr.bf16.mxu1 %v2392_v55 }
 0x5df   : > { %v2345_v19 = vsel %vm649_vm1, %v2338_v37, %v2342_v5  ;;  %v2347_v26 = vsel %vm649_vm1, %v2342_v5, %v2338_v37  ;;  %2415 = vmatpush1.bf16.msra.mxu1 %v2391_v52  ;;  %v7669_v37 = vld [vmem:[%s10526_s9 + $0x18] sm:$0xff]  }
 0x5e0   : > { %v2344_v29 = vpop.permute.xlu0 %2343  ;;  %v2357_v36 = vmul.f32 %v8690_v56, %v2347_v26  ;;  %v2358_v38 = vmul.f32 %v8694_v57, %v2345_v19 }
 0x5e1   : > { %v2346_v44 = vsel %vm649_vm1, %v2340_v53, %v2344_v29  ;;  %v2348_v9 = vsel %vm649_vm1, %v2344_v29, %v2340_v53  ;;  %v8731_v29 = vrot.slane %v8661_v30, %v7988_v14  ;;  %v7670_v14 = vld [vmem:[%s10526_s9] sm:$0xff]  }
 0x5e2   : > { %v2359_v49 = vmul.f32 %v8690_v56, %v2348_v9  ;;  %v2360_v10 = vmul.f32 %v8694_v57, %v2346_v44  ;;  %v2537_v50 = vpop.permute.xlu1 %2536  ;;  %7009 = vmatmul.mubr.msk.bf16.vlgmr.msra.gmra.mrb[4].mxu1 %vm1434_vm10, %v7668_v12 }
 0x5e3   : > { %2456 = vmatprep.mubr.bf16.mxu1 %v10471_v2 }
 0x5e4   : > { %v2361_v51 = vpack.c.bf16 %v2359_v49, %v2357_v36  ;;  %v2539_v28 = vpop.permute.xlu0 %2538  ;;  %v2362_v11 = vpack.c.bf16 %v2360_v10, %v2358_v38  ;;  %v8739_v49 = vrot.slane %v8666_v31, %v8040_v43 }
 0x5e6   : > { %v2541_v32 = vpop.permute.xlu1 %2540  ;;  %2483 = vmatprep.subr.bf16.mxu1 %v2362_v11 }
 0x5e7   : > { %v2544_v52 = vsel %vm808_vm2, %v2537_v50, %v2541_v32  ;;  %2484 = vmatpush1.bf16.msra.mxu1 %v2361_v51  ;;  %v2546_v44 = vsel %vm808_vm2, %v2541_v32, %v2537_v50 }
 0x5e8   : > { %v2543_v53 = vpop.permute.xlu0 %2542  ;;  %v2557_v5 = vmul.f32 %v8715_v8, %v2544_v52  ;;  %v2556_v51 = vmul.f32 %v8731_v29, %v2546_v44 }
 0x5e9   : > { %v2545_v55 = vsel %vm808_vm2, %v2539_v28, %v2543_v53  ;;  %v2547_v12 = vsel %vm808_vm2, %v2543_v53, %v2539_v28 }
 0x5ea   : > { %v2559_v19 = vmul.f32 %v8715_v8, %v2545_v55  ;;  %v2645_v26 = vpop.permute.xlu1 %2644  ;;  %7010 = vmatmul.mubr.msk.bf16.gmra.mrb[8].mxu1 %vm1434_vm10, %v7669_v37  ;;  %v2558_v38 = vmul.f32 %v8731_v29, %v2547_v12  ;;  %v7671_v55 = vld [vmem:[%s10526_s9 + $0x8] sm:$0xff]   ;;  %v8761_v12 = vrot.slane %v8661_v30, %v8040_v43 }
 0x5eb   : > { %2515 = vmatprep.mubr.bf16.mxu1 %v10471_v2 }
 0x5ec   : > { %v2647_v9 = vpop.permute.xlu0 %2646  ;;  %v2561_v36 = vpack.c.bf16 %v2559_v19, %v2557_v5  ;;  %v2560_v11 = vpack.c.bf16 %v2558_v38, %v2556_v51 }
 0x5ee   : > { %v2649_v10 = vpop.permute.xlu1 %2648  ;;  %2583 = vmatprep.subr.bf16.mxu1 %v2561_v36  ;;  %v7672_v36 = vld [vmem:[%s10526_s9 + $0x20] sm:$0xff]  }
 0x5ef   : > { %v2652_v28 = vsel %vm891_vm5, %v2645_v26, %v2649_v10  ;;  %v2654_v19 = vsel %vm891_vm5, %v2649_v10, %v2645_v26  ;;  %v7673_v26 = vld [vmem:[%s10526_s9 + $0x28] sm:$0xff]  }
 0x5f0   : > { %v2651_v50 = vpop.permute.xlu0 %2650  ;;  %v2665_v37 = vmul.f32 %v8739_v49, %v2652_v28  ;;  %v2664_v38 = vmul.f32 %v8761_v12, %v2654_v19 }
 0x5f1   : > { %v2653_v32 = vsel %vm891_vm5, %v2647_v9, %v2651_v50  ;;  %v2655_v5 = vsel %vm891_vm5, %v2651_v50, %v2647_v9  ;;  %v8785_v50 = vrot.slane %v8666_v31, %v8077_v62 }
 0x5f2   : > { %v2667_v52 = vmul.f32 %v8739_v49, %v2653_v32  ;;  %7013 = vmatmul.mubr.msk.bf16.vlgmr.msra.gmra.mrb[4].mxu1 %vm1434_vm10, %v7670_v14  ;;  %v2666_v44 = vmul.f32 %v8761_v12, %v2655_v5  ;;  %v2837_v43 = vpop.permute.xlu1 %2836 }
 0x5f3   : > { %2584 = vmatpush1.bf16.msra.mxu1 %v2560_v11  ;;  %2525 = vmatprep.mubr.bf16.mxu1 %v10471_v2 }
 0x5f4   : > { %v2669_v53 = vpack.c.bf16 %v2667_v52, %v2665_v37  ;;  %v2668_v9 = vpack.c.bf16 %v2666_v44, %v2664_v38  ;;  %v2839_v14 = vpop.permute.xlu0 %2838  ;;  %v8807_v44 = vrot.slane %v8661_v30, %v8077_v62 }
 0x5f6   : > { %2691 = vmatprep.subr.bf16.mxu1 %v2669_v53  ;;  %v2841_v51 = vpop.permute.xlu1 %2840  ;;  %v7675_v53 = vld [vmem:[%s10526_s9 + $0x38] sm:$0xff]  }
 0x5f7   : > { %v2846_v60 = vsel %vm1040_vm6, %v2841_v51, %v2837_v43  ;;  %v2844_v61 = vsel %vm1040_vm6, %v2837_v43, %v2841_v51 }
 0x5f8   : > { %v2843_v10 = vpop.permute.xlu0 %2842  ;;  %v2857_v11 = vmul.f32 %v8785_v50, %v2846_v60  ;;  %v7677_v60 = vld [vmem:[%s10526_s9 + $0x48] sm:$0xff]  }
 0x5f9   : > { %v2847_v28 = vsel %vm1040_vm6, %v2843_v10, %v2839_v14  ;;  %v2845_v5 = vsel %vm1040_vm6, %v2839_v14, %v2843_v10  ;;  %v2856_v14 = vmul.f32 %v8807_v44, %v2844_v61  ;;  %v7678_v61 = vld [vmem:[%s10526_s9 + $0x50] sm:$0xff]  }
 0x5fa   : > { %7014 = vmatmul.mubr.msk.bf16.gmra.mrb[8].mxu1 %vm1434_vm10, %v7671_v55  ;;  %v2859_v63 = vmul.f32 %v8785_v50, %v2847_v28  ;;  %v2945_v52 = vpop.permute.xlu1 %2944 }
 0x5fb   : > { %2615 = vmatprep.mubr.bf16.mxu1 %v10471_v2 }
 0x5fc   : > { %v2947_v32 = vpop.permute.xlu0 %2946  ;;  %v2861_v37 = vpack.c.bf16 %v2859_v63, %v2857_v11 }
 0x5fe   : > { %v2949_v19 = vpop.permute.xlu1 %2948 }
 0x5ff   : > { %v2954_v38 = vsel %vm1123_vm7, %v2949_v19, %v2945_v52 }
 0x600   : > { %v2951_v55 = vpop.permute.xlu0 %2950 }
 0x601   : > { %v2955_v58 = vsel %vm1123_vm7, %v2951_v55, %v2947_v32 }
 0x602   : > { %7021 = vmatmul.mubr.msk.bf16.vlgmr.msra.gmra.mrb[4].mxu1 %vm1434_vm10, %v7672_v36  ;;  %v2858_v36 = vmul.f32 %v8807_v44, %v2845_v5  ;;  %v3053_v28 = vpop.permute.xlu1 %3052  ;;  %v2952_v5 = vsel %vm1123_vm7, %v2945_v52, %v2949_v19 }
 0x603   : > { %2692 = vmatpush1.bf16.msra.mxu1 %v2668_v9  ;;  %2625 = vmatprep.mubr.bf16.mxu1 %v10471_v2  ;;  %v7676_v9 = vld [vmem:[%s10526_s9 + $0x40] sm:$0xff]  }
 0x604   : > { %2775 = vmatprep.subr.bf16.mxu1 %v2753_v1  ;;  %v7674_v1 = vld [vmem:[%s10526_s9 + $0x30] sm:$0xff]   ;;  %v2860_v43 = vpack.c.bf16 %v2858_v36, %v2856_v14  ;;  %v3055_v10 = vpop.permute.xlu0 %3054 }
 0x606   : > { %v3057_v11 = vpop.permute.xlu1 %3056 }
 0x608   : > { %v3059_v63 = vpop.permute.xlu0 %3058 }
 0x60a   : > { %7022 = vmatmul.mubr.msk.bf16.gmra.mrb[8].mxu1 %vm1434_vm10, %v7673_v26 }
 0x60b   : > { %2723 = vmatprep.mubr.bf16.mxu1 %v10471_v2 }
 0x60c   : > { %v3163_v19 = vpop.permute.xlu0 %3162 }
 0x610   : > { %v3167_v14 = vpop.permute.xlu0 %3166 }
 0x612   : > { %7029 = vmatmul.mubr.msk.bf16.vlgmr.msra.gmra.mrb[4].mxu1 %vm1434_vm10, %v7674_v1  ;;  %v2953_v1 = vsel %vm1123_vm7, %v2947_v32, %v2951_v55  ;;  %v3062_v55 = vsel %vm1206_vm8, %v3057_v11, %v3053_v28 }
 0x613   : > { %2776 = vmatpush1.bf16.msra.mxu1 %v2752_v3  ;;  %2733 = vmatprep.mubr.bf16.mxu1 %v10471_v2  ;;  %v8816_v3 = vrot.slane %v8666_v31, %v8101_v23 }
 0x614   : > { %2883 = vmatprep.subr.bf16.mxu1 %v2861_v37  ;;  %v8837_v37 = vrot.slane %v8661_v30, %v8101_v23 }
 0x615   : > { %v2967_v62 = vmul.f32 %v8816_v3, %v2955_v58  ;;  %v2965_v26 = vmul.f32 %v8816_v3, %v2954_v38  ;;  %v8846_v58 = vrot.slane %v8666_v31, %v8126_v35 }
 0x616   : > { %v2966_v32 = vmul.f32 %v8837_v37, %v2953_v1  ;;  %v2964_v36 = vmul.f32 %v8837_v37, %v2952_v5  ;;  %v3060_v1 = vsel %vm1206_vm8, %v3053_v28, %v3057_v11 }
 0x617   : > { %v2969_v51 = vpack.c.bf16 %v2967_v62, %v2965_v26  ;;  %v3073_v38 = vmul.f32 %v8846_v58, %v3062_v55  ;;  %v3161_v62 = vpop.permute.xlu1 %3160  ;;  %v3061_v26 = vsel %vm1206_vm8, %v3055_v10, %v3059_v63  ;;  %v7681_v55 = vld [vmem:[%s10526_s9 + $0x68] sm:$0xff]  }
 0x618   : > { %v2968_v52 = vpack.c.bf16 %v2966_v32, %v2964_v36 }
 0x61a   : > { %7030 = vmatmul.mubr.msk.bf16.gmra.mrb[8].mxu1 %vm1434_vm10, %v7675_v53  ;;  %v3063_v53 = vsel %vm1206_vm8, %v3059_v63, %v3055_v10  ;;  %v8878_v10 = vld [vmem:[%s10525_s20 + $0x18] ss:$0 sm:$0xff] }
 0x61b   : > { %2807 = vmatprep.mubr.bf16.mxu1 %v10471_v2  ;;  %v3075_v23 = vmul.f32 %v8846_v58, %v3063_v53 }
 0x61d   : > { %v3077_v31 = vpack.c.bf16 %v3075_v23, %v3073_v38  ;;  %v3169_v23 = vsel %vm1289_vm9, %v3163_v19, %v3167_v14 }
 0x622   : > { %7037 = vmatmul.mubr.msk.bf16.vlgmr.msra.gmra.mrb[4].mxu1 %vm1434_vm10, %v7676_v9  ;;  %v7679_v9 = vld [vmem:[%s10526_s9 + $0x58] sm:$0xff]  }
 0x623   : > { %2884 = vmatpush1.bf16.msra.mxu1 %v2860_v43  ;;  %2817 = vmatprep.mubr.bf16.mxu1 %v10471_v2  ;;  %v3165_v43 = vpop.permute.xlu1 %3164 }
 0x624   : > { %2991 = vmatprep.subr.bf16.mxu1 %v2969_v51  ;;  %v8867_v51 = vrot.slane %v8661_v30, %v8126_v35  ;;  %v3170_v63 = vsel %vm1289_vm9, %v3165_v43, %v3161_v62  ;;  %v7680_v30 = vld [vmem:[%s10526_s9 + $0x60] sm:$0xff]   ;;  %v3168_v36 = vsel %vm1289_vm9, %v3161_v62, %v3165_v43 }
 0x625   : > { %v3181_v28 = vmul.f32 %v8878_v10, %v3170_v63  ;;  %v7684_v62 = vld [vmem:[%s10526_s9 + $0x80] sm:$0xff]  }
 0x626   : > { %v3074_v53 = vmul.f32 %v8867_v51, %v3061_v26  ;;  %v3072_v5 = vmul.f32 %v8867_v51, %v3060_v1 }
 0x627   : > { %v3275_v26 = vpop.permute.xlu1 %3274 }
 0x628   : > { %v3076_v11 = vpack.c.bf16 %v3074_v53, %v3072_v5  ;;  %v3280_v53 = vpop.permute.xlu0 %3279 }
 0x62a   : > { %7038 = vmatmul.mubr.msk.bf16.gmra.mrb[8].mxu1 %vm1434_vm10, %v7677_v60  ;;  %v3171_v60 = vsel %vm1289_vm9, %v3167_v14, %v3163_v19  ;;  %v7685_v14 = vld [vmem:[%s10526_s9 + $0x88] sm:$0xff]  }
 0x62b   : > { %2915 = vmatprep.mubr.bf16.mxu1 %v10471_v2  ;;  %v3183_v35 = vmul.f32 %v8878_v10, %v3171_v60 }
 0x62d   : > { %v3185_v32 = vpack.c.bf16 %v3183_v35, %v3181_v28 }
 0x632   : > { %7045 = vmatmul.mubr.msk.bf16.vlgmr.msra.gmra.mrb[4].mxu1 %vm1434_vm10, %v7678_v61  ;;  %v8900_v61 = vld [vmem:[%s10525_s20 + $0x10] ss:$0 sm:$0xff] }
 0x633   : > { %2992 = vmatpush1.bf16.msra.mxu1 %v2968_v52  ;;  %2925 = vmatprep.mubr.bf16.mxu1 %v10471_v2  ;;  %v3182_v38 = vmul.f32 %v8900_v61, %v3169_v23  ;;  %v7682_v52 = vld [vmem:[%s10526_s9 + $0x70] sm:$0xff]   ;;  %v3180_v19 = vmul.f32 %v8900_v61, %v3168_v36 }
 0x634   : > { %3099 = vmatprep.subr.bf16.mxu1 %v3077_v31 }
 0x635   : > { %v3184_v31 = vpack.c.bf16 %v3182_v38, %v3180_v19 }
 0x63a   : > { %7046 = vmatmul.mubr.msk.bf16.gmra.mrb[8].mxu1 %vm1434_vm10, %v7679_v9  ;;  %v7683_v9 = vld [vmem:[%s10526_s9 + $0x78] sm:$0xff]  }
 0x63b   : > { %3023 = vmatprep.mubr.bf16.mxu1 %v10471_v2 }
 0x642   : > { %7053 = vmatmul.mubr.msk.bf16.vlgmr.msra.gmra.mrb[4].mxu1 %vm1434_vm10, %v7680_v30 }
 0x643   : > { %3100 = vmatpush1.bf16.msra.mxu1 %v3076_v11  ;;  %3033 = vmatprep.mubr.bf16.mxu1 %v10471_v2 }
 0x644   : > { %3207 = vmatprep.subr.bf16.mxu1 %v3185_v32 }
 0x64a   : > { %7054 = vmatmul.mubr.msk.bf16.gmra.mrb[8].mxu1 %vm1434_vm10, %v7681_v55 }
 0x64b   : > { %3131 = vmatprep.mubr.bf16.mxu1 %v10471_v2 }
 0x652   : > { %7061 = vmatmul.mubr.msk.bf16.vlgmr.msra.gmra.mrb[4].mxu1 %vm1434_vm10, %v7682_v52 }
 0x653   : > { %3208 = vmatpush1.bf16.msra.mxu1 %v3184_v31  ;;  %3141 = vmatprep.mubr.bf16.mxu1 %v10471_v2  ;;  %v3285_v31 = vpop.permute.xlu1 %3284 }
 0x65a   : > { %7062 = vmatmul.mubr.msk.bf16.gmra.mrb[8].mxu1 %vm1434_vm10, %v7683_v9 }
 0x65b   : > { %3239 = vmatprep.mubr.bf16.mxu1 %v10471_v2 }
 0x662   : > { %7071 = vmatmul.mubr.msk.bf16.vlgmr.msra.gmra.mrb[4].mxu1 %vm1434_vm10, %v7684_v62  ;;  %v3290_v62 = vpop.permute.xlu0 %3289 }
 0x663   : > { %3249 = vmatprep.mubr.bf16.mxu1 %v10471_v2 }
 0x66a   : > { %7072 = vmatmul.mubr.msk.bf16.gmra.mrb[8].mxu1 %vm1434_vm10, %v7685_v14 }
 0x66b   : > { %3438 = vmatprep.mubr.bf16.mxu1 %v10471_v2 }
 0x735   : > { %v3241_v43 = vpop.f32.mrb[4].mxu1 }
 0x736   : > { %v3292_v60 = vadd.f32 %v3275_v26, %v3241_v43  ;;  %v3243_v1 = vpop.f32.mrb[5].mxu1 }
 0x737   : > { %v3245_v63 = vpop.f32.mrb[6].mxu1  ;;  %v3293_v23 = vadd.f32 %v3275_v26, %v3243_v1 }
 0x738   : > { %v8926_v35 = vmax.f32 %v3292_v60, 0.0  ;;  %v3294_v30 = vadd.f32 %v3280_v53, %v3245_v63  ;;  %v3247_v5 = vpop.f32.mrb[7].mxu1 }
 0x739   : > { %v3295_v38 = vadd.f32 %v3280_v53, %v3247_v5  ;;  %v8940_v52 = vmax.f32 %v3293_v23, 0.0 }
 0x73a   : > { %v8928_v28 = vmax.f32 %v3294_v30, 0.0  ;;  %3528 = vrot.lane.b32.xlu1 %v8926_v35, %s10519_s28 }
 0x73b   : > { %v8944_v19 = vmax.f32 %v3295_v38, 0.0 }
 0x73c   : > { %3530 = vrot.lane.b32.xlu0 %v8928_v28, %s10519_s28 }
 0x73d   : > { %v3251_v11 = vpop.f32.mrb[8].mxu1 }
 0x73e   : > { %3646 = vrot.lane.b32.xlu1 %v8926_v35, %s10520_s4  ;;  %v3253_v32 = vpop.f32.mrb[9].mxu1  ;;  %v3296_v9 = vadd.f32 %v3285_v31, %v3251_v11 }
 0x73f   : > { %v3255_v55 = vpop.f32.mrb[10].mxu1  ;;  %v3297_v60 = vadd.f32 %v3285_v31, %v3253_v32 }
 0x740   : > { %3648 = vrot.lane.b32.xlu0 %v8928_v28, %s10520_s4  ;;  %v3257_v36 = vpop.f32.mrb[11].mxu1  ;;  %v3298_v14 = vadd.f32 %v3290_v62, %v3255_v55  ;;  %v8952_v26 = vmax.f32 %v3296_v9, 0.0 }
 0x741   : > { %v3299_v1 = vadd.f32 %v3290_v62, %v3257_v36  ;;  %v8964_v53 = vmax.f32 %v3297_v60, 0.0  ;;  %v4322_v36 = vld [vmem:[%s10439_s12] sm:$0xff]  ;;  %v4323_v62 = vld [vmem:[%s10439_s12 + $0x8] sm:$0xff] }
 0x742   : > { %3850 = vrot.lane.b32.xlu1 %v8926_v35, %s10521_s0  ;;  %v8956_v43 = vmax.f32 %v3298_v14, 0.0 }
 0x743   : > { %v8968_v63 = vmax.f32 %v3299_v1, 0.0 }
 0x744   : > { %3852 = vrot.lane.b32.xlu0 %v8928_v28, %s10521_s0 }
 0x746   : > { %3536 = vrot.lane.b32.xlu1 %v8940_v52, %s10519_s28 }
 0x748   : > { %3538 = vrot.lane.b32.xlu0 %v8944_v19, %s10519_s28 }
 0x74a   : > { %3654 = vrot.lane.b32.xlu1 %v8940_v52, %s10520_s4 }
 0x74c   : > { %3656 = vrot.lane.b32.xlu0 %v8944_v19, %s10520_s4 }
 0x74e   : > { %3532 = vrot.lane.b32.xlu1 %v8952_v26, %s10519_s28 }
 0x750   : > { %3534 = vrot.lane.b32.xlu0 %v8956_v43, %s10519_s28 }
 0x752   : > { %3650 = vrot.lane.b32.xlu1 %v8952_v26, %s10520_s4 }
 0x754   : > { %3652 = vrot.lane.b32.xlu0 %v8956_v43, %s10520_s4 }
 0x756   : > { %3540 = vrot.lane.b32.xlu1 %v8964_v53, %s10519_s28 }
 0x758   : > { %3542 = vrot.lane.b32.xlu0 %v8968_v63, %s10519_s28 }
 0x75a   : > { %3858 = vrot.lane.b32.xlu1 %v8940_v52, %s10521_s0 }
 0x75c   : > { %3860 = vrot.lane.b32.xlu0 %v8944_v19, %s10521_s0 }
 0x75e   : > { %3658 = vrot.lane.b32.xlu1 %v8964_v53, %s10520_s4 }
 0x760   : > { %3856 = vrot.lane.b32.xlu0 %v8956_v43, %s10521_s0 }
 0x762   : > { %3854 = vrot.lane.b32.xlu1 %v8952_v26, %s10521_s0 }
 0x764   : > { %3970 = vrot.lane.b32.xlu0 %v8928_v28, %s10522_s21 }
 0x766   : > { %3862 = vrot.lane.b32.xlu1 %v8964_v53, %s10521_s0 }
 0x768   : > { %3660 = vrot.lane.b32.xlu0 %v8968_v63, %s10520_s4 }
 0x76a   : > { %3968 = vrot.lane.b32.xlu1 %v8926_v35, %s10522_s21 }
 0x76c   : > { %3978 = vrot.lane.b32.xlu0 %v8944_v19, %s10522_s21 }
 0x76e   : > { %3976 = vrot.lane.b32.xlu1 %v8940_v52, %s10522_s21 }
 0x770   : > { %3974 = vrot.lane.b32.xlu0 %v8956_v43, %s10522_s21 }
 0x772   : > { %3972 = vrot.lane.b32.xlu1 %v8952_v26, %s10522_s21 }
 0x774   : > { %3350 = vrot.lane.b32.xlu0 %v8928_v28, %s10517_s23 }
 0x776   : > { %3980 = vrot.lane.b32.xlu1 %v8964_v53, %s10522_s21 }
 0x778   : > { %3358 = vrot.lane.b32.xlu0 %v8944_v19, %s10517_s23 }
 0x77a   : > { %3348 = vrot.lane.b32.xlu1 %v8926_v35, %s10517_s23 }
 0x77c   : > { %4088 = vrot.lane.b32.xlu0 %v8928_v28, %s10510_s25 }
 0x77e   : > { %3356 = vrot.lane.b32.xlu1 %v8940_v52, %s10517_s23 }
 0x780   : > { %4096 = vrot.lane.b32.xlu0 %v8944_v19, %s10510_s25 }
 0x782   : > { %4086 = vrot.lane.b32.xlu1 %v8926_v35, %s10510_s25 }
 0x784   : > { %3354 = vrot.lane.b32.xlu0 %v8956_v43, %s10517_s23 }
 0x786   : > { %4094 = vrot.lane.b32.xlu1 %v8940_v52, %s10510_s25 }
 0x788   : > { %3864 = vrot.lane.b32.xlu0 %v8968_v63, %s10521_s0 }
 0x78a   : > { %3352 = vrot.lane.b32.xlu1 %v8952_v26, %s10517_s23 }
 0x78c   : > { %4092 = vrot.lane.b32.xlu0 %v8956_v43, %s10510_s25 }
 0x78e   : > { %3360 = vrot.lane.b32.xlu1 %v8964_v53, %s10517_s23 }
 0x790   : > { %3310 = vrot.lane.b32.xlu0 %v8928_v28, %s10518_s24 }
 0x792   : > { %4090 = vrot.lane.b32.xlu1 %v8952_v26, %s10510_s25 }
 0x794   : > { %3318 = vrot.lane.b32.xlu0 %v8944_v19, %s10518_s24 }
 0x796   : > { %4098 = vrot.lane.b32.xlu1 %v8964_v53, %s10510_s25 }
 0x798   : > { %3982 = vrot.lane.b32.xlu0 %v8968_v63, %s10522_s21 }
 0x79a   : > { %3308 = vrot.lane.b32.xlu1 %v8926_v35, %s10518_s24 }
 0x79c   : > { %4206 = vrot.lane.b32.xlu0 %v8928_v28, %s10511_s3 }
 0x79e   : > { %3316 = vrot.lane.b32.xlu1 %v8940_v52, %s10518_s24 }
 0x7a0   : > { %4214 = vrot.lane.b32.xlu0 %v8944_v19, %s10511_s3 }
 0x7a2   : > { %4204 = vrot.lane.b32.xlu1 %v8926_v35, %s10511_s3 }
 0x7a4   : > { %3362 = vrot.lane.b32.xlu0 %v8968_v63, %s10517_s23 }
 0x7a6   : > { %4212 = vrot.lane.b32.xlu1 %v8940_v52, %s10511_s3 }
 0x7a8   : > { %4100 = vrot.lane.b32.xlu0 %v8968_v63, %s10510_s25 }
 0x7aa   : > { %3312 = vrot.lane.b32.xlu1 %v8952_v26, %s10518_s24 }
 0x7ac   : > { %v3529_v30 = vpop.permute.xlu1 %3528  ;;  %3314 = vrot.lane.b32.xlu0 %v8956_v43, %s10518_s24 }
 0x7ae   : > { %v3531_v5 = vpop.permute.xlu0 %3530  ;;  %3320 = vrot.lane.b32.xlu1 %v8964_v53, %s10518_s24 }
 0x7b0   : > { %v3647_v11 = vpop.permute.xlu1 %3646  ;;  %4210 = vrot.lane.b32.xlu0 %v8956_v43, %s10511_s3 }
 0x7b2   : > { %v3649_v32 = vpop.permute.xlu0 %3648  ;;  %4208 = vrot.lane.b32.xlu1 %v8952_v26, %s10511_s3 }
 0x7b4   : > { %v9064_v55 = vpop.permute.xlu1 %3850  ;;  %3322 = vrot.lane.b32.xlu0 %v8968_v63, %s10518_s24 }
 0x7b6   : > { %v9068_v23 = vpop.permute.xlu0 %3852  ;;  %4216 = vrot.lane.b32.xlu1 %v8964_v53, %s10511_s3 }
 0x7b8   : > { %v3537_v38 = vpop.permute.xlu1 %3536  ;;  %4218 = vrot.lane.b32.xlu0 %v8968_v63, %s10511_s3 }
 0x7b9   : > { %v3544_v31 = vsel %vm808_vm2, %v3529_v30, %v3537_v38  ;;  %v3548_v9 = vsel %vm808_vm2, %v3537_v38, %v3529_v30 }
 0x7ba   : > { %v3539_v14 = vpop.permute.xlu0 %3538  ;;  %4328 = vperm.xlu1 %7590, %v4322_v36   ;;  %v3552_v46 = vmul.f32 %v3548_v9, %v8731_v29  ;;  %v3553_v30 = vmul.f32 %v3544_v31, %v8715_v8  ;;  %v4325_v36 = vld [vmem:[%s10439_s12 + $0x18] sm:$0xff] }
 0x7bb   : > { %v3545_v60 = vsel %vm808_vm2, %v3531_v5, %v3539_v14  ;;  %v3549_v1 = vsel %vm808_vm2, %v3539_v14, %v3531_v5 }
 0x7bc   : > { %v3554_v38 = vmul.f32 %v3549_v1, %v8731_v29  ;;  %v3555_v2 = vmul.f32 %v3545_v60, %v8715_v8  ;;  %v3655_v47 = vpop.permute.xlu1 %3654  ;;  %4333 = vperm.xlu0 %7589, %v4323_v62  }
 0x7be   : > { %v3560_v6 = vpack.c.bf16 %v3554_v38, %v3552_v46  ;;  %v3657_v5 = vpop.permute.xlu0 %3656  ;;  %4338 = vperm.xlu1 %7590, %v4324_v42   ;;  %v3561_v14 = vpack.c.bf16 %v3555_v2, %v3553_v30  ;;  %v3662_v2 = vsel %vm891_vm5, %v3647_v11, %v3655_v47 }
 0x7bf   : > { %v3663_v60 = vsel %vm891_vm5, %v3649_v32, %v3657_v5 }
 0x7c0   : > { %3585 = vmatprep.subr.bf16.mxu0 %v3561_v14  ;;  %v3533_v33 = vpop.permute.xlu1 %3532  ;;  %4343 = vperm.xlu0 %7589, %v4325_v36   ;;  %v3673_v30 = vmul.f32 %v3663_v60, %v8739_v49 }
 0x7c1   : > { %3586 = vmatpush1.bf16.msra.mxu0 %v3560_v6  ;;  %v3667_v6 = vsel %vm891_vm5, %v3657_v5, %v3649_v32  ;;  %v3666_v32 = vsel %vm891_vm5, %v3655_v47, %v3647_v11  ;;  %v3671_v5 = vmul.f32 %v3662_v2, %v8739_v49 }
 0x7c2   : > { %v3535_v9 = vpop.permute.xlu0 %3534 }
 0x7c4   : > { %v3651_v31 = vpop.permute.xlu1 %3650 }
 0x7c6   : > { %v3653_v27 = vpop.permute.xlu0 %3652 }
 0x7c8   : > { %v3541_v1 = vpop.permute.xlu1 %3540 }
 0x7c9   : > { %v3546_v62 = vsel %vm808_vm2, %v3533_v33, %v3541_v1  ;;  %v3550_v46 = vsel %vm808_vm2, %v3541_v1, %v3533_v33 }
 0x7ca   : > { %v3543_v42 = vpop.permute.xlu0 %3542  ;;  %v3556_v14 = vmul.f32 %v3550_v46, %v8731_v29  ;;  %v3557_v20 = vmul.f32 %v3546_v62, %v8715_v8  ;;  %v3679_v46 = vpack.c.bf16 %v3673_v30, %v3671_v5 }
 0x7cb   : > { %v3547_v38 = vsel %vm808_vm2, %v3535_v9, %v3543_v42  ;;  %v3551_v36 = vsel %vm808_vm2, %v3543_v42, %v3535_v9  ;;  %v3672_v9 = vmul.f32 %v3667_v6, %v8761_v12  ;;  %v7687_v6 = vld [vmem:[%s10438_s11 + $0x28] sm:$0xff]  }
 0x7cc   : > { %v3558_v33 = vmul.f32 %v3551_v36, %v8731_v29  ;;  %v3559_v1 = vmul.f32 %v3547_v38, %v8715_v8  ;;  %v9117_v22 = vpop.permute.xlu1 %3858  ;;  %v7686_v29 = vld [vmem:[%s10438_s11 + $0x20] sm:$0xff]   ;;  %v3670_v8 = vmul.f32 %v3666_v32, %v8761_v12 }
 0x7ce   : > { %v3562_v60 = vpack.c.bf16 %v3558_v33, %v3556_v14  ;;  %v3861_v39 = vpop.permute.xlu0 %3860  ;;  %v3563_v4 = vpack.c.bf16 %v3559_v1, %v3557_v20  ;;  %v3678_v11 = vpack.c.bf16 %v3672_v9, %v3670_v8  ;;  %v10527_v20 = vmov 0  }
 0x7d0   : > { %v3659_v42 = vpop.permute.xlu1 %3658  ;;  %3587 = vmatprep.subr.bf16.mxu0 %v3563_v4 }
 0x7d1   : > { %3588 = vmatpush1.bf16.msra.mxu0 %v3562_v60  ;;  %v3664_v30 = vsel %vm891_vm5, %v3651_v31, %v3659_v42  ;;  %v3668_v38 = vsel %vm891_vm5, %v3659_v42, %v3651_v31 }
 0x7d2   : > { %3703 = vmatprep.subr.bf16.mxu0 %v3679_v46  ;;  %v9127_v47 = vpop.permute.xlu0 %3856  ;;  %v3674_v1 = vmul.f32 %v3668_v38, %v8761_v12  ;;  %v3675_v32 = vmul.f32 %v3664_v30, %v8739_v49  ;;  %v3767_v30 = vpack.c.bf16 %v8968_v63, %v8964_v53  ;;  %v3867_v53 = vsel %vm1040_vm6, %v9068_v23, %v3861_v39 }
 0x7d4   : > { %v9129_v62 = vpop.permute.xlu1 %3854  ;;  %7091 = vmatmul.mubr.msk.bf16.vlgmr.msra.gmra.mrb[8].mxu0 %vm3399_vm11, %v7686_v29 }
 0x7d5   : > { %3704 = vmatpush1.bf16.msra.mxu0 %v3678_v11  ;;  %3627 = vmatprep.mubr.bf16.mxu0 %v10527_v20  ;;  %v3870_v11 = vsel %vm1040_vm6, %v9117_v22, %v9064_v55 }
 0x7d6   : > { %v9133_v4 = vpop.permute.xlu0 %3970  ;;  %v3875_v38 = vmul.f32 %v3870_v11, %v8785_v50 }
 0x7d8   : > { %v9135_v2 = vpop.permute.xlu1 %3862 }
 0x7da   : > { %v3661_v36 = vpop.permute.xlu0 %3660 }
 0x7db   : > { %v3665_v14 = vsel %vm891_vm5, %v3653_v27, %v3661_v36  ;;  %v3669_v33 = vsel %vm891_vm5, %v3661_v36, %v3653_v27  ;;  %v3765_v27 = vpack.c.bf16 %v8944_v19, %v8940_v52  ;;  %v3764_v52 = vpack.c.bf16 %v8928_v28, %v8926_v35 }
 0x7dc   : > { %v3676_v5 = vmul.f32 %v3669_v33, %v8761_v12  ;;  %v3677_v60 = vmul.f32 %v3665_v14, %v8739_v49  ;;  %v9152_v9 = vpop.permute.xlu1 %3968  ;;  %7092 = vmatmul.mubr.msk.bf16.gmra.mrb[12].mxu0 %vm3399_vm11, %v7687_v6  ;;  %v7688_v49 = vld [vmem:[%s10438_s11 + $0x30] sm:$0xff]   ;;  %v3871_v12 = vsel %vm1040_vm6, %v3861_v39, %v9068_v23  ;;  %v3766_v14 = vpack.c.bf16 %v8956_v43, %v8952_v26  ;;  %v7689_v33 = vld [vmem:[%s10438_s11 + $0x38] sm:$0xff]  }
 0x7dd   : > { %3735 = vmatprep.mubr.bf16.mxu0 %v10527_v20  ;;  %v3877_v19 = vmul.f32 %v3871_v12, %v8785_v50  ;;  %v3866_v26 = vsel %vm1040_vm6, %v9064_v55, %v9117_v22 }
 0x7de   : > { %v3680_v31 = vpack.c.bf16 %v3676_v5, %v3674_v1  ;;  %v9156_v42 = vpop.permute.xlu0 %3978  ;;  %v3681_v46 = vpack.c.bf16 %v3677_v60, %v3675_v32  ;;  %v3876_v32 = vmul.f32 %v3867_v53, %v8807_v44  ;;  %v7690_v60 = vld [vmem:[%s10438_s11 + $0x40] sm:$0xff]  }
 0x7df   : > { %v3883_v28 = vpack.c.bf16 %v3877_v19, %v3875_v38 }
 0x7e0   : > { %v9158_v29 = vpop.permute.xlu1 %3976  ;;  %3705 = vmatprep.subr.bf16.mxu0 %v3681_v46 }
 0x7e1   : > { %3706 = vmatpush1.bf16.msra.mxu0 %v3680_v31  ;;  %v3874_v31 = vmul.f32 %v3866_v26, %v8807_v44  ;;  %v3988_v53 = vsel %vm1123_vm7, %v9158_v29, %v9152_v9 }
 0x7e2   : > { %3789 = vmatprep.subr.bf16.mxu0 %v3765_v27  ;;  %v9168_v8 = vpop.permute.xlu0 %3974 }
 0x7e4   : > { %v9177_v6 = vpop.permute.xlu1 %3972  ;;  %7099 = vmatmul.mubr.msk.bf16.vlgmr.msra.gmra.mrb[8].mxu0 %vm3399_vm11, %v7688_v49 }
 0x7e5   : > { %3790 = vmatpush1.bf16.msra.mxu0 %v3764_v52  ;;  %3745 = vmatprep.mubr.bf16.mxu0 %v10527_v20  ;;  %v3882_v52 = vpack.c.bf16 %v3876_v32, %v3874_v31 }
 0x7e6   : > { %v3351_v36 = vpop.permute.xlu0 %3350  ;;  %3791 = vmatprep.subr.bf16.mxu0 %v3767_v30 }
 0x7e8   : > { %v9186_v35 = vpop.permute.xlu1 %3980 }
 0x7e9   : > { %3792 = vmatpush1.bf16.msra.mxu0 %v3766_v14  ;;  %v3868_v14 = vsel %vm1040_vm6, %v9129_v62, %v9135_v2 }
 0x7ea   : > { %v3359_v1 = vpop.permute.xlu0 %3358  ;;  %3907 = vmatprep.subr.bf16.mxu0 %v3883_v28  ;;  %v3872_v28 = vsel %vm1040_vm6, %v9135_v2, %v9129_v62  ;;  %v3989_v62 = vsel %vm1123_vm7, %v9156_v42, %v9133_v4 }
 0x7eb   : > { %v3365_v5 = vsel %vm670_vm0, %v3351_v36, %v3359_v1  ;;  %v3369_v39 = vsel %vm670_vm0, %v3359_v1, %v3351_v36  ;;  %v7691_v1 = vld [vmem:[%s10438_s11 + $0x48] sm:$0xff]   ;;  %v3879_v32 = vmul.f32 %v3872_v28, %v8785_v50 }
 0x7ec   : > { %v3349_v63 = vpop.permute.xlu1 %3348  ;;  %7100 = vmatmul.mubr.msk.bf16.gmra.mrb[12].mxu0 %vm3399_vm11, %v7689_v33  ;;  %v3374_v46 = vmul.f32 %v3369_v39, %v8670_v45  ;;  %v3375_v27 = vmul.f32 %v3365_v5, %v8674_v34  ;;  %v3984_v39 = vsel %vm1123_vm7, %v9152_v9, %v9158_v29 }
 0x7ed   : > { %3821 = vmatprep.mubr.bf16.mxu0 %v10527_v20 }
 0x7ee   : > { %v9200_v43 = vpop.permute.xlu0 %4088 }
 0x7f0   : > { %v3357_v23 = vpop.permute.xlu1 %3356 }
 0x7f1   : > { %v3364_v22 = vsel %vm670_vm0, %v3349_v63, %v3357_v23  ;;  %v3368_v55 = vsel %vm670_vm0, %v3357_v23, %v3349_v63  ;;  %v3878_v63 = vmul.f32 %v3868_v14, %v8807_v44  ;;  %v3993_v23 = vmul.f32 %v3988_v53, %v8816_v3 }
 0x7f2   : > { %v3372_v49 = vmul.f32 %v3368_v55, %v8670_v45  ;;  %v3373_v12 = vmul.f32 %v3364_v22, %v8674_v34  ;;  %v9219_v11 = vpop.permute.xlu0 %4096  ;;  %v3995_v55 = vmul.f32 %v3989_v62, %v8816_v3  ;;  %v3990_v14 = vsel %vm1123_vm7, %v9186_v35, %v9177_v6 }
 0x7f3   : > { %v4107_v62 = vsel %vm1206_vm8, %v9219_v11, %v9200_v43 }
 0x7f4   : > { %v3380_v19 = vpack.c.bf16 %v3374_v46, %v3372_v49  ;;  %v4087_v30 = vpop.permute.xlu1 %4086  ;;  %7107 = vmatmul.mubr.msk.bf16.vlgmr.msra.gmra.mrb[8].mxu0 %vm3399_vm11, %v7690_v60  ;;  %v3381_v38 = vpack.c.bf16 %v3375_v27, %v3373_v12  ;;  %v7692_v49 = vld [vmem:[%s10438_s11 + $0x50] sm:$0xff]  }
 0x7f5   : > { %3908 = vmatpush1.bf16.msra.mxu0 %v3882_v52  ;;  %3831 = vmatprep.mubr.bf16.mxu0 %v10527_v20 }
 0x7f6   : > { %3406 = vmatprep.subr.bf16.mxu1 %v3381_v38  ;;  %v9223_v36 = vpop.permute.xlu0 %3354  ;;  %v3986_v38 = vsel %vm1123_vm7, %v9177_v6, %v9186_v35 }
 0x7f7   : > { %3407 = vmatpush1.bf16.msra.mxu1 %v3380_v19 }
 0x7f8   : > { %v4095_v33 = vpop.permute.xlu1 %4094 }
 0x7f9   : > { %v4106_v53 = vsel %vm1206_vm8, %v4095_v33, %v4087_v30 }
 0x7fa   : > { %v3865_v26 = vpop.permute.xlu0 %3864 }
 0x7fb   : > { %v3869_v2 = vsel %vm1040_vm6, %v9127_v47, %v3865_v26  ;;  %v3873_v5 = vsel %vm1040_vm6, %v3865_v26, %v9127_v47  ;;  %v3985_v47 = vsel %vm1123_vm7, %v9133_v4, %v9156_v42 }
 0x7fc   : > { %v3880_v60 = vmul.f32 %v3869_v2, %v8807_v44  ;;  %v3881_v31 = vmul.f32 %v3873_v5, %v8785_v50  ;;  %v3353_v22 = vpop.permute.xlu1 %3352  ;;  %7108 = vmatmul.mubr.msk.bf16.gmra.mrb[12].mxu0 %vm3399_vm11, %v7691_v1  ;;  %v3992_v44 = vmul.f32 %v3984_v39, %v8837_v37  ;;  %v4001_v50 = vpack.c.bf16 %v3995_v55, %v3993_v23  ;;  %v7693_v1 = vld [vmem:[%s10438_s11 + $0x58] sm:$0xff]  }
 0x7fd   : > { %3939 = vmatprep.mubr.bf16.mxu0 %v10527_v20  ;;  %v3994_v12 = vmul.f32 %v3985_v47, %v8837_v37  ;;  %v4102_v2 = vsel %vm1206_vm8, %v4087_v30, %v4095_v33  ;;  %v4111_v5 = vmul.f32 %v4106_v53, %v8846_v58 }
 0x7fe   : > { %v3884_v46 = vpack.c.bf16 %v3880_v60, %v3878_v63  ;;  %v9266_v9 = vpop.permute.xlu0 %4092  ;;  %v3885_v29 = vpack.c.bf16 %v3881_v31, %v3879_v32  ;;  %v3996_v63 = vmul.f32 %v3986_v38, %v8837_v37  ;;  %v3997_v32 = vmul.f32 %v3990_v14, %v8816_v3 }
 0x7ff   : > { %v4000_v4 = vpack.c.bf16 %v3994_v12, %v3992_v44  ;;  %v4103_v31 = vsel %vm1206_vm8, %v9200_v43, %v9219_v11  ;;  %v4110_v55 = vmul.f32 %v4102_v2, %v8867_v51 }
 0x800   : > { %v3361_v27 = vpop.permute.xlu1 %3360  ;;  %3909 = vmatprep.subr.bf16.mxu0 %v3885_v29  ;;  %v4112_v29 = vmul.f32 %v4103_v31, %v8867_v51 }
 0x801   : > { %3910 = vmatpush1.bf16.msra.mxu0 %v3884_v46  ;;  %v7694_v46 = vld [vmem:[%s10438_s11 + $0x60] sm:$0xff]   ;;  %v3370_v11 = vsel %vm670_vm0, %v3361_v27, %v3353_v22  ;;  %v3366_v12 = vsel %vm670_vm0, %v3353_v22, %v3361_v27 }
 0x802   : > { %v3311_v52 = vpop.permute.xlu0 %3310  ;;  %4025 = vmatprep.subr.bf16.mxu0 %v4001_v50  ;;  %v4118_v43 = vpack.c.bf16 %v4112_v29, %v4110_v55 }
 0x804   : > { %v4091_v42 = vpop.permute.xlu1 %4090  ;;  %7115 = vmatmul.mubr.msk.bf16.vlgmr.msra.gmra.mrb[8].mxu0 %vm3399_vm11, %v7692_v49 }
 0x805   : > { %4026 = vmatpush1.bf16.msra.mxu0 %v4000_v4  ;;  %3949 = vmatprep.mubr.bf16.mxu0 %v10527_v20  ;;  %v3376_v4 = vmul.f32 %v3370_v11, %v8670_v45 }
 0x806   : > { %v3319_v19 = vpop.permute.xlu0 %3318 }
 0x807   : > { %v3325_v38 = vsel %vm649_vm1, %v3311_v52, %v3319_v19 }
 0x808   : > { %v4099_v28 = vpop.permute.xlu1 %4098  ;;  %v3335_v2 = vmul.f32 %v3325_v38, %v8694_v57  ;;  %v7697_v38 = vld [vmem:[%s10438_s11 + $0x70] sm:$0xff]  }
 0x809   : > { %v4104_v14 = vsel %vm1206_vm8, %v4091_v42, %v4099_v28 }
 0x80a   : > { %v3983_v26 = vpop.permute.xlu0 %3982 }
 0x80b   : > { %v3987_v6 = vsel %vm1123_vm7, %v9168_v8, %v3983_v26  ;;  %v3991_v35 = vsel %vm1123_vm7, %v3983_v26, %v9168_v8  ;;  %v4113_v8 = vmul.f32 %v4107_v62, %v8846_v58  ;;  %v3329_v62 = vsel %vm649_vm1, %v3319_v19, %v3311_v52 }
 0x80c   : > { %v3998_v39 = vmul.f32 %v3987_v6, %v8837_v37  ;;  %v3999_v23 = vmul.f32 %v3991_v35, %v8816_v3  ;;  %v3309_v60 = vpop.permute.xlu1 %3308  ;;  %7116 = vmatmul.mubr.msk.bf16.gmra.mrb[12].mxu0 %vm3399_vm11, %v7693_v1  ;;  %v4108_v1 = vsel %vm1206_vm8, %v4099_v28, %v4091_v42  ;;  %v7695_v35 = vld [vmem:[%s10438_s11 + $0x68] sm:$0xff]   ;;  %v3334_v29 = vmul.f32 %v3329_v62, %v8690_v56 }
 0x80d   : > { %4057 = vmatprep.mubr.bf16.mxu0 %v10527_v20  ;;  %v4119_v3 = vpack.c.bf16 %v4113_v8, %v4111_v5  ;;  %v4114_v5 = vmul.f32 %v4104_v14, %v8867_v51 }
 0x80e   : > { %v4002_v47 = vpack.c.bf16 %v3998_v39, %v3996_v63  ;;  %v4207_v30 = vpop.permute.xlu0 %4206  ;;  %v4003_v33 = vpack.c.bf16 %v3999_v23, %v3997_v32  ;;  %v3377_v32 = vmul.f32 %v3366_v12, %v8674_v34 }
 0x810   : > { %v3317_v37 = vpop.permute.xlu1 %3316  ;;  %4027 = vmatprep.subr.bf16.mxu0 %v4003_v33 }
 0x811   : > { %4028 = vmatpush1.bf16.msra.mxu0 %v4002_v47  ;;  %v3324_v50 = vsel %vm649_vm1, %v3309_v60, %v3317_v37  ;;  %v3328_v63 = vsel %vm649_vm1, %v3317_v37, %v3309_v60 }
 0x812   : > { %v4215_v44 = vpop.permute.xlu0 %4214  ;;  %4143 = vmatprep.subr.bf16.mxu0 %v4119_v3  ;;  %v3333_v22 = vmul.f32 %v3324_v50, %v8694_v57  ;;  %v3332_v52 = vmul.f32 %v3328_v63, %v8690_v56 }
 0x814   : > { %v4205_v49 = vpop.permute.xlu1 %4204  ;;  %7123 = vmatmul.mubr.msk.bf16.vlgmr.msra.gmra.mrb[8].mxu0 %vm3399_vm11, %v7694_v46  ;;  %v3341_v47 = vpack.c.bf16 %v3335_v2, %v3333_v22  ;;  %v7696_v46 = vld [vmem:[%s10438_s11 + $0x10] sm:$0xff]   ;;  %v3340_v50 = vpack.c.bf16 %v3334_v29, %v3332_v52  ;;  %v7699_v2 = vld [vmem:[%s10438_s11 + $0x78] sm:$0xff]   ;;  %v7710_v29 = vld [vmem:[%s10528_s29 + $0x20] ss:$8 sps:$4 sm:$0xff]  }
 0x815   : > { %4144 = vmatpush1.bf16.msra.mxu0 %v4118_v43  ;;  %4067 = vmatprep.mubr.bf16.mxu0 %v10527_v20 }
 0x816   : > { %v3363_v53 = vpop.permute.xlu0 %3362 }
 0x817   : > { %v3367_v27 = vsel %vm670_vm0, %v9223_v36, %v3363_v53  ;;  %v3371_v26 = vsel %vm670_vm0, %v3363_v53, %v9223_v36  ;;  %v4115_v36 = vmul.f32 %v4108_v1, %v8846_v58  ;;  %v7698_v53 = vld [vmem:[%s10438_s11 + $0x18] sm:$0xff]  }
 0x818   : > { %v3378_v42 = vmul.f32 %v3371_v26, %v8670_v45  ;;  %v3379_v28 = vmul.f32 %v3367_v27, %v8674_v34  ;;  %v4213_v6 = vpop.permute.xlu1 %4212  ;;  %v4225_v45 = vsel %vm1289_vm9, %v4215_v44, %v4207_v30 }
 0x819   : > { %v4224_v39 = vsel %vm1289_vm9, %v4213_v6, %v4205_v49  ;;  %v4220_v60 = vsel %vm1289_vm9, %v4205_v49, %v4213_v6 }
 0x81a   : > { %v3382_v34 = vpack.c.bf16 %v3378_v42, %v3376_v4  ;;  %v4101_v19 = vpop.permute.xlu0 %4100  ;;  %v3383_v23 = vpack.c.bf16 %v3379_v28, %v3377_v32  ;;  %v4229_v33 = vmul.f32 %v8878_v10, %v4224_v39  ;;  %v4228_v49 = vmul.f32 %v8900_v61, %v4220_v60 }
 0x81b   : > { %v4105_v31 = vsel %vm1206_vm8, %v9266_v9, %v4101_v19  ;;  %v4109_v8 = vsel %vm1206_vm8, %v4101_v19, %v9266_v9  ;;  %v4221_v9 = vsel %vm1289_vm9, %v4207_v30, %v4215_v44 }
 0x81c   : > { %v4116_v55 = vmul.f32 %v4105_v31, %v8867_v51  ;;  %v4117_v37 = vmul.f32 %v4109_v8, %v8846_v58  ;;  %v3313_v3 = vpop.permute.xlu1 %3312  ;;  %3408 = vmatprep.subr.bf16.mxu1 %v3383_v23  ;;  %7124 = vmatmul.mubr.msk.bf16.gmra.mrb[12].mxu0 %vm3399_vm11, %v7695_v35  ;;  %v4231_v51 = vmul.f32 %v8878_v10, %v4225_v45  ;;  %v7700_v8 = vld [vmem:[%s10438_s11] sm:$0xff]  }
 0x81d   : > { %3409 = vmatpush1.bf16.msra.mxu1 %v3382_v34  ;;  %4175 = vmatprep.mubr.bf16.mxu0 %v10527_v20  ;;  %v4230_v30 = vmul.f32 %v8900_v61, %v4221_v9  ;;  %v7715_v9 = vld [vmem:[%s10528_s29 + $0x34] ss:$8 sps:$4 sm:$0xff]  }
 0x81e   : > { %v4120_v43 = vpack.c.bf16 %v4116_v55, %v4114_v5  ;;  %3475 = vmatprep.subr.bf16.mxu1 %v3341_v47  ;;  %v3315_v58 = vpop.permute.xlu0 %3314  ;;  %v4121_v11 = vpack.c.bf16 %v4117_v37, %v4115_v36  ;;  %v4237_v4 = vpack.c.bf16 %v4231_v51, %v4229_v33  ;;  %v7704_v55 = vld [vmem:[%s10528_s29] ss:$8 sps:$4 sm:$0xff]   ;;  %v7707_v37 = vld [vmem:[%s10528_s29 + $0x10] ss:$8 sps:$4 sm:$0xff]  }
 0x81f   : > { %v4236_v14 = vpack.c.bf16 %v4230_v30, %v4228_v49  ;;  %v7703_v51 = vld [vmem:[%s10438_s11 + $0x88] sm:$0xff]   ;;  %v7719_v49 = vld [vmem:[%s10528_s29 + $0x50] ss:$8 sps:$4 sm:$0xff]  }
 0x820   : > { %v3321_v12 = vpop.permute.xlu1 %3320  ;;  %7079 = vmatmul.mubr.msk.bf16.vlgmr.msra.gmra.mrb[12].mxu1 %vm3399_vm11, %v7696_v46  ;;  %4145 = vmatprep.subr.bf16.mxu0 %v4121_v11  ;;  %v7702_v46 = vld [vmem:[%s10438_s11 + $0x8] sm:$0xff]   ;;  %v7725_v30 = vld [vmem:[%s10528_s29 + $0x70] ss:$8 sps:$4 sm:$0xff]  }
 0x821   : > { %3476 = vmatpush1.bf16.msra.mxu1 %v3340_v50  ;;  %4146 = vmatpush1.bf16.msra.mxu0 %v4120_v43  ;;  %v3326_v63 = vsel %vm649_vm1, %v3313_v3, %v3321_v12  ;;  %v3330_v22 = vsel %vm649_vm1, %v3321_v12, %v3313_v3  ;;  %v7712_v3 = vld [vmem:[%s10528_s29 + $0x24] ss:$8 sps:$4 sm:$0xff]   ;;  %v7713_v43 = vld [vmem:[%s10528_s29 + $0x30] ss:$8 sps:$4 sm:$0xff]   ;;  %v7716_v11 = vld [vmem:[%s10528_s29 + $0x40] ss:$8 sps:$4 sm:$0xff]  }
 0x822   : > { %v4211_v44 = vpop.permute.xlu0 %4210  ;;  %4261 = vmatprep.subr.bf16.mxu0 %v4237_v4  ;;  %3448 = vmatprep.mubr.bf16.mxu1 %v10527_v20  ;;  %v3336_v62 = vmul.f32 %v3330_v22, %v8690_v56  ;;  %v3337_v42 = vmul.f32 %v3326_v63, %v8694_v57  ;;  %v7721_v50 = vld [vmem:[%s10528_s29 + $0x54] ss:$8 sps:$4 sm:$0xff]   ;;  %v7724_v12 = vld [vmem:[%s10528_s29 + $0x64] ss:$8 sps:$4 sm:$0xff]   ;;  %v7722_v4 = vld [vmem:[%s10528_s29 + $0x60] ss:$8 sps:$4 sm:$0xff]  }
 0x823   : > { %v7736_v63 = vld [vmem:[%s10528_s29 + $0xa4] ss:$8 sps:$4 sm:$0xff]   ;;  %v7734_v22 = vld [vmem:[%s10528_s29 + $0xa0] ss:$8 sps:$4 sm:$0xff]  }
 0x824   : > { %v4209_v1 = vpop.permute.xlu1 %4208  ;;  %7131 = vmatmul.mubr.msk.bf16.vlgmr.msra.gmra.mrb[8].mxu0 %vm3399_vm11, %v7697_v38  ;;  %v7727_v38 = vld [vmem:[%s10528_s29 + $0x74] ss:$8 sps:$4 sm:$0xff]  }
 0x825   : > { %4262 = vmatpush1.bf16.msra.mxu0 %v4236_v14  ;;  %4185 = vmatprep.mubr.bf16.mxu0 %v10527_v20  ;;  %v7728_v14 = vld [vmem:[%s10528_s29 + $0x80] ss:$8 sps:$4 sm:$0xff]  }
 0x826   : > { %v3323_v27 = vpop.permute.xlu0 %3322 }
 0x827   : > { %v3327_v26 = vsel %vm649_vm1, %v3315_v58, %v3323_v27  ;;  %v3331_v32 = vsel %vm649_vm1, %v3323_v27, %v3315_v58  ;;  %v7718_v58 = vld [vmem:[%s10528_s29 + $0x44] ss:$8 sps:$4 sm:$0xff]   ;;  %v7739_v27 = vld [vmem:[%s10528_s29 + $0xb4] ss:$8 sps:$4 sm:$0xff]  }
 0x828   : > { %v3338_v28 = vmul.f32 %v3331_v32, %v8690_v56  ;;  %v3339_v6 = vmul.f32 %v3327_v26, %v8694_v57  ;;  %v4217_v35 = vpop.permute.xlu1 %4216  ;;  %7080 = vmatmul.mubr.msk.bf16.gmra.mrb[16].mxu1 %vm3399_vm11, %v7698_v53  ;;  %v7706_v57 = vld [vmem:[%s10528_s29 + $0x4] ss:$8 sps:$4 sm:$0xff]   ;;  %v7731_v53 = vld [vmem:[%s10528_s29 + $0x90] ss:$8 sps:$4 sm:$0xff]  }
 0x829   : > { %v4222_v5 = vsel %vm1289_vm9, %v4209_v1, %v4217_v35  ;;  %v4226_v36 = vsel %vm1289_vm9, %v4217_v35, %v4209_v1  ;;  %3507 = vmatprep.mubr.bf16.mxu1 %v10527_v20  ;;  %v7733_v1 = vld [vmem:[%s10528_s29 + $0x94] ss:$8 sps:$4 sm:$0xff]   ;;  %v7737_v26 = vld [vmem:[%s10528_s29 + $0xb0] ss:$8 sps:$4 sm:$0xff]   ;;  %v7742_v32 = vld [vmem:[%s10528_s29 + $0xc4] ss:$8 sps:$4 sm:$0xff]  }
 0x82a   : > { %v3342_v39 = vpack.c.bf16 %v3338_v28, %v3336_v62  ;;  %v4219_v52 = vpop.permute.xlu0 %4218  ;;  %v3343_v56 = vpack.c.bf16 %v3339_v6, %v3337_v42  ;;  %v4232_v45 = vmul.f32 %v8900_v61, %v4222_v5  ;;  %v4233_v23 = vmul.f32 %v8878_v10, %v4226_v36  ;;  %v7740_v62 = vld [vmem:[%s10528_s29 + $0xc0] ss:$8 sps:$4 sm:$0xff]   ;;  %v7745_v42 = vld [vmem:[%s10528_s29 + $0xd4] ss:$8 sps:$4 sm:$0xff]   ;;  %v7743_v28 = vld [vmem:[%s10528_s29 + $0xd0] ss:$8 sps:$4 sm:$0xff]  }
 0x82b   : > { %v4223_v34 = vsel %vm1289_vm9, %v4211_v44, %v4219_v52  ;;  %v4227_v19 = vsel %vm1289_vm9, %v4219_v52, %v4211_v44  ;;  %v7730_v44 = vld [vmem:[%s10528_s29 + $0x84] ss:$8 sps:$4 sm:$0xff]   ;;  %v7746_v35 = vld [vmem:[%s10528_s29 + $0xe0] ss:$8 sps:$4 sm:$0xff]   ;;  %v7749_v5 = vld [vmem:[%s10528_s29 + $0xf0] ss:$8 sps:$4 sm:$0xff]  }
 0x82c   : > { %v4234_v60 = vmul.f32 %v8900_v61, %v4223_v34  ;;  %v4235_v31 = vmul.f32 %v8878_v10, %v4227_v19  ;;  %3477 = vmatprep.subr.bf16.mxu1 %v3343_v56  ;;  %7132 = vmatmul.mubr.msk.bf16.gmra.mrb[12].mxu0 %vm3399_vm11, %v7699_v2  ;;  %v7709_v10 = vld [vmem:[%s10528_s29 + $0x14] ss:$8 sps:$4 sm:$0xff]   ;;  %v7701_v61 = vld [vmem:[%s10438_s11 + $0x80] sm:$0xff]  }
 0x82d   : > { %3478 = vmatpush1.bf16.msra.mxu1 %v3342_v39  ;;  %4293 = vmatprep.mubr.bf16.mxu0 %v10527_v20  ;;  %v7748_v6 = vld [vmem:[%s10528_s29 + $0xe4] ss:$8 sps:$4 sm:$0xff]   ;;  %v7751_v2 = vld [vmem:[%s10528_s29 + $0xf4] ss:$8 sps:$4 sm:$0xff]  }
 0x82e   : > { %v4238_v47 = vpack.c.bf16 %v4234_v60, %v4232_v45  ;;  %v4239_v33 = vpack.c.bf16 %v4235_v31, %v4233_v23  ;;  %4558 = vmatprep.subr.bf16.mxu1 %v7706_v57 }
 0x830   : > { %7083 = vmatmul.mubr.msk.bf16.vlgmr.msra.gmra.mrb[12].mxu1 %vm3399_vm11, %v7700_v8  ;;  %4263 = vmatprep.subr.bf16.mxu0 %v4239_v33 }
 0x831   : > { %4264 = vmatpush1.bf16.msra.mxu0 %v4238_v47  ;;  %3517 = vmatprep.mubr.bf16.mxu1 %v10527_v20 }
 0x832   : > { %4559 = vmatpush1.bf16.msra.mxu1 %v7704_v55 }
 0x833   : > { %4560 = vmatprep.subr.bf16.mxu1 %v7709_v10 }
 0x834   : > { %7139 = vmatmul.mubr.msk.bf16.vlgmr.msra.gmra.mrb[8].mxu0 %vm3399_vm11, %v7701_v61 }
 0x835   : > { %4303 = vmatprep.mubr.bf16.mxu0 %v10527_v20 }
 0x836   : > { %4561 = vmatpush1.bf16.msra.mxu1 %v7707_v37 }
 0x837   : > { %4562 = vmatprep.subr.bf16.mxu1 %v7712_v3 }
 0x838   : > { %7084 = vmatmul.mubr.msk.bf16.gmra.mrb[16].mxu1 %vm3399_vm11, %v7702_v46 }
 0x839   : > { %v4329_v19 = vpop.permute.xlu1 %4328 }
 0x83a   : > { %4563 = vmatpush1.bf16.msra.mxu1 %v7710_v29 }
 0x83b   : > { %4564 = vmatprep.subr.bf16.mxu1 %v7715_v9  ;;  %v4334_v33 = vpop.permute.xlu0 %4333 }
 0x83c   : > { %7140 = vmatmul.mubr.msk.bf16.gmra.mrb[12].mxu0 %vm3399_vm11, %v7703_v51 }
 0x83d   : > { %4709 = vmatprep.mubr.bf16.mxu0 %v10527_v20 }
 0x83e   : > { %4565 = vmatpush1.bf16.msra.mxu1 %v7713_v43 }
 0x83f   : > { %4566 = vmatprep.subr.bf16.mxu1 %v7718_v58 }
 0x842   : > { %4567 = vmatpush1.bf16.msra.mxu1 %v7716_v11 }
 0x843   : > { %4568 = vmatprep.subr.bf16.mxu1 %v7721_v50 }
 0x846   : > { %4569 = vmatpush1.bf16.msra.mxu1 %v7719_v49 }
 0x847   : > { %4570 = vmatprep.subr.bf16.mxu1 %v7724_v12 }
 0x84a   : > { %4571 = vmatpush1.bf16.msra.mxu1 %v7722_v4 }
 0x84b   : > { %4572 = vmatprep.subr.bf16.mxu1 %v7727_v38  ;;  %v4339_v38 = vpop.permute.xlu1 %4338 }
 0x84e   : > { %4573 = vmatpush1.bf16.msra.mxu1 %v7725_v30 }
 0x84f   : > { %4574 = vmatprep.subr.bf16.mxu1 %v7730_v44 }
 0x852   : > { %4575 = vmatpush1.bf16.msra.mxu1 %v7728_v14 }
 0x853   : > { %4576 = vmatprep.subr.bf16.mxu1 %v7733_v1 }
 0x856   : > { %4577 = vmatpush1.bf16.msra.mxu1 %v7731_v53 }
 0x857   : > { %4578 = vmatprep.subr.bf16.mxu1 %v7736_v63 }
 0x85a   : > { %4579 = vmatpush1.bf16.msra.mxu1 %v7734_v22  ;;  %v4344_v22 = vpop.permute.xlu0 %4343 }
 0x85b   : > { %4580 = vmatprep.subr.bf16.mxu1 %v7739_v27 }
 0x85e   : > { %4581 = vmatpush1.bf16.msra.mxu1 %v7737_v26 }
 0x85f   : > { %4582 = vmatprep.subr.bf16.mxu1 %v7742_v32 }
 0x862   : > { %4583 = vmatpush1.bf16.msra.mxu1 %v7740_v62 }
 0x863   : > { %4584 = vmatprep.subr.bf16.mxu1 %v7745_v42 }
 0x866   : > { %4585 = vmatpush1.bf16.msra.mxu1 %v7743_v28 }
 0x867   : > { %4586 = vmatprep.subr.bf16.mxu1 %v7748_v6 }
 0x86a   : > { %4587 = vmatpush1.bf16.msra.mxu1 %v7746_v35 }
 0x86b   : > { %4588 = vmatprep.subr.bf16.mxu1 %v7751_v2 }
 0x86e   : > { %4589 = vmatpush1.bf16.msra.mxu1 %v7749_v5 }
 0x903   : > { %v3509_v36 = vpop.f32.mrb[12].mxu1 }
 0x904   : > { %v3511_v39 = vpop.f32.mrb[13].mxu1 }
 0x905   : > { %v3513_v52 = vpop.f32.mrb[14].mxu1 }
 0x906   : > { %v3515_v56 = vpop.f32.mrb[15].mxu1 }
 0x907   : > { %v4295_v57 = vpop.f32.mrb[8].mxu0 }
 0x908   : > { %v7280_v45 = vadd.f32 %v4295_v57, %v3509_v36  ;;  %v4297_v34 = vpop.f32.mrb[9].mxu0 }
 0x909   : > { %v7281_v23 = vadd.f32 %v4297_v34, %v3511_v39  ;;  %v4299_v60 = vpop.f32.mrb[10].mxu0 }
 0x90a   : > { %v4346_v31 = vadd.f32 %v7280_v45, %v4329_v19  ;;  %v7282_v8 = vadd.f32 %v4299_v60, %v3513_v52  ;;  %v4301_v47 = vpop.f32.mrb[11].mxu0 }
 0x90b   : > { %v4347_v55 = vadd.f32 %v7281_v23, %v4329_v19  ;;  %v7283_v10 = vadd.f32 %v4301_v47, %v3515_v56  ;;  %v3519_v61 = vpop.f32.mrb[16].mxu1 }
 0x90c   : > { %v4348_v37 = vadd.f32 %v7282_v8, %v4334_v33  ;;  %v3521_v3 = vpop.f32.mrb[17].mxu1  ;;  %v4354_v9 = vmax.f32 %v4346_v31, 0.0 }
 0x90d   : > { %v4349_v46 = vadd.f32 %v7283_v10, %v4334_v33  ;;  %v3523_v29 = vpop.f32.mrb[18].mxu1  ;;  %v4355_v58 = vmax.f32 %v4347_v55, 0.0 }
 0x90e   : > { %v4356_v51 = vmax.f32 %v4348_v37, 0.0  ;;  %v3525_v43 = vpop.f32.mrb[19].mxu1 }
 0x90f   : > { %v4357_v11 = vmax.f32 %v4349_v46, 0.0  ;;  %v4305_v50 = vpop.f32.mrb[12].mxu0 }
 0x910   : > { %v4362_v49 = vpack.c.bf16 %v4356_v51, %v4354_v9  ;;  %v7284_v12 = vadd.f32 %v4305_v50, %v3519_v61  ;;  %v4307_v4 = vpop.f32.mrb[13].mxu0 }
 0x911   : > { %v7285_v30 = vadd.f32 %v4307_v4, %v3521_v3  ;;  %v4309_v44 = vpop.f32.mrb[14].mxu0  ;;  %v4363_v14 = vpack.c.bf16 %v4357_v11, %v4355_v58 }
 0x912   : > { %v4350_v1 = vadd.f32 %v7284_v12, %v4339_v38  ;;  %v7286_v53 = vadd.f32 %v4309_v44, %v3523_v29  ;;  %v4311_v63 = vpop.f32.mrb[15].mxu0 }
 0x913   : > { %v4351_v27 = vadd.f32 %v7285_v30, %v4339_v38  ;;  %v7287_v26 = vadd.f32 %v4311_v63, %v3525_v43  ;;  %4590 = vmatprep.mubr.bf16.mxu1 %v4363_v14 }
 0x914   : > { %v4352_v32 = vadd.f32 %v7286_v53, %v4344_v22  ;;  %4591 = vmatmul.mubr.bf16.vlgmr.msra.gmra.mrb[20].mxu1 %v4362_v49  ;;  %v4358_v42 = vmax.f32 %v4350_v1, 0.0 }
 0x915   : > { %v4353_v62 = vadd.f32 %v7287_v26, %v4344_v22  ;;  %v4359_v6 = vmax.f32 %v4351_v27, 0.0 }
 0x916   : > { %v4360_v28 = vmax.f32 %v4352_v32, 0.0 }
 0x917   : > { %v4361_v35 = vmax.f32 %v4353_v62, 0.0 }
 0x918   : > { %v4364_v2 = vpack.c.bf16 %v4360_v28, %v4358_v42  ;;  %v7752_v28 = vld [vmem:[%s10441_s14] sm:$0xff]  }
 0x919   : > { %v4365_v5 = vpack.c.bf16 %v4361_v35, %v4359_v6 }
 0x91b   : > { %4600 = vmatprep.mubr.bf16.mxu1 %v4365_v5 }
 0x91c   : > { %4601 = vmatmul.mubr.bf16.gmra.mrb[24].mxu1 %v4364_v2 }
 0x91d   : > { %6172 = vmatprep.mubr.bf16.mxu1 %v10527_v20 }
 0x9e7   : > { %v9536_v36 = vpop.f32.mrb[20].mxu1 }
 0x9e8   : > { %4631 = vrot.lane.b32.xlu1 %v9536_v36, %s10518_s24  ;;  %v9540_v39 = vpop.f32.mrb[21].mxu1 }
 0x9e9   : > { %v9542_v52 = vpop.f32.mrb[22].mxu1 }
 0x9ea   : > { %4633 = vrot.lane.b32.xlu0 %v9542_v52, %s10518_s24  ;;  %v9546_v56 = vpop.f32.mrb[23].mxu1  ;;  %v5341_v57 = vpack.c.bf16 %v9542_v52, %v9536_v36 }
 0x9eb   : > { %v5342_v45 = vpack.c.bf16 %v9546_v56, %v9540_v39 }
 0x9ec   : > { %4639 = vrot.lane.b32.xlu1 %v9540_v39, %s10518_s24 }
 0x9ee   : > { %4641 = vrot.lane.b32.xlu0 %v9546_v56, %s10518_s24 }
 0x9ef   : > { %v9556_v34 = vpop.f32.mrb[24].mxu1 }
 0x9f0   : > { %4635 = vrot.lane.b32.xlu1 %v9556_v34, %s10518_s24  ;;  %v9560_v19 = vpop.f32.mrb[25].mxu1 }
 0x9f1   : > { %v9562_v23 = vpop.f32.mrb[26].mxu1 }
 0x9f2   : > { %4637 = vrot.lane.b32.xlu0 %v9562_v23, %s10518_s24  ;;  %v9566_v60 = vpop.f32.mrb[27].mxu1  ;;  %v5343_v31 = vpack.c.bf16 %v9562_v23, %v9556_v34 }
 0x9f3   : > { %v5344_v8 = vpack.c.bf16 %v9566_v60, %v9560_v19 }
 0x9f4   : > { %4643 = vrot.lane.b32.xlu1 %v9560_v19, %s10518_s24 }
 0x9f6   : > { %4645 = vrot.lane.b32.xlu0 %v9566_v60, %s10518_s24 }
 0x9f8   : > { %4611 = vrot.lane.b32.xlu1 %v8419_v59, %s10518_s24 }
 0x9fa   : > { %4613 = vrot.lane.b32.xlu0 %v8430_v13, %s10518_s24 }
 0x9fc   : > { %4615 = vrot.lane.b32.xlu1 %v8437_v24, %s10518_s24 }
 0x9fe   : > { %4617 = vrot.lane.b32.xlu0 %v8444_v25, %s10518_s24 }
 0xa00   : > { %4771 = vrot.lane.b32.xlu1 %v8419_v59, %s10517_s23 }
 0xa02   : > { %4773 = vrot.lane.b32.xlu0 %v8430_v13, %s10517_s23 }
 0xa04   : > { %4775 = vrot.lane.b32.xlu1 %v8437_v24, %s10517_s23 }
 0xa06   : > { %4777 = vrot.lane.b32.xlu0 %v8444_v25, %s10517_s23 }
 0xa08   : > { %4847 = vrot.lane.b32.xlu1 %v9536_v36, %s10517_s23 }
 0xa0a   : > { %4849 = vrot.lane.b32.xlu0 %v9542_v52, %s10517_s23 }
 0xa0c   : > { %4855 = vrot.lane.b32.xlu1 %v9540_v39, %s10517_s23 }
 0xa0e   : > { %4857 = vrot.lane.b32.xlu0 %v9546_v56, %s10517_s23 }
 0xa10   : > { %4851 = vrot.lane.b32.xlu1 %v9556_v34, %s10517_s23 }
 0xa12   : > { %4853 = vrot.lane.b32.xlu0 %v9562_v23, %s10517_s23 }
 0xa14   : > { %4859 = vrot.lane.b32.xlu1 %v9560_v19, %s10517_s23 }
 0xa16   : > { %4861 = vrot.lane.b32.xlu0 %v9566_v60, %s10517_s23 }
 0xa18   : > { %4941 = vrot.lane.b32.xlu1 %v8419_v59, %s10519_s28 }
 0xa1a   : > { %4943 = vrot.lane.b32.xlu0 %v8430_v13, %s10519_s28 }
 0xa1c   : > { %4945 = vrot.lane.b32.xlu1 %v8437_v24, %s10519_s28 }
 0xa1e   : > { %4947 = vrot.lane.b32.xlu0 %v8444_v25, %s10519_s28 }
 0xa20   : > { %5017 = vrot.lane.b32.xlu1 %v9536_v36, %s10519_s28 }
 0xa22   : > { %5019 = vrot.lane.b32.xlu0 %v9542_v52, %s10519_s28 }
 0xa24   : > { %5025 = vrot.lane.b32.xlu1 %v9540_v39, %s10519_s28 }
 0xa26   : > { %5027 = vrot.lane.b32.xlu0 %v9546_v56, %s10519_s28 }
 0xa28   : > { %5021 = vrot.lane.b32.xlu1 %v9556_v34, %s10519_s28 }
 0xa2a   : > { %5023 = vrot.lane.b32.xlu0 %v9562_v23, %s10519_s28 }
 0xa2c   : > { %5029 = vrot.lane.b32.xlu1 %v9560_v19, %s10519_s28 }
 0xa2e   : > { %5031 = vrot.lane.b32.xlu0 %v9566_v60, %s10519_s28 }
 0xa30   : > { %5111 = vrot.lane.b32.xlu1 %v8419_v59, %s10520_s4 }
 0xa32   : > { %5113 = vrot.lane.b32.xlu0 %v8430_v13, %s10520_s4 }
 0xa34   : > { %5115 = vrot.lane.b32.xlu1 %v8437_v24, %s10520_s4 }
 0xa36   : > { %5117 = vrot.lane.b32.xlu0 %v8444_v25, %s10520_s4 }
 0xa38   : > { %5187 = vrot.lane.b32.xlu1 %v9536_v36, %s10520_s4 }
 0xa3a   : > { %5189 = vrot.lane.b32.xlu0 %v9542_v52, %s10520_s4 }
 0xa3c   : > { %5195 = vrot.lane.b32.xlu1 %v9540_v39, %s10520_s4 }
 0xa3e   : > { %5197 = vrot.lane.b32.xlu0 %v9546_v56, %s10520_s4 }
 0xa40   : > { %5191 = vrot.lane.b32.xlu1 %v9556_v34, %s10520_s4 }
 0xa42   : > { %5193 = vrot.lane.b32.xlu0 %v9562_v23, %s10520_s4 }
 0xa44   : > { %5199 = vrot.lane.b32.xlu1 %v9560_v19, %s10520_s4 }
 0xa46   : > { %5201 = vrot.lane.b32.xlu0 %v9566_v60, %s10520_s4 }
 0xa48   : > { %5467 = vrot.lane.b32.xlu1 %v9536_v36, %s10521_s0 }
 0xa4a   : > { %5469 = vrot.lane.b32.xlu0 %v9542_v52, %s10521_s0 }
 0xa4c   : > { %5475 = vrot.lane.b32.xlu1 %v9540_v39, %s10521_s0 }
 0xa4e   : > { %5477 = vrot.lane.b32.xlu0 %v9546_v56, %s10521_s0 }
 0xa50   : > { %5471 = vrot.lane.b32.xlu1 %v9556_v34, %s10521_s0 }
 0xa52   : > { %5473 = vrot.lane.b32.xlu0 %v9562_v23, %s10521_s0 }
 0xa54   : > { %5479 = vrot.lane.b32.xlu1 %v9560_v19, %s10521_s0 }
 0xa56   : > { %5481 = vrot.lane.b32.xlu0 %v9566_v60, %s10521_s0 }
 0xa58   : > { %5561 = vrot.lane.b32.xlu1 %v8419_v59, %s10522_s21 }
 0xa5a   : > { %v4632_v47 = vpop.permute.xlu1 %4631  ;;  %5563 = vrot.lane.b32.xlu0 %v8430_v13, %s10522_s21 }
 0xa5c   : > { %v4634_v33 = vpop.permute.xlu0 %4633  ;;  %5565 = vrot.lane.b32.xlu1 %v8437_v24, %s10522_s21 }
 0xa5e   : > { %v4640_v55 = vpop.permute.xlu1 %4639  ;;  %5567 = vrot.lane.b32.xlu0 %v8444_v25, %s10522_s21 }
 0xa5f   : > { %v4647_v10 = vsel %vm649_vm1, %v4632_v47, %v4640_v55  ;;  %v4651_v61 = vsel %vm649_vm1, %v4640_v55, %v4632_v47 }
 0xa60   : > { %v4642_v37 = vpop.permute.xlu0 %4641  ;;  %5637 = vrot.lane.b32.xlu1 %v9536_v36, %s10522_s21  ;;  %v4655_v29 = vmul.f32 %v4651_v61, %v8002_v17  ;;  %v4656_v9 = vmul.f32 %v4647_v10, %v8006_v18 }
 0xa61   : > { %v4648_v3 = vsel %vm649_vm1, %v4634_v33, %v4642_v37  ;;  %v4652_v46 = vsel %vm649_vm1, %v4642_v37, %v4634_v33 }
 0xa62   : > { %v4657_v51 = vmul.f32 %v4652_v46, %v8002_v17  ;;  %v4658_v43 = vmul.f32 %v4648_v3, %v8006_v18  ;;  %v4636_v58 = vpop.permute.xlu1 %4635  ;;  %5639 = vrot.lane.b32.xlu0 %v9542_v52, %s10522_s21 }
 0xa64   : > { %v4663_v11 = vpack.c.bf16 %v4657_v51, %v4655_v29  ;;  %5645 = vrot.lane.b32.xlu1 %v9540_v39, %s10522_s21  ;;  %v4638_v50 = vpop.permute.xlu0 %4637  ;;  %v4664_v49 = vpack.c.bf16 %v4658_v43, %v4656_v9 }
 0xa66   : > { %4677 = vmatprep.subr.bf16.mxu0 %v4664_v49  ;;  %v4644_v12 = vpop.permute.xlu1 %4643  ;;  %5647 = vrot.lane.b32.xlu0 %v9546_v56, %s10522_s21 }
 0xa67   : > { %v4649_v4 = vsel %vm649_vm1, %v4636_v58, %v4644_v12  ;;  %v4653_v38 = vsel %vm649_vm1, %v4644_v12, %v4636_v58  ;;  %4678 = vmatpush1.bf16.msra.mxu0 %v4663_v11 }
 0xa68   : > { %5641 = vrot.lane.b32.xlu1 %v9556_v34, %s10522_s21  ;;  %v4646_v30 = vpop.permute.xlu0 %4645  ;;  %v4659_v1 = vmul.f32 %v4653_v38, %v8002_v17  ;;  %v4660_v53 = vmul.f32 %v4649_v4, %v8006_v18 }
 0xa69   : > { %v4650_v44 = vsel %vm649_vm1, %v4638_v50, %v4646_v30  ;;  %v4654_v14 = vsel %vm649_vm1, %v4646_v30, %v4638_v50 }
 0xa6a   : > { %v4661_v63 = vmul.f32 %v4654_v14, %v8002_v17  ;;  %v4662_v22 = vmul.f32 %v4650_v44, %v8006_v18  ;;  %v4612_v27 = vpop.permute.xlu1 %4611  ;;  %5643 = vrot.lane.b32.xlu0 %v9562_v23, %s10522_s21  ;;  %v7753_v44 = vld [vmem:[%s10440_s13] sm:$0xff]  }
 0xa6c   : > { %v4665_v26 = vpack.c.bf16 %v4661_v63, %v4659_v1  ;;  %5649 = vrot.lane.b32.xlu1 %v9560_v19, %s10522_s21  ;;  %v4614_v32 = vpop.permute.xlu0 %4613  ;;  %v4666_v62 = vpack.c.bf16 %v4662_v22, %v4660_v53 }
 0xa6e   : > { %v4616_v42 = vpop.permute.xlu1 %4615  ;;  %5651 = vrot.lane.b32.xlu0 %v9566_v60, %s10522_s21  ;;  %4679 = vmatprep.subr.bf16.mxu0 %v4666_v62 }
 0xa6f   : > { %v4619_v6 = vsel %vm649_vm1, %v4612_v27, %v4616_v42  ;;  %v4621_v35 = vsel %vm649_vm1, %v4616_v42, %v4612_v27  ;;  %4680 = vmatpush1.bf16.msra.mxu0 %v4665_v26 }
 0xa70   : > { %5731 = vrot.lane.b32.xlu1 %v8419_v59, %s10510_s25  ;;  %v4618_v2 = vpop.permute.xlu0 %4617  ;;  %v4623_v5 = vmul.f32 %v4621_v35, %v8002_v17  ;;  %v4624_v55 = vmul.f32 %v4619_v6, %v8006_v18 }
 0xa71   : > { %v4620_v47 = vsel %vm649_vm1, %v4614_v32, %v4618_v2  ;;  %v4622_v33 = vsel %vm649_vm1, %v4618_v2, %v4614_v32 }
 0xa72   : > { %v4625_v10 = vmul.f32 %v4622_v33, %v8002_v17  ;;  %v4626_v61 = vmul.f32 %v4620_v47, %v8006_v18  ;;  %v4772_v37 = vpop.permute.xlu1 %4771  ;;  %5733 = vrot.lane.b32.xlu0 %v8430_v13, %s10510_s25  ;;  %7174 = vmatmul.mubr.msk.bf16.vlgmr.msra.gmra.mrb[16].mxu0 %vm3399_vm11, %v7752_v28  ;;  %v7754_v33 = vld [vmem:[%s10440_s13 + $0x8] sm:$0xff]  }
 0xa73   : > { %4760 = vmatprep.mubr.bf16.mxu0 %v10527_v20 }
 0xa74   : > { %v4627_v3 = vpack.c.bf16 %v4625_v10, %v4623_v5  ;;  %5735 = vrot.lane.b32.xlu1 %v8437_v24, %s10510_s25  ;;  %v4774_v46 = vpop.permute.xlu0 %4773  ;;  %v4628_v29 = vpack.c.bf16 %v4626_v61, %v4624_v55 }
 0xa76   : > { %v4776_v9 = vpop.permute.xlu1 %4775  ;;  %5737 = vrot.lane.b32.xlu0 %v8444_v25, %s10510_s25  ;;  %4728 = vmatprep.subr.bf16.mxu0 %v4628_v29 }
 0xa77   : > { %v4779_v51 = vsel %vm670_vm0, %v4772_v37, %v4776_v9  ;;  %v4781_v43 = vsel %vm670_vm0, %v4776_v9, %v4772_v37  ;;  %4729 = vmatpush1.bf16.msra.mxu0 %v4627_v3 }
 0xa78   : > { %5807 = vrot.lane.b32.xlu1 %v9536_v36, %s10510_s25  ;;  %v4778_v58 = vpop.permute.xlu0 %4777  ;;  %v4783_v49 = vmul.f32 %v4781_v43, %v7998_v16  ;;  %v4784_v12 = vmul.f32 %v4779_v51, %v7994_v15 }
 0xa79   : > { %v4780_v11 = vsel %vm670_vm0, %v4774_v46, %v4778_v58  ;;  %v4782_v50 = vsel %vm670_vm0, %v4778_v58, %v4774_v46 }
 0xa7a   : > { %v4785_v4 = vmul.f32 %v4782_v50, %v7998_v16  ;;  %v4786_v38 = vmul.f32 %v4780_v11, %v7994_v15  ;;  %v4848_v30 = vpop.permute.xlu1 %4847  ;;  %5809 = vrot.lane.b32.xlu0 %v9542_v52, %s10510_s25 }
 0xa7c   : > { %v4787_v14 = vpack.c.bf16 %v4785_v4, %v4783_v49  ;;  %5815 = vrot.lane.b32.xlu1 %v9540_v39, %s10510_s25  ;;  %v4850_v1 = vpop.permute.xlu0 %4849  ;;  %v4788_v53 = vpack.c.bf16 %v4786_v38, %v4784_v12 }
 0xa7e   : > { %v4856_v63 = vpop.permute.xlu1 %4855  ;;  %5817 = vrot.lane.b32.xlu0 %v9546_v56, %s10510_s25  ;;  %7176 = vmatmul.mubr.msk.bf16.vlgmr.msra.gmra.mrb[16].mxu0 %vm1434_vm10, %v7753_v44 }
 0xa7f   : > { %v4863_v22 = vsel %vm670_vm0, %v4848_v30, %v4856_v63  ;;  %4800 = vmatprep.subr.bf16.mxu0 %v4788_v53  ;;  %4832 = vmatprep.mubr.bf16.mxu0 %v10527_v20  ;;  %v4867_v6 = vsel %vm670_vm0, %v4856_v63, %v4848_v30 }
 0xa80   : > { %4801 = vmatpush1.bf16.msra.mxu0 %v4787_v14  ;;  %5811 = vrot.lane.b32.xlu1 %v9556_v34, %s10510_s25  ;;  %v4858_v27 = vpop.permute.xlu0 %4857  ;;  %v4872_v32 = vmul.f32 %v4863_v22, %v7994_v15  ;;  %v4871_v55 = vmul.f32 %v4867_v6, %v7998_v16 }
 0xa81   : > { %v4864_v26 = vsel %vm670_vm0, %v4850_v1, %v4858_v27  ;;  %v4868_v62 = vsel %vm670_vm0, %v4858_v27, %v4850_v1 }
 0xa82   : > { %v4874_v42 = vmul.f32 %v4864_v26, %v7994_v15  ;;  %v4852_v28 = vpop.permute.xlu1 %4851  ;;  %5813 = vrot.lane.b32.xlu0 %v9562_v23, %s10510_s25  ;;  %v4873_v5 = vmul.f32 %v4868_v62, %v7998_v16 }
 0xa84   : > { %5819 = vrot.lane.b32.xlu1 %v9560_v19, %s10510_s25  ;;  %v4854_v35 = vpop.permute.xlu0 %4853  ;;  %v4880_v2 = vpack.c.bf16 %v4874_v42, %v4872_v32  ;;  %v4879_v3 = vpack.c.bf16 %v4873_v5, %v4871_v55  ;;  %v7755_v32 = vld [vmem:[%s10441_s14 + $0x8] sm:$0xff]  }
 0xa86   : > { %v4860_v47 = vpop.permute.xlu1 %4859  ;;  %5821 = vrot.lane.b32.xlu0 %v9566_v60, %s10510_s25  ;;  %4894 = vmatprep.subr.bf16.mxu0 %v4880_v2 }
 0xa87   : > { %v4865_v10 = vsel %vm670_vm0, %v4852_v28, %v4860_v47  ;;  %v4869_v61 = vsel %vm670_vm0, %v4860_v47, %v4852_v28 }
 0xa88   : > { %5901 = vrot.lane.b32.xlu1 %v8419_v59, %s10511_s3  ;;  %v4862_v37 = vpop.permute.xlu0 %4861  ;;  %v4875_v46 = vmul.f32 %v4869_v61, %v7998_v16  ;;  %v4876_v51 = vmul.f32 %v4865_v10, %v7994_v15 }
 0xa89   : > { %v4866_v29 = vsel %vm670_vm0, %v4854_v35, %v4862_v37  ;;  %v4870_v9 = vsel %vm670_vm0, %v4862_v37, %v4854_v35 }
 0xa8a   : > { %v4877_v43 = vmul.f32 %v4870_v9, %v7998_v16  ;;  %v4878_v58 = vmul.f32 %v4866_v29, %v7994_v15  ;;  %v4942_v11 = vpop.permute.xlu1 %4941  ;;  %5903 = vrot.lane.b32.xlu0 %v8430_v13, %s10511_s3  ;;  %7180 = vmatmul.mubr.msk.bf16.vlgmr.msra.gmra.mrb[16].mxu0 %vm1434_vm10, %v7754_v33  ;;  %v6071_v29 = vld [vmem:[%s10442_s15] sm:$0xff] }
 0xa8b   : > { %4895 = vmatpush1.bf16.msra.mxu0 %v4879_v3  ;;  %4926 = vmatprep.mubr.bf16.mxu0 %v10527_v20 }
 0xa8c   : > { %v4881_v50 = vpack.c.bf16 %v4877_v43, %v4875_v46  ;;  %5905 = vrot.lane.b32.xlu1 %v8437_v24, %s10511_s3  ;;  %v4944_v49 = vpop.permute.xlu0 %4943  ;;  %v4882_v12 = vpack.c.bf16 %v4878_v58, %v4876_v51  ;;  %v7756_v51 = vld [vmem:[%s10440_s13 + $0x10] sm:$0xff]  }
 0xa8e   : > { %v4946_v4 = vpop.permute.xlu1 %4945  ;;  %5907 = vrot.lane.b32.xlu0 %v8444_v25, %s10511_s3  ;;  %4896 = vmatprep.subr.bf16.mxu0 %v4882_v12 }
 0xa8f   : > { %v4949_v38 = vsel %vm808_vm2, %v4942_v11, %v4946_v4  ;;  %v4951_v30 = vsel %vm808_vm2, %v4946_v4, %v4942_v11  ;;  %4897 = vmatpush1.bf16.msra.mxu0 %v4881_v50  ;;  %v6072_v50 = vld [vmem:[%s10442_s15 + $0x8] sm:$0xff] }
 0xa90   : > { %5977 = vrot.lane.b32.xlu1 %v9536_v36, %s10511_s3  ;;  %v4948_v44 = vpop.permute.xlu0 %4947  ;;  %v4953_v53 = vmul.f32 %v4951_v30, %v8037_v41  ;;  %v4954_v63 = vmul.f32 %v4949_v38, %v8011_v21  ;;  %v10529_v36 = vpack.c.bf16 %v8553_v40, %v8541_v0  ;;  %v10531_v40 = vld [vmem:[#allocation10_spill] sm:$0xff] }
 0xa91   : > { %v4950_v14 = vsel %vm808_vm2, %v4944_v49, %v4948_v44  ;;  %v4952_v1 = vsel %vm808_vm2, %v4948_v44, %v4944_v49 }
 0xa92   : > { %v4955_v22 = vmul.f32 %v4952_v1, %v8037_v41  ;;  %v4956_v27 = vmul.f32 %v4950_v14, %v8011_v21  ;;  %v5018_v26 = vpop.permute.xlu1 %5017  ;;  %5979 = vrot.lane.b32.xlu0 %v9542_v52, %s10511_s3 }
 0xa94   : > { %v4957_v62 = vpack.c.bf16 %v4955_v22, %v4953_v53  ;;  %5985 = vrot.lane.b32.xlu1 %v9540_v39, %s10511_s3  ;;  %v5020_v42 = vpop.permute.xlu0 %5019  ;;  %v4958_v28 = vpack.c.bf16 %v4956_v27, %v4954_v63 }
 0xa96   : > { %v5026_v6 = vpop.permute.xlu1 %5025  ;;  %5987 = vrot.lane.b32.xlu0 %v9546_v56, %s10511_s3  ;;  %7184 = vmatmul.mubr.msk.bf16.vlgmr.msra.gmra.mrb[16].mxu0 %vm3399_vm11, %v7755_v32 }
 0xa97   : > { %v5033_v35 = vsel %vm808_vm2, %v5018_v26, %v5026_v6  ;;  %4970 = vmatprep.subr.bf16.mxu0 %v4958_v28  ;;  %5002 = vmatprep.mubr.bf16.mxu0 %v10527_v20  ;;  %v5037_v61 = vsel %vm808_vm2, %v5026_v6, %v5018_v26 }
 0xa98   : > { %4971 = vmatpush1.bf16.msra.mxu0 %v4957_v62  ;;  %5981 = vrot.lane.b32.xlu1 %v9556_v34, %s10511_s3  ;;  %v5028_v2 = vpop.permute.xlu0 %5027  ;;  %v5042_v47 = vmul.f32 %v5033_v35, %v8011_v21  ;;  %v5041_v43 = vmul.f32 %v5037_v61, %v8037_v41 }
 0xa99   : > { %v5034_v5 = vsel %vm808_vm2, %v5020_v42, %v5028_v2  ;;  %v5038_v33 = vsel %vm808_vm2, %v5028_v2, %v5020_v42 }
 0xa9a   : > { %v5044_v55 = vmul.f32 %v5034_v5, %v8011_v21  ;;  %v5022_v10 = vpop.permute.xlu1 %5021  ;;  %5983 = vrot.lane.b32.xlu0 %v9562_v23, %s10511_s3  ;;  %v5043_v46 = vmul.f32 %v5038_v33, %v8037_v41  ;;  %v10532_v23 = vld [vmem:[#allocation9_spill] sm:$0xff] }
 0xa9c   : > { %5989 = vrot.lane.b32.xlu1 %v9560_v19, %s10511_s3  ;;  %v5024_v37 = vpop.permute.xlu0 %5023  ;;  %v5050_v3 = vpack.c.bf16 %v5044_v55, %v5042_v47  ;;  %v5049_v12 = vpack.c.bf16 %v5043_v46, %v5041_v43  ;;  %v7757_v55 = vld [vmem:[%s10441_s14 + $0x10] sm:$0xff]  }
 0xa9e   : > { %v5030_v9 = vpop.permute.xlu1 %5029  ;;  %5991 = vrot.lane.b32.xlu0 %v9566_v60, %s10511_s3  ;;  %5064 = vmatprep.subr.bf16.mxu0 %v5050_v3  ;;  %v7761_v60 = vld [vmem:[%s10441_s14 + $0x20] sm:$0xff]  }
 0xa9f   : > { %v5035_v58 = vsel %vm808_vm2, %v5022_v10, %v5030_v9  ;;  %v5039_v11 = vsel %vm808_vm2, %v5030_v9, %v5022_v10 }
 0xaa0   : > { %6075 = vperm.xlu1 %7590, %v6071_v29   ;;  %v5032_v49 = vpop.permute.xlu0 %5031  ;;  %v5045_v4 = vmul.f32 %v5039_v11, %v8037_v41  ;;  %v5046_v44 = vmul.f32 %v5035_v58, %v8011_v21 }
 0xaa1   : > { %v5036_v38 = vsel %vm808_vm2, %v5024_v37, %v5032_v49  ;;  %v5040_v30 = vsel %vm808_vm2, %v5032_v49, %v5024_v37 }
 0xaa2   : > { %v5047_v14 = vmul.f32 %v5040_v30, %v8037_v41  ;;  %v5048_v1 = vmul.f32 %v5036_v38, %v8011_v21  ;;  %v5112_v53 = vpop.permute.xlu1 %5111  ;;  %6080 = vperm.xlu0 %7589, %v6072_v50   ;;  %7188 = vmatmul.mubr.msk.bf16.vlgmr.msra.gmra.mrb[16].mxu0 %vm1434_vm10, %v7756_v51  ;;  %v7758_v30 = vld [vmem:[%s10440_s13 + $0x18] sm:$0xff]  }
 0xaa3   : > { %5065 = vmatpush1.bf16.msra.mxu0 %v5049_v12  ;;  %5096 = vmatprep.mubr.bf16.mxu0 %v10527_v20 }
 0xaa4   : > { %v5051_v63 = vpack.c.bf16 %v5047_v14, %v5045_v4  ;;  %v5114_v22 = vpop.permute.xlu0 %5113  ;;  %v5052_v27 = vpack.c.bf16 %v5048_v1, %v5046_v44 }
 0xaa6   : > { %v5116_v26 = vpop.permute.xlu1 %5115  ;;  %5066 = vmatprep.subr.bf16.mxu0 %v5052_v27 }
 0xaa7   : > { %v5119_v32 = vsel %vm891_vm5, %v5112_v53, %v5116_v26  ;;  %v5121_v62 = vsel %vm891_vm5, %v5116_v26, %v5112_v53  ;;  %5067 = vmatpush1.bf16.msra.mxu0 %v5051_v63 }
 0xaa8   : > { %v5118_v42 = vpop.permute.xlu0 %5117  ;;  %v5123_v35 = vmul.f32 %v5121_v62, %v8062_v54  ;;  %v5124_v2 = vmul.f32 %v5119_v32, %v8051_v48 }
 0xaa9   : > { %v5120_v28 = vsel %vm891_vm5, %v5114_v22, %v5118_v42  ;;  %v5122_v6 = vsel %vm891_vm5, %v5118_v42, %v5114_v22 }
 0xaaa   : > { %v5125_v5 = vmul.f32 %v5122_v6, %v8062_v54  ;;  %v5126_v47 = vmul.f32 %v5120_v28, %v8051_v48  ;;  %v5188_v33 = vpop.permute.xlu1 %5187 }
 0xaac   : > { %v5127_v10 = vpack.c.bf16 %v5125_v5, %v5123_v35  ;;  %v5190_v61 = vpop.permute.xlu0 %5189  ;;  %v5128_v37 = vpack.c.bf16 %v5126_v47, %v5124_v2  ;;  %v5282_v47 = vpack.c.bf16 %v8444_v25, %v8437_v24 }
 0xaae   : > { %v5196_v3 = vpop.permute.xlu1 %5195  ;;  %7192 = vmatmul.mubr.msk.bf16.vlgmr.msra.gmra.mrb[16].mxu0 %vm3399_vm11, %v7757_v55  ;;  %5140 = vmatprep.subr.bf16.mxu0 %v5128_v37  ;;  %v5281_v37 = vpack.c.bf16 %v8430_v13, %v8419_v59 }
 0xaaf   : > { %v5203_v46 = vsel %vm891_vm5, %v5188_v33, %v5196_v3  ;;  %5141 = vmatpush1.bf16.msra.mxu0 %v5127_v10  ;;  %5172 = vmatprep.mubr.bf16.mxu0 %v10527_v20  ;;  %v5207_v50 = vsel %vm891_vm5, %v5196_v3, %v5188_v33  ;;  %v7759_v10 = vld [vmem:[%s10441_s14 + $0x18] sm:$0xff]  }
 0xab0   : > { %v5198_v29 = vpop.permute.xlu0 %5197  ;;  %v5212_v51 = vmul.f32 %v5203_v46, %v8051_v48  ;;  %v5211_v44 = vmul.f32 %v5207_v50, %v8062_v54 }
 0xab1   : > { %v5204_v9 = vsel %vm891_vm5, %v5190_v61, %v5198_v29  ;;  %v5208_v43 = vsel %vm891_vm5, %v5198_v29, %v5190_v61 }
 0xab2   : > { %v5214_v58 = vmul.f32 %v5204_v9, %v8051_v48  ;;  %v5192_v11 = vpop.permute.xlu1 %5191  ;;  %v5213_v4 = vmul.f32 %v5208_v43, %v8062_v54  ;;  %v7760_v9 = vld [vmem:[%s10440_s13 + $0x20] sm:$0xff]  }
 0xab4   : > { %v5194_v49 = vpop.permute.xlu0 %5193  ;;  %v5220_v12 = vpack.c.bf16 %v5214_v58, %v5212_v51  ;;  %v5219_v63 = vpack.c.bf16 %v5213_v4, %v5211_v44  ;;  %v10534_v4 = vld [vmem:[#allocation4_spill] sm:$0xff] }
 0xab6   : > { %v5200_v38 = vpop.permute.xlu1 %5199  ;;  %5234 = vmatprep.subr.bf16.mxu0 %v5220_v12 }
 0xab7   : > { %v5205_v14 = vsel %vm891_vm5, %v5192_v11, %v5200_v38  ;;  %v5209_v1 = vsel %vm891_vm5, %v5200_v38, %v5192_v11 }
 0xab8   : > { %v5202_v53 = vpop.permute.xlu0 %5201  ;;  %v5215_v26 = vmul.f32 %v5209_v1, %v8062_v54  ;;  %v5216_v32 = vmul.f32 %v5205_v14, %v8051_v48 }
 0xab9   : > { %v5206_v22 = vsel %vm891_vm5, %v5194_v49, %v5202_v53  ;;  %v5210_v27 = vsel %vm891_vm5, %v5202_v53, %v5194_v49  ;;  %v7762_v53 = vld [vmem:[%s10440_s13 + $0x28] sm:$0xff]  }
 0xaba   : > { %v5217_v62 = vmul.f32 %v5210_v27, %v8062_v54  ;;  %v5218_v42 = vmul.f32 %v5206_v22, %v8051_v48  ;;  %v5468_v28 = vpop.permute.xlu1 %5467  ;;  %7196 = vmatmul.mubr.msk.bf16.vlgmr.msra.gmra.mrb[16].mxu0 %vm1434_vm10, %v7758_v30 }
 0xabb   : > { %5235 = vmatpush1.bf16.msra.mxu0 %v5219_v63  ;;  %5266 = vmatprep.mubr.bf16.mxu0 %v10527_v20 }
 0xabc   : > { %v5221_v6 = vpack.c.bf16 %v5217_v62, %v5215_v26  ;;  %v5470_v35 = vpop.permute.xlu0 %5469  ;;  %v5222_v2 = vpack.c.bf16 %v5218_v42, %v5216_v32 }
 0xabe   : > { %v5476_v5 = vpop.permute.xlu1 %5475  ;;  %5236 = vmatprep.subr.bf16.mxu0 %v5222_v2 }
 0xabf   : > { %5237 = vmatpush1.bf16.msra.mxu0 %v5221_v6  ;;  %v5483_v12 = vsel %vm1040_vm6, %v5468_v28, %v5476_v5  ;;  %v10535_v6 = vld [vmem:[#allocation5_spill] sm:$0xff] }
 0xac0   : > { %v5478_v33 = vpop.permute.xlu0 %5477  ;;  %5294 = vmatprep.subr.bf16.mxu0 %v5282_v47  ;;  %v5491_v63 = vmul.f32 %v5483_v12, %v10534_v4 }
 0xac1   : > { %v5488_v56 = vsel %vm1040_vm6, %v5478_v33, %v5470_v35  ;;  %v5484_v11 = vsel %vm1040_vm6, %v5470_v35, %v5478_v33 }
 0xac2   : > { %v5472_v55 = vpop.permute.xlu1 %5471  ;;  %v5493_v38 = vmul.f32 %v5484_v11, %v10534_v4 }
 0xac4   : > { %v5474_v61 = vpop.permute.xlu0 %5473  ;;  %v5499_v62 = vpack.c.bf16 %v5493_v38, %v5491_v63 }
 0xac6   : > { %v5480_v3 = vpop.permute.xlu1 %5479  ;;  %7200 = vmatmul.mubr.msk.bf16.vlgmr.msra.gmra.mrb[16].mxu0 %vm3399_vm11, %v7759_v10 }
 0xac7   : > { %5295 = vmatpush1.bf16.msra.mxu0 %v5281_v37  ;;  %5326 = vmatprep.mubr.bf16.mxu0 %v10527_v20  ;;  %v5489_v30 = vsel %vm1040_vm6, %v5480_v3, %v5472_v55  ;;  %v5485_v27 = vsel %vm1040_vm6, %v5472_v55, %v5480_v3 }
 0xac8   : > { %5356 = vmatprep.subr.bf16.mxu0 %v5342_v45  ;;  %v5482_v24 = vpop.permute.xlu0 %5481  ;;  %v10530_v45 = vld [vmem:[#allocation3_spill] sm:$0xff] }
 0xac9   : > { %v5494_v19 = vmul.f32 %v5488_v56, %v10530_v45  ;;  %v5490_v49 = vsel %vm1040_vm6, %v5482_v24, %v5474_v61  ;;  %v5486_v44 = vsel %vm1040_vm6, %v5474_v61, %v5482_v24  ;;  %v5496_v26 = vmul.f32 %v5489_v30, %v10530_v45  ;;  %v7764_v30 = vld [vmem:[%s10440_s13 + $0x30] sm:$0xff]  }
 0xaca   : > { %v5562_v25 = vpop.permute.xlu1 %5561  ;;  %v5498_v14 = vmul.f32 %v5490_v49, %v10530_v45  ;;  %v5497_v42 = vmul.f32 %v5486_v44, %v10534_v4 }
 0xacc   : > { %v5564_v46 = vpop.permute.xlu0 %5563  ;;  %v5502_v2 = vpack.c.bf16 %v5498_v14, %v5496_v26 }
 0xace   : > { %v5566_v29 = vpop.permute.xlu1 %5565 }
 0xacf   : > { %v5569_v24 = vsel %vm1123_vm7, %v5562_v25, %v5566_v29 }
 0xad0   : > { %v5568_v51 = vpop.permute.xlu0 %5567 }
 0xad1   : > { %v5572_v22 = vsel %vm1123_vm7, %v5568_v51, %v5564_v46  ;;  %v5570_v10 = vsel %vm1123_vm7, %v5564_v46, %v5568_v51 }
 0xad2   : > { %v9944_v59 = vpop.permute.xlu1 %5637  ;;  %7204 = vmatmul.mubr.msk.bf16.vlgmr.msra.gmra.mrb[16].mxu0 %vm1434_vm10, %v7760_v9  ;;  %v5576_v35 = vmul.f32 %v5572_v22, %v10535_v6  ;;  %v10536_v9 = vld [vmem:[#allocation6_spill] sm:$0xff]  ;;  %v10537_v22 = vld [vmem:[#allocation7_spill] sm:$0xff] }
 0xad3   : > { %5357 = vmatpush1.bf16.msra.mxu0 %v5341_v57  ;;  %5388 = vmatprep.mubr.bf16.mxu0 %v10527_v20  ;;  %v5487_v57 = vsel %vm1040_vm6, %v5476_v5, %v5468_v28  ;;  %v5571_v28 = vsel %vm1123_vm7, %v5566_v29, %v5562_v25  ;;  %v5495_v5 = vmul.f32 %v5485_v27, %v10534_v4 }
 0xad4   : > { %5358 = vmatprep.subr.bf16.mxu0 %v5344_v8  ;;  %v9954_v13 = vpop.permute.xlu0 %5639  ;;  %v5492_v8 = vmul.f32 %v5487_v57, %v10530_v45  ;;  %v5574_v47 = vmul.f32 %v5571_v28, %v10535_v6  ;;  %v5575_v56 = vmul.f32 %v5570_v10, %v10536_v9  ;;  %v7763_v57 = vld [vmem:[%s10441_s14 + $0x28] sm:$0xff]  }
 0xad5   : > { %v5501_v55 = vpack.c.bf16 %v5497_v42, %v5495_v5 }
 0xad6   : > { %v9956_v39 = vpop.permute.xlu1 %5645  ;;  %v5500_v0 = vpack.c.bf16 %v5494_v19, %v5492_v8  ;;  %v5578_v37 = vpack.c.bf16 %v5576_v35, %v5574_v47  ;;  %v5573_v19 = vmul.f32 %v5569_v24, %v10536_v9 }
 0xad7   : > { %5359 = vmatpush1.bf16.msra.mxu0 %v5343_v31  ;;  %v10533_v31 = vpack.c.bf16 %v10531_v40, %v10532_v23  ;;  %v5653_v11 = vsel %vm1123_vm7, %v9944_v59, %v9956_v39 }
 0xad8   : > { %5420 = vmatprep.subr.bf16.mxu0 %v10529_v36  ;;  %v9966_v52 = vpop.permute.xlu0 %5647  ;;  %v5657_v36 = vsel %vm1123_vm7, %v9956_v39, %v9944_v59  ;;  %v5661_v44 = vmul.f32 %v5653_v11, %v10536_v9 }
 0xad9   : > { %v5658_v3 = vsel %vm1123_vm7, %v9966_v52, %v9954_v13  ;;  %v5662_v25 = vmul.f32 %v5657_v36, %v10535_v6  ;;  %v5654_v40 = vsel %vm1123_vm7, %v9954_v13, %v9966_v52 }
 0xada   : > { %v9975_v43 = vpop.permute.xlu1 %5641  ;;  %v5664_v46 = vmul.f32 %v5658_v3, %v10535_v6  ;;  %v5663_v49 = vmul.f32 %v5654_v40, %v10536_v9 }
 0xadc   : > { %v9977_v34 = vpop.permute.xlu0 %5643  ;;  %v5670_v8 = vpack.c.bf16 %v5664_v46, %v5662_v25 }
 0xade   : > { %7208 = vmatmul.mubr.msk.bf16.vlgmr.msra.gmra.mrb[16].mxu0 %vm3399_vm11, %v7761_v60  ;;  %v5650_v50 = vpop.permute.xlu1 %5649  ;;  %v5577_v60 = vpack.c.bf16 %v5575_v56, %v5573_v19 }
 0xadf   : > { %5421 = vmatpush1.bf16.msra.mxu0 %v10533_v31  ;;  %5452 = vmatprep.mubr.bf16.mxu0 %v10527_v20  ;;  %v5659_v12 = vsel %vm1123_vm7, %v5650_v50, %v9975_v43  ;;  %v5655_v39 = vsel %vm1123_vm7, %v9975_v43, %v5650_v50 }
 0xae0   : > { %5514 = vmatprep.subr.bf16.mxu0 %v5500_v0  ;;  %v5652_v58 = vpop.permute.xlu0 %5651  ;;  %v5666_v14 = vmul.f32 %v5659_v12, %v10535_v6 }
 0xae1   : > { %v5660_v31 = vsel %vm1123_vm7, %v5652_v58, %v9977_v34  ;;  %v5656_v13 = vsel %vm1123_vm7, %v9977_v34, %v5652_v58  ;;  %v5669_v58 = vpack.c.bf16 %v5663_v49, %v5661_v44  ;;  %v10127_v44 = vld [vmem:[%s10502_s2 + $0x18] ss:$0 sm:$0xff] }
 0xae2   : > { %v10007_v32 = vpop.permute.xlu1 %5731  ;;  %v5668_v52 = vmul.f32 %v5660_v31, %v10535_v6 }
 0xae4   : > { %v9996_v1 = vpop.permute.xlu0 %5733  ;;  %v5672_v26 = vpack.c.bf16 %v5668_v52, %v5666_v14 }
 0xae6   : > { %v5736_v61 = vpop.permute.xlu1 %5735 }
 0xae7   : > { %v5741_v63 = vsel %vm1206_vm8, %v5736_v61, %v10007_v32  ;;  %v5739_v47 = vsel %vm1206_vm8, %v10007_v32, %v5736_v61 }
 0xae8   : > { %v5738_v33 = vpop.permute.xlu0 %5737  ;;  %v5744_v43 = vmul.f32 %v5741_v63, %v10537_v22 }
 0xae9   : > { %v5742_v59 = vsel %vm1206_vm8, %v5738_v33, %v9996_v1  ;;  %v5740_v28 = vsel %vm1206_vm8, %v9996_v1, %v5738_v33  ;;  %v7765_v33 = vld [vmem:[%s10441_s14 + $0x30] sm:$0xff]  }
 0xaea   : > { %7212 = vmatmul.mubr.msk.bf16.vlgmr.msra.gmra.mrb[16].mxu0 %vm1434_vm10, %v7762_v53  ;;  %v5808_v29 = vpop.permute.xlu1 %5807  ;;  %v5667_v53 = vmul.f32 %v5656_v13, %v10536_v9  ;;  %v5746_v27 = vmul.f32 %v5742_v59, %v10537_v22 }
 0xaeb   : > { %5515 = vmatpush1.bf16.msra.mxu0 %v5499_v62  ;;  %5546 = vmatprep.mubr.bf16.mxu0 %v10527_v20  ;;  %v5665_v62 = vmul.f32 %v5655_v39, %v10536_v9 }
 0xaec   : > { %5516 = vmatprep.subr.bf16.mxu0 %v5502_v2  ;;  %v10031_v51 = vpop.permute.xlu0 %5809  ;;  %v5748_v2 = vpack.c.bf16 %v5746_v27, %v5744_v43 }
 0xaed   : > { %v5671_v42 = vpack.c.bf16 %v5667_v53, %v5665_v62 }
 0xaee   : > { %v5816_v23 = vpop.permute.xlu1 %5815 }
 0xaef   : > { %5517 = vmatpush1.bf16.msra.mxu0 %v5501_v55  ;;  %v10538_v55 = vld [vmem:[#allocation8_spill] sm:$0xff] }
 0xaf0   : > { %5590 = vmatprep.subr.bf16.mxu0 %v5578_v37  ;;  %v5818_v0 = vpop.permute.xlu0 %5817  ;;  %v5745_v10 = vmul.f32 %v5740_v28, %v10538_v55  ;;  %v5827_v37 = vsel %vm1206_vm8, %v5816_v23, %v5808_v29  ;;  %v5743_v24 = vmul.f32 %v5739_v47, %v10538_v55 }
 0xaf1   : > { %v5828_v5 = vsel %vm1206_vm8, %v5818_v0, %v10031_v51  ;;  %v5832_v56 = vmul.f32 %v5827_v37, %v10537_v22 }
 0xaf2   : > { %v5812_v34 = vpop.permute.xlu1 %5811  ;;  %v5834_v3 = vmul.f32 %v5828_v5, %v10537_v22  ;;  %v5747_v46 = vpack.c.bf16 %v5745_v10, %v5743_v24  ;;  %v7767_v5 = vld [vmem:[%s10441_s14 + $0x38] sm:$0xff]  }
 0xaf4   : > { %v5814_v38 = vpop.permute.xlu0 %5813  ;;  %v5840_v32 = vpack.c.bf16 %v5834_v3, %v5832_v56 }
 0xaf6   : > { %7216 = vmatmul.mubr.msk.bf16.vlgmr.msra.gmra.mrb[16].mxu0 %vm3399_vm11, %v7763_v57  ;;  %v5820_v35 = vpop.permute.xlu1 %5819  ;;  %v5824_v57 = vsel %vm1206_vm8, %v10031_v51, %v5818_v0  ;;  %v7766_v51 = vld [vmem:[%s10440_s13 + $0x38] sm:$0xff]  }
 0xaf7   : > { %5591 = vmatpush1.bf16.msra.mxu0 %v5577_v60  ;;  %5622 = vmatprep.mubr.bf16.mxu0 %v10527_v20  ;;  %v5823_v60 = vsel %vm1206_vm8, %v5808_v29, %v5816_v23  ;;  %v5829_v40 = vsel %vm1206_vm8, %v5820_v35, %v5812_v34  ;;  %v5825_v23 = vsel %vm1206_vm8, %v5812_v34, %v5820_v35 }
 0xaf8   : > { %5684 = vmatprep.subr.bf16.mxu0 %v5670_v8  ;;  %v5822_v50 = vpop.permute.xlu0 %5821  ;;  %v5833_v8 = vmul.f32 %v5824_v57, %v10538_v55  ;;  %v5831_v0 = vmul.f32 %v5823_v60, %v10538_v55  ;;  %v5836_v12 = vmul.f32 %v5829_v40, %v10537_v22  ;;  %v5835_v14 = vmul.f32 %v5825_v23, %v10538_v55 }
 0xaf9   : > { %v5830_v25 = vsel %vm1206_vm8, %v5822_v50, %v5814_v38  ;;  %v5826_v31 = vsel %vm1206_vm8, %v5814_v38, %v5822_v50  ;;  %v10143_v50 = vld [vmem:[%s10502_s2 + $0x10] ss:$0 sm:$0xff] }
 0xafa   : > { %v5902_v36 = vpop.permute.xlu1 %5901  ;;  %v5838_v11 = vmul.f32 %v5830_v25, %v10537_v22  ;;  %v5839_v52 = vpack.c.bf16 %v5833_v8, %v5831_v0  ;;  %v5837_v38 = vmul.f32 %v5826_v31, %v10538_v55  ;;  %v7768_v25 = vld [vmem:[%s10440_s13 + $0x40] sm:$0xff]  }
 0xafc   : > { %v5904_v1 = vpop.permute.xlu0 %5903  ;;  %v5842_v39 = vpack.c.bf16 %v5838_v11, %v5836_v12  ;;  %v5841_v53 = vpack.c.bf16 %v5837_v38, %v5835_v14 }
 0xafe   : > { %v5906_v19 = vpop.permute.xlu1 %5905 }
 0xaff   : > { %v5909_v43 = vsel %vm1289_vm9, %v5902_v36, %v5906_v19 }
 0xb00   : > { %v5908_v61 = vpop.permute.xlu0 %5907  ;;  %v5913_v47 = vmul.f32 %v10143_v50, %v5909_v43  ;;  %v6750_v43 = vld [vmem:[%s10444_s17] sm:$0xff] }
 0xb01   : > { %v5912_v29 = vsel %vm1289_vm9, %v5908_v61, %v5904_v1  ;;  %v5910_v63 = vsel %vm1289_vm9, %v5904_v1, %v5908_v61 }
 0xb02   : > { %7220 = vmatmul.mubr.msk.bf16.vlgmr.msra.gmra.mrb[16].mxu0 %vm1434_vm10, %v7764_v30  ;;  %v5978_v13 = vpop.permute.xlu1 %5977  ;;  %v5911_v30 = vsel %vm1289_vm9, %v5906_v19, %v5902_v36  ;;  %v5916_v59 = vmul.f32 %v10127_v44, %v5912_v29  ;;  %v7769_v29 = vld [vmem:[%s10441_s14 + $0x40] sm:$0xff]  }
 0xb03   : > { %5685 = vmatpush1.bf16.msra.mxu0 %v5669_v58  ;;  %5716 = vmatprep.mubr.bf16.mxu0 %v10527_v20  ;;  %v5914_v34 = vmul.f32 %v10127_v44, %v5911_v30 }
 0xb04   : > { %5686 = vmatprep.subr.bf16.mxu0 %v5672_v26  ;;  %v5980_v49 = vpop.permute.xlu0 %5979 }
 0xb05   : > { %v5918_v26 = vpack.c.bf16 %v5916_v59, %v5914_v34 }
 0xb06   : > { %v5986_v27 = vpop.permute.xlu1 %5985 }
 0xb07   : > { %5687 = vmatpush1.bf16.msra.mxu0 %v5671_v42  ;;  %v5915_v42 = vmul.f32 %v10143_v50, %v5910_v63  ;;  %v5997_v28 = vsel %vm1289_vm9, %v5986_v27, %v5978_v13 }
 0xb08   : > { %5760 = vmatprep.subr.bf16.mxu0 %v5748_v2  ;;  %v5988_v58 = vpop.permute.xlu0 %5987  ;;  %v6002_v10 = vmul.f32 %v10127_v44, %v5997_v28  ;;  %v6773_v28 = vld [vmem:[%s10446_s19] sm:$0xf] }
 0xb09   : > { %v5998_v62 = vsel %vm1289_vm9, %v5988_v58, %v5980_v49  ;;  %v5917_v3 = vpack.c.bf16 %v5915_v42, %v5913_v47  ;;  %v5994_v24 = vsel %vm1289_vm9, %v5980_v49, %v5988_v58  ;;  %v6751_v42 = vld [vmem:[%s10444_s17 + $0x8] sm:$0xff] }
 0xb0a   : > { %v6004_v35 = vmul.f32 %v10127_v44, %v5998_v62  ;;  %v5982_v37 = vpop.permute.xlu1 %5981 }
 0xb0c   : > { %v5984_v2 = vpop.permute.xlu0 %5983  ;;  %v6010_v1 = vpack.c.bf16 %v6004_v35, %v6002_v10 }
 0xb0e   : > { %7224 = vmatmul.mubr.msk.bf16.vlgmr.msra.gmra.mrb[16].mxu0 %vm3399_vm11, %v7765_v33  ;;  %v5990_v56 = vpop.permute.xlu1 %5989 }
 0xb0f   : > { %5761 = vmatpush1.bf16.msra.mxu0 %v5747_v46  ;;  %5792 = vmatprep.mubr.bf16.mxu0 %v10527_v20  ;;  %v5993_v46 = vsel %vm1289_vm9, %v5978_v13, %v5986_v27  ;;  %v5999_v61 = vsel %vm1289_vm9, %v5990_v56, %v5982_v37  ;;  %v5995_v8 = vsel %vm1289_vm9, %v5982_v37, %v5990_v56 }
 0xb10   : > { %5854 = vmatprep.subr.bf16.mxu0 %v5840_v32  ;;  %v5992_v33 = vpop.permute.xlu0 %5991  ;;  %v6003_v32 = vmul.f32 %v10143_v50, %v5994_v24  ;;  %v6001_v60 = vmul.f32 %v10143_v50, %v5993_v46  ;;  %v6006_v40 = vmul.f32 %v10127_v44, %v5999_v61 }
 0xb11   : > { %v6000_v36 = vsel %vm1289_vm9, %v5992_v33, %v5984_v2  ;;  %v5996_v57 = vsel %vm1289_vm9, %v5984_v2, %v5992_v33 }
 0xb12   : > { %v6008_v19 = vmul.f32 %v10127_v44, %v6000_v36  ;;  %v6009_v31 = vpack.c.bf16 %v6003_v32, %v6001_v60  ;;  %v6007_v11 = vmul.f32 %v10143_v50, %v5996_v57 }
 0xb14   : > { %v6012_v49 = vpack.c.bf16 %v6008_v19, %v6006_v40 }
 0xb1a   : > { %7228 = vmatmul.mubr.msk.bf16.vlgmr.msra.gmra.mrb[16].mxu0 %vm1434_vm10, %v7766_v51  ;;  %v6005_v51 = vmul.f32 %v10143_v50, %v5995_v8 }
 0xb1b   : > { %5855 = vmatpush1.bf16.msra.mxu0 %v5839_v52  ;;  %5886 = vmatprep.mubr.bf16.mxu0 %v10527_v20 }
 0xb1c   : > { %5856 = vmatprep.subr.bf16.mxu0 %v5842_v39  ;;  %v6011_v0 = vpack.c.bf16 %v6007_v11, %v6005_v51 }
 0xb1f   : > { %5857 = vmatpush1.bf16.msra.mxu0 %v5841_v53  ;;  %v6076_v23 = vpop.permute.xlu1 %6075 }
 0xb20   : > { %5930 = vmatprep.subr.bf16.mxu0 %v5918_v26 }
 0xb21   : > { %v6081_v38 = vpop.permute.xlu0 %6080 }
 0xb26   : > { %7232 = vmatmul.mubr.msk.bf16.vlgmr.msra.gmra.mrb[16].mxu0 %vm3399_vm11, %v7767_v5 }
 0xb27   : > { %5931 = vmatpush1.bf16.msra.mxu0 %v5917_v3  ;;  %5962 = vmatprep.mubr.bf16.mxu0 %v10527_v20 }
 0xb28   : > { %6024 = vmatprep.subr.bf16.mxu0 %v6010_v1 }
 0xb32   : > { %7236 = vmatmul.mubr.msk.bf16.vlgmr.msra.gmra.mrb[16].mxu0 %vm1434_vm10, %v7768_v25  ;;  %v7770_v25 = vld [vmem:[%s10443_s16 + $0x8] sm:$0xff]  }
 0xb33   : > { %6025 = vmatpush1.bf16.msra.mxu0 %v6009_v31  ;;  %6056 = vmatprep.mubr.bf16.mxu0 %v10527_v20 }
 0xb34   : > { %6026 = vmatprep.subr.bf16.mxu0 %v6012_v49 }
 0xb37   : > { %6027 = vmatpush1.bf16.msra.mxu0 %v6011_v0 }
 0xb3e   : > { %7240 = vmatmul.mubr.msk.bf16.vlgmr.msra.gmra.mrb[16].mxu0 %vm3399_vm11, %v7769_v29 }
 0xc11   : > { %v6058_v12 = vpop.f32.mrb[16].mxu0 }
 0xc12   : > { %v6083_v13 = vadd.f32 %v6076_v23, %v6058_v12  ;;  %v6060_v52 = vpop.f32.mrb[17].mxu0 }
 0xc13   : > { %v6084_v30 = vadd.f32 %v6076_v23, %v6060_v52  ;;  %v6062_v59 = vpop.f32.mrb[18].mxu0 }
 0xc14   : > { %v10183_v39 = vmax.f32 %v6083_v13, 0.0  ;;  %v6085_v14 = vadd.f32 %v6081_v38, %v6062_v59  ;;  %v6064_v34 = vpop.f32.mrb[19].mxu0 }
 0xc15   : > { %v6086_v58 = vadd.f32 %v6081_v38, %v6064_v34  ;;  %v10189_v63 = vmax.f32 %v6084_v30, 0.0 }
 0xc16   : > { %v10185_v53 = vmax.f32 %v6085_v14, 0.0  ;;  %6111 = vrot.lane.b32.xlu1 %v10183_v39, %s10517_s23 }
 0xc17   : > { %v10191_v27 = vmax.f32 %v6086_v58, 0.0 }
 0xc18   : > { %6113 = vrot.lane.b32.xlu0 %v10185_v53, %s10517_s23  ;;  %v6386_v26 = vpack.c.bf16 %v10185_v53, %v10183_v39 }
 0xc19   : > { %v6387_v62 = vpack.c.bf16 %v10191_v27, %v10189_v63 }
 0xc1a   : > { %6115 = vrot.lane.b32.xlu1 %v10189_v63, %s10517_s23 }
 0xc1c   : > { %6117 = vrot.lane.b32.xlu0 %v10191_v27, %s10517_s23 }
 0xc1e   : > { %6091 = vrot.lane.b32.xlu1 %v10183_v39, %s10518_s24 }
 0xc20   : > { %6093 = vrot.lane.b32.xlu0 %v10185_v53, %s10518_s24 }
 0xc22   : > { %6095 = vrot.lane.b32.xlu1 %v10189_v63, %s10518_s24 }
 0xc24   : > { %6097 = vrot.lane.b32.xlu0 %v10191_v27, %s10518_s24 }
 0xc26   : > { %6234 = vrot.lane.b32.xlu1 %v10183_v39, %s10519_s28 }
 0xc28   : > { %6236 = vrot.lane.b32.xlu0 %v10185_v53, %s10519_s28 }
 0xc2a   : > { %6238 = vrot.lane.b32.xlu1 %v10189_v63, %s10519_s28 }
 0xc2c   : > { %6240 = vrot.lane.b32.xlu0 %v10191_v27, %s10519_s28 }
 0xc2e   : > { %6310 = vrot.lane.b32.xlu1 %v10183_v39, %s10520_s4 }
 0xc30   : > { %6312 = vrot.lane.b32.xlu0 %v10185_v53, %s10520_s4 }
 0xc32   : > { %6314 = vrot.lane.b32.xlu1 %v10189_v63, %s10520_s4 }
 0xc34   : > { %6316 = vrot.lane.b32.xlu0 %v10191_v27, %s10520_s4 }
 0xc36   : > { %6446 = vrot.lane.b32.xlu1 %v10183_v39, %s10521_s0 }
 0xc38   : > { %6448 = vrot.lane.b32.xlu0 %v10185_v53, %s10521_s0 }
 0xc3a   : > { %6450 = vrot.lane.b32.xlu1 %v10189_v63, %s10521_s0 }
 0xc3c   : > { %6452 = vrot.lane.b32.xlu0 %v10191_v27, %s10521_s0 }
 0xc3e   : > { %6522 = vrot.lane.b32.xlu1 %v10183_v39, %s10522_s21 }
 0xc40   : > { %6524 = vrot.lane.b32.xlu0 %v10185_v53, %s10522_s21 }
 0xc42   : > { %6526 = vrot.lane.b32.xlu1 %v10189_v63, %s10522_s21 }
 0xc44   : > { %6528 = vrot.lane.b32.xlu0 %v10191_v27, %s10522_s21 }
 0xc46   : > { %6598 = vrot.lane.b32.xlu1 %v10183_v39, %s10510_s25 }
 0xc48   : > { %6600 = vrot.lane.b32.xlu0 %v10185_v53, %s10510_s25 }
 0xc4a   : > { %6602 = vrot.lane.b32.xlu1 %v10189_v63, %s10510_s25 }
 0xc4c   : > { %6604 = vrot.lane.b32.xlu0 %v10191_v27, %s10510_s25 }
 0xc4e   : > { %6674 = vrot.lane.b32.xlu1 %v10183_v39, %s10511_s3 }
 0xc50   : > { %6676 = vrot.lane.b32.xlu0 %v10185_v53, %s10511_s3 }
 0xc52   : > { %6678 = vrot.lane.b32.xlu1 %v10189_v63, %s10511_s3 }
 0xc54   : > { %6680 = vrot.lane.b32.xlu0 %v10191_v27, %s10511_s3 }
 0xc56   : > { %6754 = vperm.xlu1 %7590, %v6750_v43  }
 0xc58   : > { %6759 = vperm.xlu0 %7589, %v6751_v42   ;;  %v7771_v42 = vld [vmem:[%s10443_s16] sm:$0xff]  }
 0xc5a   : > { %6776 = vperm.xlu1 %7590, %v6773_v28  }
 0xc88   : > { %v6112_v35 = vpop.permute.xlu1 %6111 }
 0xc8a   : > { %v6114_v2 = vpop.permute.xlu0 %6113 }
 0xc8c   : > { %v6116_v5 = vpop.permute.xlu1 %6115 }
 0xc8d   : > { %v6119_v47 = vsel %vm670_vm0, %v6112_v35, %v6116_v5  ;;  %v6121_v10 = vsel %vm670_vm0, %v6116_v5, %v6112_v35 }
 0xc8e   : > { %v6118_v37 = vpop.permute.xlu0 %6117  ;;  %v6123_v33 = vmul.f32 %v6121_v10, %v7998_v16  ;;  %v6124_v24 = vmul.f32 %v6119_v47, %v7994_v15 }
 0xc8f   : > { %v6120_v3 = vsel %vm670_vm0, %v6114_v2, %v6118_v37  ;;  %v6122_v1 = vsel %vm670_vm0, %v6118_v37, %v6114_v2 }
 0xc90   : > { %v6125_v56 = vmul.f32 %v6122_v1, %v7998_v16  ;;  %v6126_v36 = vmul.f32 %v6120_v3, %v7994_v15  ;;  %v6092_v46 = vpop.permute.xlu1 %6091 }
 0xc92   : > { %v6127_v32 = vpack.c.bf16 %v6125_v56, %v6123_v33  ;;  %v6094_v61 = vpop.permute.xlu0 %6093  ;;  %v6128_v57 = vpack.c.bf16 %v6126_v36, %v6124_v24  ;;  %v7772_v36 = vld [vmem:[%s10443_s16 + $0x10] sm:$0xff]  }
 0xc94   : > { %v6096_v19 = vpop.permute.xlu1 %6095  ;;  %6140 = vmatprep.subr.bf16.mxu1 %v6128_v57 }
 0xc95   : > { %v6099_v60 = vsel %vm649_vm1, %v6092_v46, %v6096_v19  ;;  %v6101_v8 = vsel %vm649_vm1, %v6096_v19, %v6092_v46  ;;  %6141 = vmatpush1.bf16.msra.mxu1 %v6127_v32 }
 0xc96   : > { %v6098_v16 = vpop.permute.xlu0 %6097  ;;  %v6103_v31 = vmul.f32 %v6101_v8, %v8002_v17  ;;  %v6104_v11 = vmul.f32 %v6099_v60, %v8006_v18  ;;  %v7773_v8 = vld [vmem:[%s10443_s16 + $0x18] sm:$0xff]  }
 0xc97   : > { %v6100_v15 = vsel %vm649_vm1, %v6094_v61, %v6098_v16  ;;  %v6102_v40 = vsel %vm649_vm1, %v6098_v16, %v6094_v61 }
 0xc98   : > { %v6105_v49 = vmul.f32 %v6102_v40, %v8002_v17  ;;  %v6106_v51 = vmul.f32 %v6100_v15, %v8006_v18  ;;  %v6235_v0 = vpop.permute.xlu1 %6234  ;;  %7244 = vmatmul.mubr.msk.bf16.vlgmr.msra.gmra.mrb[28].mxu1 %vm1434_vm10, %v7770_v25 }
 0xc99   : > { %6223 = vmatprep.mubr.bf16.mxu1 %v10527_v20 }
 0xc9a   : > { %v6107_v29 = vpack.c.bf16 %v6105_v49, %v6103_v31  ;;  %v6237_v23 = vpop.permute.xlu0 %6236  ;;  %v6108_v12 = vpack.c.bf16 %v6106_v51, %v6104_v11  ;;  %v7774_v49 = vld [vmem:[%s10443_s16 + $0x20] sm:$0xff]  }
 0xc9c   : > { %v6239_v13 = vpop.permute.xlu1 %6238  ;;  %6191 = vmatprep.subr.bf16.mxu1 %v6108_v12 }
 0xc9d   : > { %v6242_v52 = vsel %vm808_vm2, %v6235_v0, %v6239_v13  ;;  %v6244_v38 = vsel %vm808_vm2, %v6239_v13, %v6235_v0  ;;  %6192 = vmatpush1.bf16.msra.mxu1 %v6107_v29 }
 0xc9e   : > { %v6241_v17 = vpop.permute.xlu0 %6240  ;;  %v6246_v59 = vmul.f32 %v6244_v38, %v8037_v41  ;;  %v6247_v14 = vmul.f32 %v6242_v52, %v8011_v21 }
 0xc9f   : > { %v6243_v18 = vsel %vm808_vm2, %v6237_v23, %v6241_v17  ;;  %v6245_v30 = vsel %vm808_vm2, %v6241_v17, %v6237_v23 }
 0xca0   : > { %v6248_v34 = vmul.f32 %v6245_v30, %v8037_v41  ;;  %v6249_v58 = vmul.f32 %v6243_v18, %v8011_v21  ;;  %v6311_v43 = vpop.permute.xlu1 %6310 }
 0xca2   : > { %v6250_v28 = vpack.c.bf16 %v6248_v34, %v6246_v59  ;;  %v6313_v35 = vpop.permute.xlu0 %6312  ;;  %v6251_v2 = vpack.c.bf16 %v6249_v58, %v6247_v14  ;;  %v7775_v14 = vld [vmem:[%s10443_s16 + $0x28] sm:$0xff]  }
 0xca4   : > { %v6315_v5 = vpop.permute.xlu1 %6314  ;;  %7246 = vmatmul.mubr.msk.bf16.vlgmr.msra.gmra.mrb[28].mxu1 %vm1434_vm10, %v7771_v42  ;;  %6263 = vmatprep.subr.bf16.mxu1 %v6251_v2 }
 0xca5   : > { %v6318_v47 = vsel %vm891_vm5, %v6311_v43, %v6315_v5  ;;  %6264 = vmatpush1.bf16.msra.mxu1 %v6250_v28  ;;  %6295 = vmatprep.mubr.bf16.mxu1 %v10527_v20  ;;  %v6320_v1 = vsel %vm891_vm5, %v6315_v5, %v6311_v43 }
 0xca6   : > { %v6317_v41 = vpop.permute.xlu0 %6316  ;;  %v6323_v10 = vmul.f32 %v6318_v47, %v8051_v48  ;;  %v6322_v46 = vmul.f32 %v6320_v1, %v8062_v54 }
 0xca7   : > { %v6319_v21 = vsel %vm891_vm5, %v6313_v35, %v6317_v41  ;;  %v6321_v37 = vsel %vm891_vm5, %v6317_v41, %v6313_v35 }
 0xca8   : > { %v6325_v3 = vmul.f32 %v6319_v21, %v8051_v48  ;;  %v6324_v24 = vmul.f32 %v6321_v37, %v8062_v54  ;;  %v6447_v32 = vpop.permute.xlu1 %6446 }
 0xcaa   : > { %v6327_v33 = vpack.c.bf16 %v6325_v3, %v6323_v10  ;;  %v6449_v56 = vpop.permute.xlu0 %6448  ;;  %v6326_v61 = vpack.c.bf16 %v6324_v24, %v6322_v46  ;;  %v7776_v10 = vld [vmem:[%s10443_s16 + $0x30] sm:$0xff]  }
 0xcac   : > { %6339 = vmatprep.subr.bf16.mxu1 %v6327_v33  ;;  %v6451_v57 = vpop.permute.xlu1 %6450 }
 0xcad   : > { %v6456_v25 = vsel %vm1040_vm6, %v6451_v57, %v6447_v32 }
 0xcae   : > { %v6453_v48 = vpop.permute.xlu0 %6452  ;;  %v6459_v16 = vmul.f32 %v6456_v25, %v10530_v45 }
 0xcaf   : > { %v6457_v19 = vsel %vm1040_vm6, %v6453_v48, %v6449_v56 }
 0xcb0   : > { %7250 = vmatmul.mubr.msk.bf16.vlgmr.msra.gmra.mrb[28].mxu1 %vm1434_vm10, %v7772_v36  ;;  %v6461_v54 = vmul.f32 %v6457_v19, %v10530_v45  ;;  %v6523_v15 = vpop.permute.xlu1 %6522  ;;  %v6454_v45 = vsel %vm1040_vm6, %v6447_v32, %v6451_v57  ;;  %v7778_v32 = vld [vmem:[%s10443_s16 + $0x40] sm:$0xff]  }
 0xcb1   : > { %6340 = vmatpush1.bf16.msra.mxu1 %v6326_v61  ;;  %6371 = vmatprep.mubr.bf16.mxu1 %v10527_v20  ;;  %v6458_v51 = vmul.f32 %v6454_v45, %v10534_v4 }
 0xcb2   : > { %6399 = vmatprep.subr.bf16.mxu1 %v6387_v62  ;;  %v6525_v60 = vpop.permute.xlu0 %6524  ;;  %v6463_v63 = vpack.c.bf16 %v6461_v54, %v6459_v16  ;;  %v6455_v62 = vsel %vm1040_vm6, %v6449_v56, %v6453_v48 }
 0xcb3   : > { %v6460_v11 = vmul.f32 %v6455_v62, %v10534_v4 }
 0xcb4   : > { %v6527_v40 = vpop.permute.xlu1 %6526 }
 0xcb5   : > { %v6532_v39 = vsel %vm1123_vm7, %v6527_v40, %v6523_v15  ;;  %v6462_v23 = vpack.c.bf16 %v6460_v11, %v6458_v51  ;;  %v6530_v4 = vsel %vm1123_vm7, %v6523_v15, %v6527_v40 }
 0xcb6   : > { %v6529_v27 = vpop.permute.xlu0 %6528  ;;  %v6535_v0 = vmul.f32 %v6532_v39, %v10535_v6  ;;  %v6534_v34 = vmul.f32 %v6530_v4, %v10536_v9 }
 0xcb7   : > { %v6533_v31 = vsel %vm1123_vm7, %v6529_v27, %v6525_v60  ;;  %v6531_v52 = vsel %vm1123_vm7, %v6525_v60, %v6529_v27 }
 0xcb8   : > { %v6537_v53 = vmul.f32 %v6533_v31, %v10535_v6  ;;  %v6599_v29 = vpop.permute.xlu1 %6598  ;;  %v6536_v6 = vmul.f32 %v6531_v52, %v10536_v9 }
 0xcba   : > { %v6539_v12 = vpack.c.bf16 %v6537_v53, %v6535_v0  ;;  %v6538_v42 = vpack.c.bf16 %v6536_v6, %v6534_v34 }
 0xcbc   : > { %7254 = vmatmul.mubr.msk.bf16.vlgmr.msra.gmra.mrb[28].mxu1 %vm1434_vm10, %v7773_v8  ;;  %v6603_v38 = vpop.permute.xlu1 %6602 }
 0xcbd   : > { %6400 = vmatpush1.bf16.msra.mxu1 %v6386_v26  ;;  %6431 = vmatprep.mubr.bf16.mxu1 %v10527_v20  ;;  %v6601_v26 = vpop.permute.xlu0 %6600  ;;  %v6608_v18 = vsel %vm1206_vm8, %v6603_v38, %v6599_v29  ;;  %v6606_v9 = vsel %vm1206_vm8, %v6599_v29, %v6603_v38 }
 0xcbe   : > { %6475 = vmatprep.subr.bf16.mxu1 %v6463_v63  ;;  %v6611_v58 = vmul.f32 %v6608_v18, %v10537_v22  ;;  %v6610_v37 = vmul.f32 %v6606_v9, %v10538_v55 }
 0xcc0   : > { %v6675_v43 = vpop.permute.xlu1 %6674 }
 0xcc1   : > { %v6605_v13 = vpop.permute.xlu0 %6604 }
 0xcc2   : > { %v6609_v17 = vsel %vm1206_vm8, %v6605_v13, %v6601_v26  ;;  %v6607_v2 = vsel %vm1206_vm8, %v6601_v26, %v6605_v13 }
 0xcc3   : > { %v6613_v30 = vmul.f32 %v6609_v17, %v10537_v22  ;;  %v6612_v22 = vmul.f32 %v6607_v2, %v10538_v55  ;;  %v7777_v55 = vld [vmem:[%s10443_s16 + $0x38] sm:$0xff]  }
 0xcc4   : > { %v6679_v5 = vpop.permute.xlu1 %6678 }
 0xcc5   : > { %v6677_v59 = vpop.permute.xlu0 %6676  ;;  %v6615_v28 = vpack.c.bf16 %v6613_v30, %v6611_v58  ;;  %v6684_v41 = vsel %vm1289_vm9, %v6679_v5, %v6675_v43  ;;  %v6614_v1 = vpack.c.bf16 %v6612_v22, %v6610_v37  ;;  %v6682_v56 = vsel %vm1289_vm9, %v6675_v43, %v6679_v5 }
 0xcc6   : > { %v6687_v3 = vmul.f32 %v10127_v44, %v6684_v41 }
 0xcc8   : > { %7258 = vmatmul.mubr.msk.bf16.vlgmr.msra.gmra.mrb[28].mxu1 %vm1434_vm10, %v7774_v49 }
 0xcc9   : > { %6476 = vmatpush1.bf16.msra.mxu1 %v6462_v23  ;;  %6507 = vmatprep.mubr.bf16.mxu1 %v10527_v20  ;;  %v6681_v35 = vpop.permute.xlu0 %6680 }
 0xcca   : > { %6551 = vmatprep.subr.bf16.mxu1 %v6539_v12  ;;  %v6685_v47 = vsel %vm1289_vm9, %v6681_v35, %v6677_v59  ;;  %v6683_v24 = vsel %vm1289_vm9, %v6677_v59, %v6681_v35 }
 0xccb   : > { %v6689_v21 = vmul.f32 %v10127_v44, %v6685_v47  ;;  %v6688_v36 = vmul.f32 %v10143_v50, %v6683_v24  ;;  %v6686_v44 = vmul.f32 %v10143_v50, %v6682_v56 }
 0xccd   : > { %v6691_v33 = vpack.c.bf16 %v6689_v21, %v6687_v3  ;;  %v6690_v46 = vpack.c.bf16 %v6688_v36, %v6686_v44 }
 0xcd4   : > { %7262 = vmatmul.mubr.msk.bf16.vlgmr.msra.gmra.mrb[28].mxu1 %vm1434_vm10, %v7775_v14 }
 0xcd5   : > { %6552 = vmatpush1.bf16.msra.mxu1 %v6538_v42  ;;  %6583 = vmatprep.mubr.bf16.mxu1 %v10527_v20  ;;  %v6755_v7 = vpop.permute.xlu1 %6754 }
 0xcd6   : > { %6627 = vmatprep.subr.bf16.mxu1 %v6615_v28 }
 0xcd7   : > { %v6760_v19 = vpop.permute.xlu0 %6759 }
 0xcd9   : > { %v6777_v31 = vpop.permute.xlu1 %6776 }
 0xce0   : > { %7266 = vmatmul.mubr.msk.bf16.vlgmr.msra.gmra.mrb[28].mxu1 %vm1434_vm10, %v7776_v10 }
 0xce1   : > { %6628 = vmatpush1.bf16.msra.mxu1 %v6614_v1  ;;  %6659 = vmatprep.mubr.bf16.mxu1 %v10527_v20 }
 0xce2   : > { %6703 = vmatprep.subr.bf16.mxu1 %v6691_v33 }
 0xcec   : > { %7270 = vmatmul.mubr.msk.bf16.vlgmr.msra.gmra.mrb[28].mxu1 %vm1434_vm10, %v7777_v55 }
 0xced   : > { %6704 = vmatpush1.bf16.msra.mxu1 %v6690_v46  ;;  %6735 = vmatprep.mubr.bf16.mxu1 %v10527_v20 }
 0xcf8   : > { %7274 = vmatmul.mubr.msk.bf16.vlgmr.msra.gmra.mrb[28].mxu1 %vm1434_vm10, %v7778_v32 }
 0xcf9   : > { %6814 = vmatprep.mubr.bf16.mxu1 %v10527_v20  ;;  %v6770_v20 = vld [vmem:[%s10445_s18] sm:$0x3] }
 0xdcb   : > { %v6737_v61 = vpop.f32.mrb[28].mxu1 }
 0xdcc   : > { %v6762_v48 = vadd.f32 %v6755_v7, %v6737_v61  ;;  %v6739_v57 = vpop.f32.mrb[29].mxu1 }
 0xdcd   : > { %v6763_v50 = vadd.f32 %v6755_v7, %v6739_v57  ;;  %v6741_v25 = vpop.f32.mrb[30].mxu1 }
 0xdce   : > { %v6764_v54 = vadd.f32 %v6760_v19, %v6741_v25  ;;  %v6743_v60 = vpop.f32.mrb[31].mxu1  ;;  %v6766_v16 = vmax.f32 %v6762_v48, 0.0 }
 0xdcf   : > { %v6765_v8 = vadd.f32 %v6760_v19, %v6743_v60  ;;  %v6767_v63 = vmax.f32 %v6763_v50, 0.0 }
 0xdd0   : > { %v6768_v15 = vmax.f32 %v6764_v54, 0.0 }
 0xdd1   : > { %v6769_v27 = vmax.f32 %v6765_v8, 0.0 }
 0xdd2   : > { %v6771_v62 = vpack.c.bf16 %v6768_v15, %v6766_v16 }
 0xdd3   : > { %v6772_v40 = vpack.c.bf16 %v6769_v27, %v6767_v63 }
 0xdd5   : > { %6782 = vmatprep.subr.bf16.mxu1 %v6772_v40 }
 0xdd6   : > { %6783 = vmatpush1.bf16.msra.mxu1 %v6771_v62 }
 0xdd9   : > { %7275 = vmatmul.mubr.msk.bf16.vlgmr.msra.gmra.mrb[32].mxu1 %vm1434_vm10, %v6770_v20 }
 0xeac   : > { %v6816_v45 = vpop.f32.mrb[32].mxu1 }
 0xead   : > { %v6817_v11 = vadd.f32 %v6816_v45, %v6777_v31  ;;  %v6818_v39 = vpop.f32.mrb[33].mxu1 }
 0xeae   : > { %v6819_v53 = vadd.f32 %v6818_v39, %v6777_v31  ;;  %v6820_v26 = vpop.f32.mrb[34].mxu1 }
 0xeaf   : > { %v6821_v49 = vpop.f32.mrb[35].mxu1 }
 0xeb0   : > { %v6825_v51 = vcombine.low %v6817_v11, %v6819_v53 }
 0xeb2   : > { %6827 = vst [vmem:[%s629_s7] sm:$0xff] %v6825_v51 }
 0xeb3 PF: > { %s10541_s8 = sld [smem:[#allocation2_spill]] }
 0xeb9   : > { %s30_s1 = sadd.s32 1, %s10541_s8  }
 0xeba   : > { %p27_p4 = scmp.ge.s32.totalorder %s30_s1, 4  }
 0xebc   :  { %29 = sbr.rel (!%p27_p4) target bundleno = 13 (0xd), region = 186 }

</bundles_post_ra>
